<compile_context>
chip_gen: v6e
topology: v6e:2x2x1
jax: 0.10.0
libtpu: 0.0.40
codegen_flags: <defaults>
</compile_context>

<pallas_src>
import functools

import numpy as np

import jax
import jax.numpy as jnp
from jax import lax
from jax.experimental import pallas as pl
from jax.experimental.pallas import tpu as pltpu

LEAKY_SLOPE = 0.2
BN_EPS = 1e-5
LATENT_DIM = 100
FC_PAD = 128                 # lane-dense padded FC output width (100 -> 128)
H0 = W0 = 16                 # input spatial size (single channel)
STRIDE, PAD = 2, 1


# ----------------------------------------------------------------------------
# Fused kernel
# ----------------------------------------------------------------------------
def _leaky(v):
    return jnp.where(v >= 0, v, LEAKY_SLOPE * v)


def _lane_tile(row, reps):
    """Repeat a (1, C) row `reps` times along lanes -> (1, reps*C)."""
    if reps == 1:
        return row
    return jnp.concatenate([row] * reps, axis=1)


def _encoder_kernel(x_ref,
                    m1_ref, b1_ref,
                    m2_ref, b2_ref, g2_ref, bb2_ref, gs2_ref,
                    m3_ref, b3_ref, g3_ref, bb3_ref, gs3_ref,
                    fw_ref, fb_ref,
                    o_ref, *, inv_n2, inv_n3):
    """Whole Encoder forward; all intermediates stay in vregs / VMEM."""

    def conv_rows(act, w_ref, b_ref, h_in, h_out, rw):
        """4x4 / stride-2 / pad-1 conv as one matmul per output row.

        act   : (B, h_in*rw) bf16, NHWC-flat (rw = w_in*cin lanes per row)
        w_ref : (4*rw, 256) bf16 -- per-kernel-row folds stacked along K
        b_ref : (1, 256) f32 conv bias for one output row (w_out*cout lanes)
        """
        bias = b_ref[...]
        rows = []
        for ho in range(h_out):
            lo = max(0, 1 - 2 * ho)               # first valid kernel row
            hi = min(4, h_in - 2 * ho + 1)        # one past last valid row
            k0 = (2 * ho - 1 + lo) * rw           # contiguous input-row window
            a_sl = act[:, k0:k0 + (hi - lo) * rw]
            w_sl = w_ref[pl.ds(lo * rw, (hi - lo) * rw), :]
            rows.append(jnp.dot(a_sl, w_sl,
                                preferred_element_type=jnp.float32) + bias)
        return jnp.concatenate(rows, axis=1)      # (B, h_out*256) f32

    def bn_lrelu(a, gs_ref, g_ref, bb_ref, s_rows, inv_n):
        """Training-mode BatchNorm (batch stats, biased var) + LeakyReLU.

        a      : (B, s_rows*256) f32 pre-activations, NHWC-flat.
        gs_ref : (256, C) 0/1 channel-group matrix (one 256-lane output row).
        g_ref  : (1, C) gamma.   bb_ref: (1, 256) beta pre-tiled over w_out.
        """
        c = gs_ref.shape[1]
        reps = 256 // c
        gs = gs_ref[...]
        colsum = jnp.sum(a, axis=0, keepdims=True)            # (1, s_rows*256)
        tot = colsum[:, :256]
        for r in range(1, s_rows):
            tot = tot + colsum[:, r * 256:(r + 1) * 256]
        mean_c = jnp.dot(tot, gs, preferred_element_type=jnp.float32) * inv_n
        mean_bc = _lane_tile(_lane_tile(mean_c, reps), s_rows)
        xc = a - mean_bc
        sq = jnp.sum(xc * xc, axis=0, keepdims=True)
        tot2 = sq[:, :256]
        for r in range(1, s_rows):
            tot2 = tot2 + sq[:, r * 256:(r + 1) * 256]
        var_c = jnp.dot(tot2, gs, preferred_element_type=jnp.float32) * inv_n
        scale_c = g_ref[...] * lax.rsqrt(var_c + BN_EPS)       # (1, C)
        y = (xc * _lane_tile(_lane_tile(scale_c, reps), s_rows)
             + _lane_tile(bb_ref[...], s_rows))
        return _leaky(y)

    x = x_ref[...]                                             # (B, 256) bf16
    # conv1 + bias + LeakyReLU  (cast to bf16 once, reused by conv2)
    a1 = _leaky(conv_rows(x, m1_ref, b1_ref, 16, 8, 16)
                ).astype(jnp.bfloat16)                         # (B, 2048)
    # conv2 + bias + BN(64) + LeakyReLU
    p2 = conv_rows(a1, m2_ref, b2_ref, 8, 4, 256)              # (B, 1024) f32
    a2 = bn_lrelu(p2, gs2_ref, g2_ref, bb2_ref, 4, inv_n2).astype(jnp.bfloat16)
    # conv3 + bias + BN(128) + LeakyReLU
    p3 = conv_rows(a2, m3_ref, b3_ref, 4, 2, 256)              # (B, 512) f32
    a3 = bn_lrelu(p3, gs3_ref, g3_ref, bb3_ref, 2, inv_n3).astype(jnp.bfloat16)
    # FC (Flatten's NCHW ordering folded into fw rows; output padded to 128)
    o_ref[...] = (jnp.dot(a3, fw_ref[...], preferred_element_type=jnp.float32)
                  + fb_ref[...]).astype(o_ref.dtype)


def _full_spec(arr):
    zeros = (0,) * arr.ndim
    return pl.BlockSpec(arr.shape, lambda *_: zeros)


def encoder_forward(params, x_nchw):
    """x_nchw: (B, 1, 16, 16) float32 -> (B, latent_dim) float32."""
    B = x_nchw.shape[0]
    latent_dim = params["fc_b_vec"].shape[0]
    # C == 1, so the NCHW flatten equals the NHWC flatten the kernel expects.
    x2d = x_nchw.reshape(B, H0 * W0).astype(jnp.bfloat16)

    args = (
        x2d,
        params["m1s"], params["b1r"],
        params["m2s"], params["b2r"], params["bn2_g_row"], params["bn2_b_row"],
        params["gs2"],
        params["m3s"], params["b3r"], params["bn3_g_row"], params["bn3_b_row"],
        params["gs3"],
        params["fc_w_pad"], params["fc_b_pad"],
    )
    # TODO(synk): inv_n2/inv_n3 are static per batch size; a batch-tiled
    # two-pass BN variant would remove this and enable v7x megacore sharding.
    kernel = functools.partial(_encoder_kernel,
                               inv_n2=1.0 / float(B * 4 * 4),
                               inv_n3=1.0 / float(B * 2 * 2))
    out = pl.pallas_call(
        kernel,
        out_shape=jax.ShapeDtypeStruct((B, FC_PAD), jnp.float32),
        in_specs=[_full_spec(a) for a in args],
        out_specs=pl.BlockSpec((B, FC_PAD), lambda *_: (0, 0)),
        compiler_params=pltpu.CompilerParams(
            vmem_limit_bytes=32 * 1024 * 1024),   # ~2 MiB live at small B
    )(*args)
    # Kernel writes a lane-dense (B, 128) slab; trim the zero padding here.
    return out[:, :latent_dim]


# ----------------------------------------------------------------------------
# Init-time layout plumbing (zero runtime cost)
# ----------------------------------------------------------------------------
def _uniform(key, shape, bound):
    return jax.random.uniform(key, shape, jnp.float32, -bound, bound)


def _rowfold_stacked(w_hwio, w_in):
    """Fold each kernel row of a 4x4/stride-2/pad-1 conv into a dense matrix
    that maps ONE NHWC-flat input row -> ONE output row; stack the 4 folds
    along K.  Returns (4*w_in*cin, w_out*cout) float32 (raw-sized weights)."""
    kh, kw, cin, cout = w_hwio.shape
    w_np = np.asarray(w_hwio, np.float32)
    w_out = (w_in + 2 * PAD - kw) // STRIDE + 1
    rw = w_in * cin
    m = np.zeros((kh, rw, w_out * cout), np.float32)
    for i in range(kh):
        for wo in range(w_out):
            for j in range(kw):
                wi = STRIDE * wo - PAD + j
                if 0 <= wi < w_in:
                    m[i, wi * cin:(wi + 1) * cin,
                      wo * cout:(wo + 1) * cout] = w_np[i, j]
    return m.reshape(kh * rw, w_out * cout)


def init_params(latent_dim=LATENT_DIM, seed=42):
    keys = jax.random.split(jax.random.PRNGKey(seed), 8)
    p = {}

    def conv_init(kw_key, kb_key, cin, cout, k=4):
        bound = 1.0 / np.sqrt(cin * k * k)
        return (_uniform(kw_key, (k, k, cin, cout), bound),   # HWIO
                _uniform(kb_key, (cout,), bound))

    # Raw parameters (used by the plain-JAX reference).
    p["conv1_w"], p["conv1_b"] = conv_init(keys[0], keys[1], 1, 32)
    p["conv2_w"], p["conv2_b"] = conv_init(keys[2], keys[3], 32, 64)
    p["conv3_w"], p["conv3_b"] = conv_init(keys[4], keys[5], 64, 128)
    p["bn2_gamma"] = jnp.ones((64,), jnp.float32)
    p["bn2_beta"] = jnp.zeros((64,), jnp.float32)
    p["bn3_gamma"] = jnp.ones((128,), jnp.float32)
    p["bn3_beta"] = jnp.zeros((128,), jnp.float32)
    fin = 128 * 2 * 2
    fc_bound = 1.0 / np.sqrt(fin)
    p["fc_w_nchw"] = _uniform(keys[6], (fin, latent_dim), fc_bound)
    p["fc_b_vec"] = _uniform(keys[7], (latent_dim,), fc_bound)

    # ---- Kernel-side derived parameters (~1.4 MiB total DMA) -----------------
    p["m1s"] = jnp.asarray(_rowfold_stacked(p["conv1_w"], 16), jnp.bfloat16)  # (64,256)
    p["m2s"] = jnp.asarray(_rowfold_stacked(p["conv2_w"], 8), jnp.bfloat16)   # (1024,256)
    p["m3s"] = jnp.asarray(_rowfold_stacked(p["conv3_w"], 4), jnp.bfloat16)   # (1024,256)

    # Conv bias rows (one output row: w_out copies of the per-channel bias).
    p["b1r"] = jnp.tile(p["conv1_b"], 8).reshape(1, -1)     # (1, 256)
    p["b2r"] = jnp.tile(p["conv2_b"], 4).reshape(1, -1)     # (1, 256)
    p["b3r"] = jnp.tile(p["conv3_b"], 2).reshape(1, -1)     # (1, 256)

    # 0/1 channel-group matrices (per 256-lane output row) for BN reductions.
    p["gs2"] = jnp.asarray(np.tile(np.eye(64, dtype=np.float32), (4, 1)))   # (256,64)
    p["gs3"] = jnp.asarray(np.tile(np.eye(128, dtype=np.float32), (2, 1)))  # (256,128)

    p["bn2_g_row"] = p["bn2_gamma"].reshape(1, -1)                   # (1,64)
    p["bn3_g_row"] = p["bn3_gamma"].reshape(1, -1)                   # (1,128)
    p["bn2_b_row"] = jnp.tile(p["bn2_beta"], 4).reshape(1, -1)       # (1,256)
    p["bn3_b_row"] = jnp.tile(p["bn3_beta"], 2).reshape(1, -1)       # (1,256)

    # FC: fold torch.nn.Flatten's NCHW ordering into the weight rows and
    # zero-pad the output dim latent_dim -> 128 for lane-dense stores.
    q = np.arange(fin)
    ho, rem = q // 256, q % 256
    wo, c = rem // 128, rem % 128
    perm = c * 4 + ho * 2 + wo          # NHWC-flat row q  <-  NCHW-flat row perm[q]
    fcw = np.zeros((fin, FC_PAD), np.float32)
    fcw[:, :latent_dim] = np.asarray(p["fc_w_nchw"])[perm, :]
    p["fc_w_pad"] = jnp.asarray(fcw, jnp.bfloat16)                   # (512,128)
    fcb = np.zeros((1, FC_PAD), np.float32)
    fcb[0, :latent_dim] = np.asarray(p["fc_b_vec"])
    p["fc_b_pad"] = jnp.asarray(fcb)                                 # (1,128)
    return p


# ----------------------------------------------------------------------------
# Plain-JAX f32 reference (same training-mode BN semantics) for validation
# ----------------------------------------------------------------------------
def encoder_reference(params, x_nchw):
    def conv(x, w):
        return lax.conv_general_dilated(
            x, w, window_strides=(2, 2), padding=((1, 1), (1, 1)),
            dimension_numbers=("NHWC", "HWIO", "NHWC"))

    def bn_lrelu(y, gamma, beta):
        mean = jnp.mean(y, axis=(0, 1, 2), keepdims=True)
        var = jnp.mean(jnp.square(y - mean), axis=(0, 1, 2), keepdims=True)
        y = (y - mean) * lax.rsqrt(var + BN_EPS) * gamma + beta
        return jnp.where(y >= 0, y, LEAKY_SLOPE * y)

    B = x_nchw.shape[0]
    x = jnp.transpose(x_nchw, (0, 2, 3, 1))                 # NCHW -> NHWC
    y = conv(x, params["conv1_w"]) + params["conv1_b"]
    y = jnp.where(y >= 0, y, LEAKY_SLOPE * y)
    y = conv(y, params["conv2_w"]) + params["conv2_b"]
    y = bn_lrelu(y, params["bn2_gamma"], params["bn2_beta"])
    y = conv(y, params["conv3_w"]) + params["conv3_b"]
    y = bn_lrelu(y, params["bn3_gamma"], params["bn3_beta"])
    flat = jnp.transpose(y, (0, 3, 1, 2)).reshape(B, -1)    # torch Flatten order
    return flat @ params["fc_w_nchw"] + params["fc_b_vec"]


# ----------------------------------------------------------------------------
if __name__ == "__main__":
    B = 2
    x = jax.random.normal(jax.random.PRNGKey(0), (B, 1, 16, 16), jnp.float32)
    params = init_params(latent_dim=LATENT_DIM, seed=42)

    z = jax.jit(encoder_forward)(params, x)
    z = jax.block_until_ready(z)

    assert z.shape == (B, LATENT_DIM), z.shape
    assert bool(jnp.all(jnp.isfinite(z))), "non-finite output"

    # Cross-check against the plain-JAX f32 reference (bf16 matmul tolerance).
    z_ref = jax.block_until_ready(jax.jit(encoder_reference)(params, x))
    max_err = float(jnp.max(jnp.abs(z - z_ref)))
    assert max_err < 0.1, f"kernel/reference mismatch: max abs err {max_err}"

    print("KERNEL_OK")
</pallas_src>

<mosaic_0001>
module attributes {stable_mosaic.version = 11 : i64} {
  func.func @_encoder_kernel(%arg0: memref<2x256xbf16, #tpu.memory_space<vmem>>, %arg1: memref<64x256xbf16, #tpu.memory_space<vmem>>, %arg2: memref<1x256xf32, #tpu.memory_space<vmem>>, %arg3: memref<1024x256xbf16, #tpu.memory_space<vmem>>, %arg4: memref<1x256xf32, #tpu.memory_space<vmem>>, %arg5: memref<1x64xf32, #tpu.memory_space<vmem>>, %arg6: memref<1x256xf32, #tpu.memory_space<vmem>>, %arg7: memref<256x64xf32, #tpu.memory_space<vmem>>, %arg8: memref<1024x256xbf16, #tpu.memory_space<vmem>>, %arg9: memref<1x256xf32, #tpu.memory_space<vmem>>, %arg10: memref<1x128xf32, #tpu.memory_space<vmem>>, %arg11: memref<1x256xf32, #tpu.memory_space<vmem>>, %arg12: memref<256x128xf32, #tpu.memory_space<vmem>>, %arg13: memref<512x128xbf16, #tpu.memory_space<vmem>>, %arg14: memref<1x128xf32, #tpu.memory_space<vmem>>, %arg15: memref<2x128xf32, #tpu.memory_space<vmem>>) attributes {dimension_semantics = [], scalar_prefetch = 0 : i64, scratch_operands = 0 : i64, tpu.core_type = #tpu.core_type<tc>} {
    %c0 = arith.constant 0 : index
    %c0_0 = arith.constant 0 : index
    %0 = vector.load %arg0[%c0, %c0_0] : memref<2x256xbf16, #tpu.memory_space<vmem>>, vector<2x256xbf16>
    %c0_1 = arith.constant 0 : index
    %c0_2 = arith.constant 0 : index
    %1 = vector.load %arg2[%c0_1, %c0_2] : memref<1x256xf32, #tpu.memory_space<vmem>>, vector<1x256xf32>
    %2 = vector.extract_strided_slice %0 {offsets = [0, 0], sizes = [2, 48], strides = [1, 1]} : vector<2x256xbf16> to vector<2x48xbf16>
    %c16 = arith.constant 16 : index
    %c0_3 = arith.constant 0 : index
    %3 = vector.load %arg1[%c16, %c0_3] : memref<64x256xbf16, #tpu.memory_space<vmem>>, vector<48x256xbf16>
    %cst = arith.constant dense<0.000000e+00> : vector<2x256xf32>
    %4 = tpu.matmul %2, %3, %cst {dimension_numbers = #tpu.dot_dimension_numbers<[1], [0], [0], [1], [0, 0, 1, 1], [], []>} : vector<2x48xbf16>, vector<48x256xbf16>, vector<2x256xf32> -> vector<2x256xf32>
    %5 = vector.broadcast %1 : vector<1x256xf32> to vector<2x256xf32>
    %6 = arith.addf %4, %5 : vector<2x256xf32>
    %7 = vector.extract_strided_slice %0 {offsets = [0, 16], sizes = [2, 64], strides = [1, 1]} : vector<2x256xbf16> to vector<2x64xbf16>
    %c0_4 = arith.constant 0 : index
    %c0_5 = arith.constant 0 : index
    %8 = vector.load %arg1[%c0_4, %c0_5] : memref<64x256xbf16, #tpu.memory_space<vmem>>, vector<64x256xbf16>
    %cst_6 = arith.constant dense<0.000000e+00> : vector<2x256xf32>
    %9 = tpu.matmul %7, %8, %cst_6 {dimension_numbers = #tpu.dot_dimension_numbers<[1], [0], [0], [1], [0, 0, 1, 1], [], []>} : vector<2x64xbf16>, vector<64x256xbf16>, vector<2x256xf32> -> vector<2x256xf32>
    %10 = vector.broadcast %1 : vector<1x256xf32> to vector<2x256xf32>
    %11 = arith.addf %9, %10 : vector<2x256xf32>
    %12 = vector.extract_strided_slice %0 {offsets = [0, 48], sizes = [2, 64], strides = [1, 1]} : vector<2x256xbf16> to vector<2x64xbf16>
    %c0_7 = arith.constant 0 : index
    %c0_8 = arith.constant 0 : index
    %13 = vector.load %arg1[%c0_7, %c0_8] : memref<64x256xbf16, #tpu.memory_space<vmem>>, vector<64x256xbf16>
    %cst_9 = arith.constant dense<0.000000e+00> : vector<2x256xf32>
    %14 = tpu.matmul %12, %13, %cst_9 {dimension_numbers = #tpu.dot_dimension_numbers<[1], [0], [0], [1], [0, 0, 1, 1], [], []>} : vector<2x64xbf16>, vector<64x256xbf16>, vector<2x256xf32> -> vector<2x256xf32>
    %15 = vector.broadcast %1 : vector<1x256xf32> to vector<2x256xf32>
    %16 = arith.addf %14, %15 : vector<2x256xf32>
    %17 = vector.extract_strided_slice %0 {offsets = [0, 80], sizes = [2, 64], strides = [1, 1]} : vector<2x256xbf16> to vector<2x64xbf16>
    %c0_10 = arith.constant 0 : index
    %c0_11 = arith.constant 0 : index
    %18 = vector.load %arg1[%c0_10, %c0_11] : memref<64x256xbf16, #tpu.memory_space<vmem>>, vector<64x256xbf16>
    %cst_12 = arith.constant dense<0.000000e+00> : vector<2x256xf32>
    %19 = tpu.matmul %17, %18, %cst_12 {dimension_numbers = #tpu.dot_dimension_numbers<[1], [0], [0], [1], [0, 0, 1, 1], [], []>} : vector<2x64xbf16>, vector<64x256xbf16>, vector<2x256xf32> -> vector<2x256xf32>
    %20 = vector.broadcast %1 : vector<1x256xf32> to vector<2x256xf32>
    %21 = arith.addf %19, %20 : vector<2x256xf32>
    %22 = vector.extract_strided_slice %0 {offsets = [0, 112], sizes = [2, 64], strides = [1, 1]} : vector<2x256xbf16> to vector<2x64xbf16>
    %c0_13 = arith.constant 0 : index
    %c0_14 = arith.constant 0 : index
    %23 = vector.load %arg1[%c0_13, %c0_14] : memref<64x256xbf16, #tpu.memory_space<vmem>>, vector<64x256xbf16>
    %cst_15 = arith.constant dense<0.000000e+00> : vector<2x256xf32>
    %24 = tpu.matmul %22, %23, %cst_15 {dimension_numbers = #tpu.dot_dimension_numbers<[1], [0], [0], [1], [0, 0, 1, 1], [], []>} : vector<2x64xbf16>, vector<64x256xbf16>, vector<2x256xf32> -> vector<2x256xf32>
    %25 = vector.broadcast %1 : vector<1x256xf32> to vector<2x256xf32>
    %26 = arith.addf %24, %25 : vector<2x256xf32>
    %27 = vector.extract_strided_slice %0 {offsets = [0, 144], sizes = [2, 64], strides = [1, 1]} : vector<2x256xbf16> to vector<2x64xbf16>
    %c0_16 = arith.constant 0 : index
    %c0_17 = arith.constant 0 : index
    %28 = vector.load %arg1[%c0_16, %c0_17] : memref<64x256xbf16, #tpu.memory_space<vmem>>, vector<64x256xbf16>
    %cst_18 = arith.constant dense<0.000000e+00> : vector<2x256xf32>
    %29 = tpu.matmul %27, %28, %cst_18 {dimension_numbers = #tpu.dot_dimension_numbers<[1], [0], [0], [1], [0, 0, 1, 1], [], []>} : vector<2x64xbf16>, vector<64x256xbf16>, vector<2x256xf32> -> vector<2x256xf32>
    %30 = vector.broadcast %1 : vector<1x256xf32> to vector<2x256xf32>
    %31 = arith.addf %29, %30 : vector<2x256xf32>
    %32 = vector.extract_strided_slice %0 {offsets = [0, 176], sizes = [2, 64], strides = [1, 1]} : vector<2x256xbf16> to vector<2x64xbf16>
    %c0_19 = arith.constant 0 : index
    %c0_20 = arith.constant 0 : index
    %33 = vector.load %arg1[%c0_19, %c0_20] : memref<64x256xbf16, #tpu.memory_space<vmem>>, vector<64x256xbf16>
    %cst_21 = arith.constant dense<0.000000e+00> : vector<2x256xf32>
    %34 = tpu.matmul %32, %33, %cst_21 {dimension_numbers = #tpu.dot_dimension_numbers<[1], [0], [0], [1], [0, 0, 1, 1], [], []>} : vector<2x64xbf16>, vector<64x256xbf16>, vector<2x256xf32> -> vector<2x256xf32>
    %35 = vector.broadcast %1 : vector<1x256xf32> to vector<2x256xf32>
    %36 = arith.addf %34, %35 : vector<2x256xf32>
    %37 = vector.extract_strided_slice %0 {offsets = [0, 208], sizes = [2, 48], strides = [1, 1]} : vector<2x256xbf16> to vector<2x48xbf16>
    %c0_22 = arith.constant 0 : index
    %c0_23 = arith.constant 0 : index
    %38 = vector.load %arg1[%c0_22, %c0_23] : memref<64x256xbf16, #tpu.memory_space<vmem>>, vector<48x256xbf16>
    %cst_24 = arith.constant dense<0.000000e+00> : vector<2x256xf32>
    %39 = tpu.matmul %37, %38, %cst_24 {dimension_numbers = #tpu.dot_dimension_numbers<[1], [0], [0], [1], [0, 0, 1, 1], [], []>} : vector<2x48xbf16>, vector<48x256xbf16>, vector<2x256xf32> -> vector<2x256xf32>
    %40 = vector.broadcast %1 : vector<1x256xf32> to vector<2x256xf32>
    %41 = arith.addf %39, %40 : vector<2x256xf32>
    %42 = tpu.concatenate %6, %11, %16, %21, %26, %31, %36, %41 in 1 : vector<2x256xf32>, vector<2x256xf32>, vector<2x256xf32>, vector<2x256xf32>, vector<2x256xf32>, vector<2x256xf32>, vector<2x256xf32>, vector<2x256xf32> -> vector<2x2048xf32>
    %cst_25 = arith.constant 0.000000e+00 : f32
    %43 = vector.broadcast %cst_25 : f32 to vector<2x2048xf32>
    %44 = arith.cmpf oge, %42, %43 : vector<2x2048xf32>
    %cst_26 = arith.constant 2.000000e-01 : f32
    %45 = vector.broadcast %cst_26 : f32 to vector<2x2048xf32>
    %46 = arith.mulf %45, %42 : vector<2x2048xf32>
    %47 = arith.select %44, %42, %46 : vector<2x2048xi1>, vector<2x2048xf32>
    %48 = arith.truncf %47 : vector<2x2048xf32> to vector<2x2048xbf16>
    %c0_27 = arith.constant 0 : index
    %c0_28 = arith.constant 0 : index
    %49 = vector.load %arg4[%c0_27, %c0_28] : memref<1x256xf32, #tpu.memory_space<vmem>>, vector<1x256xf32>
    %50 = vector.extract_strided_slice %48 {offsets = [0, 0], sizes = [2, 768], strides = [1, 1]} : vector<2x2048xbf16> to vector<2x768xbf16>
    %c256 = arith.constant 256 : index
    %c0_29 = arith.constant 0 : index
    %51 = vector.load %arg3[%c256, %c0_29] : memref<1024x256xbf16, #tpu.memory_space<vmem>>, vector<768x256xbf16>
    %cst_30 = arith.constant dense<0.000000e+00> : vector<2x256xf32>
    %52 = tpu.matmul %50, %51, %cst_30 {dimension_numbers = #tpu.dot_dimension_numbers<[1], [0], [0], [1], [0, 0, 1, 1], [], []>} : vector<2x768xbf16>, vector<768x256xbf16>, vector<2x256xf32> -> vector<2x256xf32>
    %53 = vector.broadcast %49 : vector<1x256xf32> to vector<2x256xf32>
    %54 = arith.addf %52, %53 : vector<2x256xf32>
    %55 = vector.extract_strided_slice %48 {offsets = [0, 256], sizes = [2, 1024], strides = [1, 1]} : vector<2x2048xbf16> to vector<2x1024xbf16>
    %c0_31 = arith.constant 0 : index
    %c0_32 = arith.constant 0 : index
    %56 = vector.load %arg3[%c0_31, %c0_32] : memref<1024x256xbf16, #tpu.memory_space<vmem>>, vector<1024x256xbf16>
    %cst_33 = arith.constant dense<0.000000e+00> : vector<2x256xf32>
    %57 = tpu.matmul %55, %56, %cst_33 {dimension_numbers = #tpu.dot_dimension_numbers<[1], [0], [0], [1], [0, 0, 1, 1], [], []>} : vector<2x1024xbf16>, vector<1024x256xbf16>, vector<2x256xf32> -> vector<2x256xf32>
    %58 = vector.broadcast %49 : vector<1x256xf32> to vector<2x256xf32>
    %59 = arith.addf %57, %58 : vector<2x256xf32>
    %60 = vector.extract_strided_slice %48 {offsets = [0, 768], sizes = [2, 1024], strides = [1, 1]} : vector<2x2048xbf16> to vector<2x1024xbf16>
    %c0_34 = arith.constant 0 : index
    %c0_35 = arith.constant 0 : index
    %61 = vector.load %arg3[%c0_34, %c0_35] : memref<1024x256xbf16, #tpu.memory_space<vmem>>, vector<1024x256xbf16>
    %cst_36 = arith.constant dense<0.000000e+00> : vector<2x256xf32>
    %62 = tpu.matmul %60, %61, %cst_36 {dimension_numbers = #tpu.dot_dimension_numbers<[1], [0], [0], [1], [0, 0, 1, 1], [], []>} : vector<2x1024xbf16>, vector<1024x256xbf16>, vector<2x256xf32> -> vector<2x256xf32>
    %63 = vector.broadcast %49 : vector<1x256xf32> to vector<2x256xf32>
    %64 = arith.addf %62, %63 : vector<2x256xf32>
    %65 = vector.extract_strided_slice %48 {offsets = [0, 1280], sizes = [2, 768], strides = [1, 1]} : vector<2x2048xbf16> to vector<2x768xbf16>
    %c0_37 = arith.constant 0 : index
    %c0_38 = arith.constant 0 : index
    %66 = vector.load %arg3[%c0_37, %c0_38] : memref<1024x256xbf16, #tpu.memory_space<vmem>>, vector<768x256xbf16>
    %cst_39 = arith.constant dense<0.000000e+00> : vector<2x256xf32>
    %67 = tpu.matmul %65, %66, %cst_39 {dimension_numbers = #tpu.dot_dimension_numbers<[1], [0], [0], [1], [0, 0, 1, 1], [], []>} : vector<2x768xbf16>, vector<768x256xbf16>, vector<2x256xf32> -> vector<2x256xf32>
    %68 = vector.broadcast %49 : vector<1x256xf32> to vector<2x256xf32>
    %69 = arith.addf %67, %68 : vector<2x256xf32>
    %70 = tpu.concatenate %54, %59, %64, %69 in 1 : vector<2x256xf32>, vector<2x256xf32>, vector<2x256xf32>, vector<2x256xf32> -> vector<2x1024xf32>
    %c0_40 = arith.constant 0 : index
    %c0_41 = arith.constant 0 : index
    %71 = vector.load %arg7[%c0_40, %c0_41] : memref<256x64xf32, #tpu.memory_space<vmem>>, vector<256x64xf32>
    %cst_42 = arith.constant dense<0.000000e+00> : vector<1024xf32>
    %72 = vector.multi_reduction <add>, %70, %cst_42 [0] : vector<2x1024xf32> to vector<1024xf32>
    %73 = vector.shape_cast %72 : vector<1024xf32> to vector<1x1024xf32>
    %74 = vector.extract_strided_slice %73 {offsets = [0, 0], sizes = [1, 256], strides = [1, 1]} : vector<1x1024xf32> to vector<1x256xf32>
    %75 = vector.extract_strided_slice %73 {offsets = [0, 256], sizes = [1, 256], strides = [1, 1]} : vector<1x1024xf32> to vector<1x256xf32>
    %76 = arith.addf %74, %75 : vector<1x256xf32>
    %77 = vector.extract_strided_slice %73 {offsets = [0, 512], sizes = [1, 256], strides = [1, 1]} : vector<1x1024xf32> to vector<1x256xf32>
    %78 = arith.addf %76, %77 : vector<1x256xf32>
    %79 = vector.extract_strided_slice %73 {offsets = [0, 768], sizes = [1, 256], strides = [1, 1]} : vector<1x1024xf32> to vector<1x256xf32>
    %80 = arith.addf %78, %79 : vector<1x256xf32>
    %cst_43 = arith.constant dense<0.000000e+00> : vector<1x64xf32>
    %81 = tpu.matmul %80, %71, %cst_43 {dimension_numbers = #tpu.dot_dimension_numbers<[1], [0], [0], [1], [0, 0, 1, 1], [], []>} : vector<1x256xf32>, vector<256x64xf32>, vector<1x64xf32> -> vector<1x64xf32>
    %cst_44 = arith.constant 3.125000e-02 : f32
    %82 = vector.broadcast %cst_44 : f32 to vector<1x64xf32>
    %83 = arith.mulf %81, %82 : vector<1x64xf32>
    %84 = tpu.concatenate %83, %83, %83, %83 in 1 : vector<1x64xf32>, vector<1x64xf32>, vector<1x64xf32>, vector<1x64xf32> -> vector<1x256xf32>
    %85 = tpu.concatenate %84, %84, %84, %84 in 1 : vector<1x256xf32>, vector<1x256xf32>, vector<1x256xf32>, vector<1x256xf32> -> vector<1x1024xf32>
    %86 = vector.broadcast %85 : vector<1x1024xf32> to vector<2x1024xf32>
    %87 = arith.subf %70, %86 : vector<2x1024xf32>
    %88 = arith.mulf %87, %87 : vector<2x1024xf32>
    %cst_45 = arith.constant dense<0.000000e+00> : vector<1024xf32>
    %89 = vector.multi_reduction <add>, %88, %cst_45 [0] : vector<2x1024xf32> to vector<1024xf32>
    %90 = vector.shape_cast %89 : vector<1024xf32> to vector<1x1024xf32>
    %91 = vector.extract_strided_slice %90 {offsets = [0, 0], sizes = [1, 256], strides = [1, 1]} : vector<1x1024xf32> to vector<1x256xf32>
    %92 = vector.extract_strided_slice %90 {offsets = [0, 256], sizes = [1, 256], strides = [1, 1]} : vector<1x1024xf32> to vector<1x256xf32>
    %93 = arith.addf %91, %92 : vector<1x256xf32>
    %94 = vector.extract_strided_slice %90 {offsets = [0, 512], sizes = [1, 256], strides = [1, 1]} : vector<1x1024xf32> to vector<1x256xf32>
    %95 = arith.addf %93, %94 : vector<1x256xf32>
    %96 = vector.extract_strided_slice %90 {offsets = [0, 768], sizes = [1, 256], strides = [1, 1]} : vector<1x1024xf32> to vector<1x256xf32>
    %97 = arith.addf %95, %96 : vector<1x256xf32>
    %cst_46 = arith.constant dense<0.000000e+00> : vector<1x64xf32>
    %98 = tpu.matmul %97, %71, %cst_46 {dimension_numbers = #tpu.dot_dimension_numbers<[1], [0], [0], [1], [0, 0, 1, 1], [], []>} : vector<1x256xf32>, vector<256x64xf32>, vector<1x64xf32> -> vector<1x64xf32>
    %cst_47 = arith.constant 3.125000e-02 : f32
    %99 = vector.broadcast %cst_47 : f32 to vector<1x64xf32>
    %100 = arith.mulf %98, %99 : vector<1x64xf32>
    %c0_48 = arith.constant 0 : index
    %c0_49 = arith.constant 0 : index
    %101 = vector.load %arg5[%c0_48, %c0_49] : memref<1x64xf32, #tpu.memory_space<vmem>>, vector<1x64xf32>
    %cst_50 = arith.constant 9.99999974E-6 : f32
    %102 = vector.broadcast %cst_50 : f32 to vector<1x64xf32>
    %103 = arith.addf %100, %102 : vector<1x64xf32>
    %104 = math.rsqrt %103 : vector<1x64xf32>
    %105 = arith.mulf %101, %104 : vector<1x64xf32>
    %106 = tpu.concatenate %105, %105, %105, %105 in 1 : vector<1x64xf32>, vector<1x64xf32>, vector<1x64xf32>, vector<1x64xf32> -> vector<1x256xf32>
    %107 = tpu.concatenate %106, %106, %106, %106 in 1 : vector<1x256xf32>, vector<1x256xf32>, vector<1x256xf32>, vector<1x256xf32> -> vector<1x1024xf32>
    %108 = vector.broadcast %107 : vector<1x1024xf32> to vector<2x1024xf32>
    %109 = arith.mulf %87, %108 : vector<2x1024xf32>
    %c0_51 = arith.constant 0 : index
    %c0_52 = arith.constant 0 : index
    %110 = vector.load %arg6[%c0_51, %c0_52] : memref<1x256xf32, #tpu.memory_space<vmem>>, vector<1x256xf32>
    %111 = tpu.concatenate %110, %110, %110, %110 in 1 : vector<1x256xf32>, vector<1x256xf32>, vector<1x256xf32>, vector<1x256xf32> -> vector<1x1024xf32>
    %112 = vector.broadcast %111 : vector<1x1024xf32> to vector<2x1024xf32>
    %113 = arith.addf %109, %112 : vector<2x1024xf32>
    %cst_53 = arith.constant 0.000000e+00 : f32
    %114 = vector.broadcast %cst_53 : f32 to vector<2x1024xf32>
    %115 = arith.cmpf oge, %113, %114 : vector<2x1024xf32>
    %cst_54 = arith.constant 2.000000e-01 : f32
    %116 = vector.broadcast %cst_54 : f32 to vector<2x1024xf32>
    %117 = arith.mulf %116, %113 : vector<2x1024xf32>
    %118 = arith.select %115, %113, %117 : vector<2x1024xi1>, vector<2x1024xf32>
    %119 = arith.truncf %118 : vector<2x1024xf32> to vector<2x1024xbf16>
    %c0_55 = arith.constant 0 : index
    %c0_56 = arith.constant 0 : index
    %120 = vector.load %arg9[%c0_55, %c0_56] : memref<1x256xf32, #tpu.memory_space<vmem>>, vector<1x256xf32>
    %121 = vector.extract_strided_slice %119 {offsets = [0, 0], sizes = [2, 768], strides = [1, 1]} : vector<2x1024xbf16> to vector<2x768xbf16>
    %c256_57 = arith.constant 256 : index
    %c0_58 = arith.constant 0 : index
    %122 = vector.load %arg8[%c256_57, %c0_58] : memref<1024x256xbf16, #tpu.memory_space<vmem>>, vector<768x256xbf16>
    %cst_59 = arith.constant dense<0.000000e+00> : vector<2x256xf32>
    %123 = tpu.matmul %121, %122, %cst_59 {dimension_numbers = #tpu.dot_dimension_numbers<[1], [0], [0], [1], [0, 0, 1, 1], [], []>} : vector<2x768xbf16>, vector<768x256xbf16>, vector<2x256xf32> -> vector<2x256xf32>
    %124 = vector.broadcast %120 : vector<1x256xf32> to vector<2x256xf32>
    %125 = arith.addf %123, %124 : vector<2x256xf32>
    %126 = vector.extract_strided_slice %119 {offsets = [0, 256], sizes = [2, 768], strides = [1, 1]} : vector<2x1024xbf16> to vector<2x768xbf16>
    %c0_60 = arith.constant 0 : index
    %c0_61 = arith.constant 0 : index
    %127 = vector.load %arg8[%c0_60, %c0_61] : memref<1024x256xbf16, #tpu.memory_space<vmem>>, vector<768x256xbf16>
    %cst_62 = arith.constant dense<0.000000e+00> : vector<2x256xf32>
    %128 = tpu.matmul %126, %127, %cst_62 {dimension_numbers = #tpu.dot_dimension_numbers<[1], [0], [0], [1], [0, 0, 1, 1], [], []>} : vector<2x768xbf16>, vector<768x256xbf16>, vector<2x256xf32> -> vector<2x256xf32>
    %129 = vector.broadcast %120 : vector<1x256xf32> to vector<2x256xf32>
    %130 = arith.addf %128, %129 : vector<2x256xf32>
    %131 = tpu.concatenate %125, %130 in 1 : vector<2x256xf32>, vector<2x256xf32> -> vector<2x512xf32>
    %c0_63 = arith.constant 0 : index
    %c0_64 = arith.constant 0 : index
    %132 = vector.load %arg12[%c0_63, %c0_64] : memref<256x128xf32, #tpu.memory_space<vmem>>, vector<256x128xf32>
    %cst_65 = arith.constant dense<0.000000e+00> : vector<512xf32>
    %133 = vector.multi_reduction <add>, %131, %cst_65 [0] : vector<2x512xf32> to vector<512xf32>
    %134 = vector.shape_cast %133 : vector<512xf32> to vector<1x512xf32>
    %135 = vector.extract_strided_slice %134 {offsets = [0, 0], sizes = [1, 256], strides = [1, 1]} : vector<1x512xf32> to vector<1x256xf32>
    %136 = vector.extract_strided_slice %134 {offsets = [0, 256], sizes = [1, 256], strides = [1, 1]} : vector<1x512xf32> to vector<1x256xf32>
    %137 = arith.addf %135, %136 : vector<1x256xf32>
    %cst_66 = arith.constant dense<0.000000e+00> : vector<1x128xf32>
    %138 = tpu.matmul %137, %132, %cst_66 {dimension_numbers = #tpu.dot_dimension_numbers<[1], [0], [0], [1], [0, 0, 1, 1], [], []>} : vector<1x256xf32>, vector<256x128xf32>, vector<1x128xf32> -> vector<1x128xf32>
    %cst_67 = arith.constant 1.250000e-01 : f32
    %139 = vector.broadcast %cst_67 : f32 to vector<1x128xf32>
    %140 = arith.mulf %138, %139 : vector<1x128xf32>
    %141 = tpu.concatenate %140, %140 in 1 : vector<1x128xf32>, vector<1x128xf32> -> vector<1x256xf32>
    %142 = tpu.concatenate %141, %141 in 1 : vector<1x256xf32>, vector<1x256xf32> -> vector<1x512xf32>
    %143 = vector.broadcast %142 : vector<1x512xf32> to vector<2x512xf32>
    %144 = arith.subf %131, %143 : vector<2x512xf32>
    %145 = arith.mulf %144, %144 : vector<2x512xf32>
    %cst_68 = arith.constant dense<0.000000e+00> : vector<512xf32>
    %146 = vector.multi_reduction <add>, %145, %cst_68 [0] : vector<2x512xf32> to vector<512xf32>
    %147 = vector.shape_cast %146 : vector<512xf32> to vector<1x512xf32>
    %148 = vector.extract_strided_slice %147 {offsets = [0, 0], sizes = [1, 256], strides = [1, 1]} : vector<1x512xf32> to vector<1x256xf32>
    %149 = vector.extract_strided_slice %147 {offsets = [0, 256], sizes = [1, 256], strides = [1, 1]} : vector<1x512xf32> to vector<1x256xf32>
    %150 = arith.addf %148, %149 : vector<1x256xf32>
    %cst_69 = arith.constant dense<0.000000e+00> : vector<1x128xf32>
    %151 = tpu.matmul %150, %132, %cst_69 {dimension_numbers = #tpu.dot_dimension_numbers<[1], [0], [0], [1], [0, 0, 1, 1], [], []>} : vector<1x256xf32>, vector<256x128xf32>, vector<1x128xf32> -> vector<1x128xf32>
    %cst_70 = arith.constant 1.250000e-01 : f32
    %152 = vector.broadcast %cst_70 : f32 to vector<1x128xf32>
    %153 = arith.mulf %151, %152 : vector<1x128xf32>
    %c0_71 = arith.constant 0 : index
    %c0_72 = arith.constant 0 : index
    %154 = vector.load %arg10[%c0_71, %c0_72] : memref<1x128xf32, #tpu.memory_space<vmem>>, vector<1x128xf32>
    %cst_73 = arith.constant 9.99999974E-6 : f32
    %155 = vector.broadcast %cst_73 : f32 to vector<1x128xf32>
    %156 = arith.addf %153, %155 : vector<1x128xf32>
    %157 = math.rsqrt %156 : vector<1x128xf32>
    %158 = arith.mulf %154, %157 : vector<1x128xf32>
    %159 = tpu.concatenate %158, %158 in 1 : vector<1x128xf32>, vector<1x128xf32> -> vector<1x256xf32>
    %160 = tpu.concatenate %159, %159 in 1 : vector<1x256xf32>, vector<1x256xf32> -> vector<1x512xf32>
    %161 = vector.broadcast %160 : vector<1x512xf32> to vector<2x512xf32>
    %162 = arith.mulf %144, %161 : vector<2x512xf32>
    %c0_74 = arith.constant 0 : index
    %c0_75 = arith.constant 0 : index
    %163 = vector.load %arg11[%c0_74, %c0_75] : memref<1x256xf32, #tpu.memory_space<vmem>>, vector<1x256xf32>
    %164 = tpu.concatenate %163, %163 in 1 : vector<1x256xf32>, vector<1x256xf32> -> vector<1x512xf32>
    %165 = vector.broadcast %164 : vector<1x512xf32> to vector<2x512xf32>
    %166 = arith.addf %162, %165 : vector<2x512xf32>
    %cst_76 = arith.constant 0.000000e+00 : f32
    %167 = vector.broadcast %cst_76 : f32 to vector<2x512xf32>
    %168 = arith.cmpf oge, %166, %167 : vector<2x512xf32>
    %cst_77 = arith.constant 2.000000e-01 : f32
    %169 = vector.broadcast %cst_77 : f32 to vector<2x512xf32>
    %170 = arith.mulf %169, %166 : vector<2x512xf32>
    %171 = arith.select %168, %166, %170 : vector<2x512xi1>, vector<2x512xf32>
    %172 = arith.truncf %171 : vector<2x512xf32> to vector<2x512xbf16>
    %c0_78 = arith.constant 0 : index
    %c0_79 = arith.constant 0 : index
    %173 = vector.load %arg13[%c0_78, %c0_79] : memref<512x128xbf16, #tpu.memory_space<vmem>>, vector<512x128xbf16>
    %cst_80 = arith.constant dense<0.000000e+00> : vector<2x128xf32>
    %174 = tpu.matmul %172, %173, %cst_80 {dimension_numbers = #tpu.dot_dimension_numbers<[1], [0], [0], [1], [0, 0, 1, 1], [], []>} : vector<2x512xbf16>, vector<512x128xbf16>, vector<2x128xf32> -> vector<2x128xf32>
    %c0_81 = arith.constant 0 : index
    %c0_82 = arith.constant 0 : index
    %175 = vector.load %arg14[%c0_81, %c0_82] : memref<1x128xf32, #tpu.memory_space<vmem>>, vector<1x128xf32>
    %176 = vector.broadcast %175 : vector<1x128xf32> to vector<2x128xf32>
    %177 = arith.addf %174, %176 : vector<2x128xf32>
    %c0_83 = arith.constant 0 : index
    %c0_84 = arith.constant 0 : index
    %178 = vector.load %arg15[%c0_83, %c0_84] : memref<2x128xf32, #tpu.memory_space<vmem>>, vector<2x128xf32>
    tpu.vector_store %arg15[%c0_83, %c0_84], %177 {strides = array<i32>} : memref<2x128xf32, #tpu.memory_space<vmem>>, vector<2x128xf32>,
    return
  }
}

</mosaic_0001>

<bundles_post_ra>
// kernel: encoder_forward.1
= control target key start
LH: loop header
LB: loop body
LE: loop exit
PB: predicated region body
PF: predicated region fallthrough
CT: control target
= control target key end

     0   :  { %20 = vsyncpa [#allocation3], 0  ;;  %s7980_s0 = inlined_call_operand.vmem [shape: bf16[2,256], index: 0, kind: input, shape index: {}]   ;;  %s7981_s1 = inlined_call_operand.vmem [shape: bf16[64,256], index: 1, kind: input, shape index: {}]   ;;  %s7982_s2 = inlined_call_operand.vmem [shape: f32[1,256], index: 2, kind: input, shape index: {}]   ;;  %s7983_s3 = inlined_call_operand.hbm [shape: bf16[1024,256], index: 3, kind: input, shape index: {}]   ;;  %s7984_s4 = inlined_call_operand.vmem [shape: f32[1,256], index: 4, kind: input, shape index: {}]   ;;  %s7985_s5 = inlined_call_operand.vmem [shape: f32[1,64], index: 5, kind: input, shape index: {}]   ;;  %s7986_s6 = inlined_call_operand.vmem [shape: f32[1,256], index: 6, kind: input, shape index: {}]   ;;  %s7987_s7 = inlined_call_operand.vmem [shape: f32[256,64], index: 7, kind: input, shape index: {}]   ;;  %s7988_s8 = inlined_call_operand.hbm [shape: bf16[1024,256], index: 8, kind: input, shape index: {}]   ;;  %s7989_s9 = inlined_call_operand.vmem [shape: f32[1,256], index: 9, kind: input, shape index: {}]   ;;  %s7990_s10 = inlined_call_operand.vmem [shape: f32[1,128], index: 10, kind: input, shape index: {}]   ;;  %s7991_s11 = inlined_call_operand.vmem [shape: f32[1,256], index: 11, kind: input, shape index: {}]   ;;  %s7992_s12 = inlined_call_operand.vmem [shape: f32[256,128], index: 12, kind: input, shape index: {}]   ;;  %s7993_s13 = inlined_call_operand.hbm [shape: bf16[512,128], index: 13, kind: input, shape index: {}]   ;;  %s7994_s14 = inlined_call_operand.vmem [shape: f32[1,128], index: 14, kind: input, shape index: {}]   ;;  %s7995_s15 = inlined_call_operand.hbm [shape: f32[2,128], index: 15, kind: output, shape index: {}]  }
   0x1   :  { %21 = vsyncpa [#allocation6], 0 }
   0x2   :  { %22 = vsyncpa [#allocation4], 0  ;;  %s6359_s18 = smov [#allocation5]   ;;  %s6360_s20 = smov [#allocation2]  }
   0x3   :  { %s54_s19 = sshll.u32 %s6359_s18, 4  ;;  %s34_s21 = sshll.u32 %s6360_s20, 4  ;;  %s55_s19 = int_to_ptr.vmem [resolvable:$true] %s54_s19  ;;  %s35_s21 = int_to_ptr.vmem [resolvable:$true] %s34_s21 }
   0x4   :  { %s6281_s22 = scalar_lea.vmem %s55_s19, 16384  ;;  %p6286_p1 = scmp.lt.s32.totalorder %s55_s19, %s55_s19 }
   0x5   :  { %p6282_p0 = scmp.ne.s32.totalorder %s55_s19, %s6281_s22  ;;  %p6287_p2 = scmp.lt.s32.totalorder %s6281_s22, %s6281_s22 }
   0x7   :  { %p6288_p3 = por %p6287_p2, %p6286_p1 }
   0x9   :  { %p6289_p4 = pnand %p6288_p3, %p6282_p0 }
   0xb   :  { %6292 = shalt.err (!%p6289_p4)
}
   0xc   :  { %s6361_s23 = smov 128   ;;  %s6362_s24 = smov 8  }
   0xd   :  { %60 = dma.hbm_to_vmem [thread:$0]  %s7988_s8, 16384, %s55_s19, [#allocation6], %s6361_s23, %s6361_s23, %s6362_s24  }
   0xe   :  { %s6301_s27 = scalar_lea.vmem %s35_s21, 16384  ;;  %p6306_p6 = scmp.lt.s32.totalorder %s35_s21, %s35_s21 }
   0xf   :  { %p6302_p5 = scmp.ne.s32.totalorder %s35_s21, %s6301_s27  ;;  %p6307_p7 = scmp.lt.s32.totalorder %s6301_s27, %s6301_s27 }
  0x11   :  { %p6308_p8 = por %p6307_p7, %p6306_p6 }
  0x13   :  { %p6309_p9 = pnand %p6308_p8, %p6302_p5 }
  0x15   :  { %6312 = shalt.err (!%p6309_p9)
}
  0x16   :  { %40 = dma.hbm_to_vmem [thread:$0]  %s7983_s3, 16384, %s35_s21, [#allocation3], %s6361_s23, %s6361_s23, %s6362_s24  }
  0x17   :  { %s6363_s30 = smov [#allocation7]  }
  0x18   :  { %s74_s16 = sshll.u32 %s6363_s30, 4  ;;  %s75_s16 = int_to_ptr.vmem [resolvable:$true] %s74_s16 }
  0x19   :  { %s6321_s17 = scalar_lea.vmem %s75_s16, 4096  ;;  %p6326_p11 = scmp.lt.s32.totalorder %s75_s16, %s75_s16 }
  0x1a   :  { %p6322_p10 = scmp.ne.s32.totalorder %s75_s16, %s6321_s17  ;;  %p6327_p12 = scmp.lt.s32.totalorder %s6321_s17, %s6321_s17 }
  0x1c   :  { %p6328_p13 = por %p6327_p12, %p6326_p11 }
  0x1e   :  { %p6329_p0 = pnand %p6328_p13, %p6322_p10 }
  0x20   :  { %6332 = shalt.err (!%p6329_p0)
}
  0x21   :  { %s6364_s8 = smov 64   ;;  %s6365_s18 = smov 4  }
  0x22   :  { %80 = dma.hbm_to_vmem [thread:$0]  %s7993_s13, 4096, %s75_s16, [#allocation6], %s6364_s8, %s6364_s8, %s6365_s18  }
  0x23   :  { %6353 = dma.done.wait [#allocation3], 16384  }
  0x24   :  { %6354 = vsyncadd [#allocation3], 4294950912 }
  0x25   :  { %6355 = dma.done.wait [#allocation6], 20480  }
  0x26   :  { %6356 = vsyncadd [#allocation6], 4294946816  ;;  %v102_v0 = vlaneseq  ;;  %v6366_v1 = vmov 1966171168   ;;  %v6367_v4 = vmov 0   ;;  %s6368_s28 = smov 112  }
  0x27   :  { %v191_v2 = vunpack.c.l.s4 %v6366_v1  ;;  %178 = vmatprep.mubr.bf16.mxu0 %v6367_v4  ;;  %252 = vmatprep.mubr.bf16.mxu1 %v6367_v4  ;;  %v93_v7 = vld [vmem:[%s7980_s0] sm:$0x3]  ;;  %v6475_v9 = vld [vmem:[%s7981_s1 + $0x34] ss:$8 sps:$4 sm:$0xff]   ;;  %v6480_v10 = vld [vmem:[%s7981_s1 + $0x30] ss:$8 sps:$4 sm:$0xff]  }
  0x28   :  { %v6464_v3 = vshrl.u32 %v102_v0, 7  ;;  %v6485_v11 = vld [vmem:[%s7981_s1 + $0x24] ss:$8 sps:$4 sm:$0xff]   ;;  %156 = vmatprep.subr.bf16.mxu0 %v6475_v9  ;;  %228 = vmatprep.subr.bf16.mxu1 %v6475_v9  ;;  %v6493_v14 = vld [vmem:[%s7981_s1 + $0x20] ss:$8 sps:$4 sm:$0xff]   ;;  %s6369_s18 = smov 48  }
  0x29   :  { %v192_v5 = vunpack.c.0.s8 %v191_v2  ;;  %157 = vmatpush1.bf16.msra.mxu0 %v6480_v10  ;;  %229 = vmatpush1.bf16.msra.mxu1 %v6480_v10  ;;  %v6500_v15 = vld [vmem:[%s7981_s1 + $0x14] ss:$8 sps:$4 sm:$0xff]   ;;  %v6505_v16 = vld [vmem:[%s7981_s1 + $0x10] ss:$8 sps:$4 sm:$0xff]   ;;  %v6513_v18 = vld [vmem:[%s7981_s1 + $0x4] ss:$8 sps:$4 sm:$0xff]  }
  0x2a   :  { %158 = vmatprep.subr.bf16.mxu0 %v6485_v11  ;;  %230 = vmatprep.subr.bf16.mxu1 %v6485_v11  ;;  %s6370_s3 = smov 80   ;;  %v6520_v19 = vld [vmem:[%s7981_s1] ss:$8 sps:$4 sm:$0xff]   ;;  %vm142_vm0 = vcmask 392192   ;;  %s6371_s22 = smov 16   ;;  %vm216_vm1 = vcmask 523264  }
  0x2b   :  { %v195_v6 = vsub.s32 %v192_v5, %v6464_v3  ;;  %vm369_vm2 = vcmask 130048   ;;  %v6576_v28 = vld [vmem:[#allocation2 + $0x174] ss:$8 sps:$4 sm:$0xff]   ;;  %v6581_v30 = vld [vmem:[#allocation2 + $0x170] ss:$8 sps:$4 sm:$0xff]   ;;  %s6372_s23 = smov [#allocation8]  }
  0x2c   :  { %v6584_v31 = vld [vmem:[#allocation2 + $0x164] ss:$8 sps:$4 sm:$0xff]   ;;  %v6590_v33 = vld [vmem:[#allocation2 + $0x160] ss:$8 sps:$4 sm:$0xff]   ;;  %v6595_v34 = vld [vmem:[#allocation2 + $0x154] ss:$8 sps:$4 sm:$0xff]  }
  0x2d   :  { %v196_v8 = vrot.slane %v93_v7, %v195_v6  ;;  %159 = vmatpush1.bf16.msra.mxu0 %v6493_v14  ;;  %231 = vmatpush1.bf16.msra.mxu1 %v6493_v14  ;;  %8154 = vst [vmem:[#allocation12_spill] sm:$0xff] %v6595_v34  ;;  %v6598_v35 = vld [vmem:[#allocation2 + $0x274] ss:$8 sps:$4 sm:$0xff]   ;;  %v6602_v36 = vld [vmem:[#allocation2 + $0x150] ss:$8 sps:$4 sm:$0xff]  }
  0x2e   :  { %160 = vmatprep.subr.bf16.mxu0 %v6500_v15  ;;  %232 = vmatprep.subr.bf16.mxu1 %v6500_v15  ;;  %v6605_v37 = vld [vmem:[#allocation2 + $0x144] ss:$8 sps:$4 sm:$0xff]   ;;  %v6610_v38 = vld [vmem:[#allocation2 + $0x270] ss:$8 sps:$4 sm:$0xff]   ;;  %v6616_v40 = vld [vmem:[#allocation2 + $0x140] ss:$8 sps:$4 sm:$0xff]  }
  0x2f   :  { %v203_v12 = vrot.slane %v196_v8, %v195_v6  ;;  %v307_v13 = vcombine.high %v196_v8, %v196_v8  ;;  %v6613_v39 = vld [vmem:[#allocation2 + $0x264] ss:$8 sps:$4 sm:$0xff]   ;;  %8155 = vst [vmem:[#allocation13_spill] sm:$0xff] %v6616_v40  ;;  %v6621_v41 = vld [vmem:[#allocation2 + $0x134] ss:$8 sps:$4 sm:$0xff]  }
  0x30   :  { %8156 = vst [vmem:[#allocation14_spill] sm:$0xff] %v6621_v41  ;;  %v6624_v42 = vld [vmem:[#allocation2 + $0x260] ss:$8 sps:$4 sm:$0xff]   ;;  %v6627_v43 = vld [vmem:[#allocation2 + $0x254] ss:$8 sps:$4 sm:$0xff]  }
  0x31   :  { %204 = vrot.lane.b32.xlu0 %v203_v12, %s6368_s28  ;;  %315 = vrot.lane.b32.xlu1 %v203_v12, %s6369_s18  ;;  %v314_v17 = vrot.slane %v307_v13, %v195_v6  ;;  %v6630_v44 = vld [vmem:[#allocation2 + $0x130] ss:$8 sps:$4 sm:$0xff]   ;;  %v6633_v45 = vld [vmem:[#allocation2 + $0x124] ss:$8 sps:$4 sm:$0xff]   ;;  %v6642_v48 = vld [vmem:[#allocation2 + $0x120] ss:$8 sps:$4 sm:$0xff]  }
  0x32   :  { %161 = vmatpush1.bf16.msra.mxu0 %v6505_v16  ;;  %233 = vmatpush1.bf16.msra.mxu1 %v6505_v16  ;;  %8157 = vst [vmem:[#allocation15_spill] sm:$0xff] %v6630_v44  ;;  %8158 = vst [vmem:[#allocation16_spill] sm:$0xff] %v6633_v45  ;;  %v6636_v46 = vld [vmem:[#allocation2 + $0x250] ss:$8 sps:$4 sm:$0xff]   ;;  %v6639_v47 = vld [vmem:[#allocation2 + $0x244] ss:$8 sps:$4 sm:$0xff]  }
  0x33   :  { %274 = vmatprep.subr.bf16.mxu0 %v6475_v9  ;;  %234 = vmatprep.subr.bf16.mxu1 %v6513_v18  ;;  %8159 = vst [vmem:[#allocation17_spill] sm:$0xff] %v6642_v48  ;;  %v6645_v49 = vld [vmem:[#allocation2 + $0x114] ss:$8 sps:$4 sm:$0xff]   ;;  %v6648_v50 = vld [vmem:[#allocation2 + $0x240] ss:$8 sps:$4 sm:$0xff]   ;;  %v6726_v13 = vsub.s32 0, %v6464_v3 }
  0x34   :  { %8160 = vst [vmem:[#allocation18_spill] sm:$0xff] %v6645_v49  ;;  %8161 = vst [vmem:[#allocation19_spill] sm:$0xff] %v6648_v50  ;;  %v6651_v51 = vld [vmem:[#allocation2 + $0x234] ss:$8 sps:$4 sm:$0xff]   ;;  %v6654_v52 = vld [vmem:[#allocation2 + $0x110] ss:$8 sps:$4 sm:$0xff]  }
  0x35   :  { %261 = vrot.lane.b32.xlu0 %v203_v12, %s6370_s3  ;;  %317 = vrot.lane.b32.xlu1 %v314_v17, %s6369_s18  ;;  %8162 = vst [vmem:[#allocation20_spill] sm:$0xff] %v6651_v51  ;;  %v6657_v53 = vld [vmem:[#allocation2 + $0x104] ss:$8 sps:$4 sm:$0xff]   ;;  %v6660_v54 = vld [vmem:[#allocation2 + $0x230] ss:$8 sps:$4 sm:$0xff]   ;;  %8182 = vst [vmem:[#allocation40_spill] sm:$0xff] %v6726_v13 }
  0x36   :  { %5064 = vmatmul.mubr.msk.bf16.vlgmr.msra.gmra.mxu0 %vm142_vm0, %v93_v7  ;;  %235 = vmatpush1.bf16.msra.mxu1 %v6520_v19  ;;  %8163 = vst [vmem:[#allocation21_spill] sm:$0xff] %v6660_v54  ;;  %v6663_v55 = vld [vmem:[#allocation2 + $0x224] ss:$8 sps:$4 sm:$0xff]   ;;  %v6666_v56 = vld [vmem:[#allocation2 + $0x100] ss:$8 sps:$4 sm:$0xff]  }
  0x37   :  { %275 = vmatpush1.bf16.msra.mxu0 %v6480_v10  ;;  %298 = vmatprep.mubr.bf16.mxu0 %v6367_v4  ;;  %8164 = vst [vmem:[#allocation22_spill] sm:$0xff] %v6663_v55  ;;  %8165 = vst [vmem:[#allocation23_spill] sm:$0xff] %v6666_v56  ;;  %v6669_v57 = vld [vmem:[#allocation2 + $0x1f4] ss:$8 sps:$4 sm:$0xff]   ;;  %v6672_v58 = vld [vmem:[#allocation2 + $0x220] ss:$8 sps:$4 sm:$0xff]  }
  0x38   :  { %276 = vmatprep.subr.bf16.mxu0 %v6485_v11  ;;  %332 = vmatprep.subr.bf16.mxu1 %v6475_v9  ;;  %8166 = vst [vmem:[#allocation24_spill] sm:$0xff] %v6669_v57  ;;  %8167 = vst [vmem:[#allocation25_spill] sm:$0xff] %v6672_v58  ;;  %v6675_v59 = vld [vmem:[#allocation2 + $0x214] ss:$8 sps:$4 sm:$0xff]   ;;  %v6678_v60 = vld [vmem:[#allocation2 + $0x1f0] ss:$8 sps:$4 sm:$0xff]  }
  0x39   :  { %365 = vrot.lane.b32.xlu0 %v203_v12, %s6371_s22  ;;  %367 = vrot.lane.b32.xlu1 %v314_v17, %s6371_s22  ;;  %8168 = vst [vmem:[#allocation26_spill] sm:$0xff] %v6675_v59  ;;  %v6681_v61 = vld [vmem:[#allocation2 + $0x1e4] ss:$8 sps:$4 sm:$0xff]   ;;  %v6684_v62 = vld [vmem:[#allocation2 + $0x210] ss:$8 sps:$4 sm:$0xff]  }
  0x3a   :  { %8169 = vst [vmem:[#allocation27_spill] sm:$0xff] %v6681_v61  ;;  %8170 = vst [vmem:[#allocation28_spill] sm:$0xff] %v6684_v62  ;;  %v6687_v63 = vld [vmem:[#allocation2 + $0x204] ss:$8 sps:$4 sm:$0xff]   ;;  %v6690_v0 = vld [vmem:[#allocation2 + $0x1e0] ss:$8 sps:$4 sm:$0xff]  }
  0x3b   :  { %277 = vmatpush1.bf16.msra.mxu0 %v6493_v14  ;;  %8171 = vst [vmem:[#allocation29_spill] sm:$0xff] %v6687_v63  ;;  %v6693_v1 = vld [vmem:[#allocation2 + $0x1d4] ss:$8 sps:$4 sm:$0xff]   ;;  %v6696_v2 = vld [vmem:[#allocation2 + $0x200] ss:$8 sps:$4 sm:$0xff]  }
  0x3c   :  { %278 = vmatprep.subr.bf16.mxu0 %v6500_v15  ;;  %8172 = vst [vmem:[#allocation30_spill] sm:$0xff] %v6696_v2  ;;  %v6702_v5 = vld [vmem:[#allocation2 + $0x1d0] ss:$8 sps:$4 sm:$0xff]   ;;  %v6705_v6 = vld [vmem:[#allocation2 + $0x1c4] ss:$8 sps:$4 sm:$0xff]  }
  0x3d   :  { %415 = vrot.lane.b32.xlu0 %v314_v17, %s6368_s28  ;;  %461 = vrot.lane.b32.xlu1 %v314_v17, %s6370_s3  ;;  %8174 = vst [vmem:[#allocation32_spill] sm:$0xff] %v6702_v5  ;;  %8175 = vst [vmem:[#allocation33_spill] sm:$0xff] %v6705_v6  ;;  %v6708_v7 = vld [vmem:[#allocation2 + $0x2f0] ss:$8 sps:$4 sm:$0xff]   ;;  %v6711_v8 = vld [vmem:[#allocation2 + $0x2e4] ss:$8 sps:$4 sm:$0xff]  }
  0x3e   :  { %8176 = vst [vmem:[#allocation34_spill] sm:$0xff] %v6708_v7  ;;  %8177 = vst [vmem:[#allocation35_spill] sm:$0xff] %v6711_v8  ;;  %v6723_v12 = vld [vmem:[#allocation2 + $0x2d4] ss:$8 sps:$4 sm:$0xff]   ;;  %v6738_v17 = vld [vmem:[#allocation2 + $0x1a4] ss:$8 sps:$4 sm:$0xff]  }
  0x3f   :  { %279 = vmatpush1.bf16.msra.mxu0 %v6505_v16  ;;  %8181 = vst [vmem:[#allocation39_spill] sm:$0xff] %v6723_v12 }
  0x40   :  { %280 = vmatprep.subr.bf16.mxu0 %v6513_v18 }
  0x43   :  { %281 = vmatpush1.bf16.msra.mxu0 %v6520_v19 }
  0x44   :  { %382 = vmatprep.subr.bf16.mxu0 %v6475_v9 }
  0xa3   :  { %v205_v20 = vpop.permute.xlu0 %204  ;;  %v316_v21 = vpop.permute.xlu1 %315 }
  0xa4   :  { %5067 = vmatmul.mubr.msk.bf16.vlgmr.msra.gmra.mxu1 %vm216_vm1, %v205_v20 }
  0xa5   :  { %333 = vmatpush1.bf16.msra.mxu1 %v6480_v10  ;;  %356 = vmatprep.mubr.bf16.mxu1 %v6367_v4 }
  0xa6   :  { %334 = vmatprep.subr.bf16.mxu1 %v6485_v11 }
  0xa7   :  { %v262_v22 = vpop.permute.xlu0 %261  ;;  %v6548_v23 = vpop.permute.xlu1 %317 }
  0xa8   :  { %5068 = vmatmul.mubr.msk.bf16.vlgmr.msra.gmra.mxu0 %vm216_vm1, %v262_v22  ;;  %v320_v24 = vsel %vm142_vm0, %v316_v21, %v6548_v23  ;;  %v6750_v21 = vld [vmem:[#allocation2 + $0x1a0] ss:$8 sps:$4 sm:$0xff]   ;;  %v6756_v22 = vld [vmem:[#allocation2 + $0x194] ss:$8 sps:$4 sm:$0xff]  }
  0xa9   :  { %383 = vmatpush1.bf16.msra.mxu0 %v6480_v10  ;;  %406 = vmatprep.mubr.bf16.mxu0 %v6367_v4  ;;  %8187 = vst [vmem:[#allocation45_spill] sm:$0xff] %v6750_v21 }
  0xaa   :  { %384 = vmatprep.subr.bf16.mxu0 %v6485_v11  ;;  %335 = vmatpush1.bf16.msra.mxu1 %v6493_v14 }
  0xab   :  { %336 = vmatprep.subr.bf16.mxu1 %v6500_v15  ;;  %v368_v25 = vpop.permute.xlu1 %367  ;;  %v366_v26 = vpop.permute.xlu0 %365 }
  0xac   :  { %v370_v27 = vsel %vm369_vm2, %v366_v26, %v368_v25  ;;  %v6762_v25 = vld [vmem:[#allocation2 + $0x2b4] ss:$8 sps:$4 sm:$0xff]  }
  0xad   :  { %385 = vmatpush1.bf16.msra.mxu0 %v6493_v14  ;;  %8189 = vst [vmem:[#allocation47_spill] sm:$0xff] %v6762_v25 }
  0xae   :  { %386 = vmatprep.subr.bf16.mxu0 %v6500_v15  ;;  %337 = vmatpush1.bf16.msra.mxu1 %v6505_v16 }
  0xaf   :  { %338 = vmatprep.subr.bf16.mxu1 %v6513_v18  ;;  %v416_v29 = vpop.permute.xlu0 %415  ;;  %v462_v32 = vpop.permute.xlu1 %461 }
  0xb1   :  { %387 = vmatpush1.bf16.msra.mxu0 %v6505_v16 }
  0xb2   :  { %388 = vmatprep.subr.bf16.mxu0 %v6513_v18  ;;  %339 = vmatpush1.bf16.msra.mxu1 %v6520_v19 }
  0xb3   :  { %428 = vmatprep.subr.bf16.mxu1 %v6475_v9 }
  0xb5   :  { %389 = vmatpush1.bf16.msra.mxu0 %v6520_v19  ;;  %5069 = vmatmul.mubr.msk.bf16.vlgmr.msra.gmra.mxu1 %vm216_vm1, %v320_v24 }
  0xb6   :  { %474 = vmatprep.subr.bf16.mxu0 %v6475_v9  ;;  %429 = vmatpush1.bf16.msra.mxu1 %v6480_v10  ;;  %v6714_v9 = vld [vmem:[#allocation2 + $0x1c0] ss:$8 sps:$4 sm:$0xff]  }
  0xb7   :  { %430 = vmatprep.subr.bf16.mxu1 %v6485_v11  ;;  %452 = vmatprep.mubr.bf16.mxu1 %v6367_v4  ;;  %8178 = vst [vmem:[#allocation36_spill] sm:$0xff] %v6714_v9 }
  0xb8   :  { %5070 = vmatmul.mubr.msk.bf16.vlgmr.msra.gmra.mxu0 %vm216_vm1, %v370_v27 }
  0xb9   :  { %475 = vmatpush1.bf16.msra.mxu0 %v6480_v10  ;;  %498 = vmatprep.mubr.bf16.mxu0 %v6367_v4  ;;  %v6717_v10 = vld [vmem:[#allocation2 + $0x1b4] ss:$8 sps:$4 sm:$0xff]  }
  0xba   :  { %476 = vmatprep.subr.bf16.mxu0 %v6485_v11  ;;  %431 = vmatpush1.bf16.msra.mxu1 %v6493_v14  ;;  %8179 = vst [vmem:[#allocation37_spill] sm:$0xff] %v6717_v10 }
  0xbb   :  { %432 = vmatprep.subr.bf16.mxu1 %v6500_v15 }
  0xbd   :  { %477 = vmatpush1.bf16.msra.mxu0 %v6493_v14 }
  0xbe   :  { %478 = vmatprep.subr.bf16.mxu0 %v6500_v15  ;;  %433 = vmatpush1.bf16.msra.mxu1 %v6505_v16 }
  0xbf   :  { %434 = vmatprep.subr.bf16.mxu1 %v6513_v18 }
  0xc1   :  { %479 = vmatpush1.bf16.msra.mxu0 %v6505_v16 }
  0xc2   :  { %480 = vmatprep.subr.bf16.mxu0 %v6513_v18  ;;  %435 = vmatpush1.bf16.msra.mxu1 %v6520_v19 }
  0xc3   :  { %556 = vmatprep.subr.bf16.mxu1 %v6485_v11  ;;  %v6720_v11 = vld [vmem:[#allocation2 + $0x2e0] ss:$8 sps:$4 sm:$0xff]  }
  0xc4   :  { %8180 = vst [vmem:[#allocation38_spill] sm:$0xff] %v6720_v11 }
  0xc5   :  { %481 = vmatpush1.bf16.msra.mxu0 %v6520_v19  ;;  %5071 = vmatmul.mubr.msk.bf16.vlgmr.msra.gmra.mxu1 %vm216_vm1, %v416_v29  ;;  %v6766_v29 = vld [vmem:[#allocation2 + $0x190] ss:$8 sps:$4 sm:$0xff]  }
  0xc6   :  { %1239 = vmatprep.subr.bf16.mxu0 %v6576_v28  ;;  %557 = vmatpush1.bf16.msra.mxu1 %v6493_v14  ;;  %v6729_v14 = vld [vmem:[#allocation2 + $0x1b0] ss:$8 sps:$4 sm:$0xff]  }
  0xc7   :  { %558 = vmatprep.subr.bf16.mxu1 %v6500_v15  ;;  %578 = vmatprep.mubr.bf16.mxu1 %v6367_v4  ;;  %v6699_v4 = vld [vmem:[#allocation2 + $0x2f4] ss:$8 sps:$4 sm:$0xff]   ;;  %8183 = vst [vmem:[#allocation41_spill] sm:$0xff] %v6729_v14  ;;  %v94_v15 = vld [vmem:[%s7982_s2] sm:$0x3]  ;;  %s5048_s2 = sshll.u32 %s6372_s23, 4  ;;  %s5049_s2 = int_to_ptr.vmem [resolvable:$true] %s5048_s2 }
  0xc8   :  { %5072 = vmatmul.mubr.msk.bf16.vlgmr.msra.gmra.mxu0 %vm216_vm1, %v462_v32  ;;  %8173 = vst [vmem:[#allocation31_spill] sm:$0xff] %v6699_v4  ;;  %v6747_v20 = vrot.slane %v94_v15, %v6726_v13  ;;  %v6768_v32 = vld [vmem:[#allocation2 + $0x184] ss:$8 sps:$4 sm:$0xff]   ;;  %v6773_v13 = vld [vmem:[#allocation2 + $0x2b0] ss:$8 sps:$4 sm:$0xff]   ;;  %s6333_s24 = scalar_lea.vmem %s5049_s2, 32  ;;  %p6338_p2 = scmp.lt.s32.totalorder %s5049_s2, %s5049_s2 }
  0xc9   :  { %1240 = vmatpush1.bf16.msra.mxu0 %v6581_v30  ;;  %8190 = vst [vmem:[#allocation48_spill] sm:$0xff] %v6773_v13  ;;  %p6334_p1 = scmp.ne.s32.totalorder %s5049_s2, %s6333_s24  ;;  %p6339_p3 = scmp.lt.s32.totalorder %s6333_s24, %s6333_s24 }
  0xca   :  { %1241 = vmatprep.subr.bf16.mxu0 %v6584_v31  ;;  %559 = vmatpush1.bf16.msra.mxu1 %v6505_v16  ;;  %v6735_v16 = vsub.s32 1, %v6464_v3 }
  0xcb   :  { %560 = vmatprep.subr.bf16.mxu1 %v6513_v18  ;;  %v6741_v18 = vld [vmem:[#allocation2 + $0x2d0] ss:$8 sps:$4 sm:$0xff]   ;;  %p6340_p4 = por %p6339_p3, %p6338_p2 }
  0xcc   :  { %8184 = vst [vmem:[#allocation42_spill] sm:$0xff] %v6735_v16  ;;  %8185 = vst [vmem:[#allocation43_spill] sm:$0xff] %v6741_v18  ;;  %v6754_v3 = vrot.slane %v94_v15, %v6735_v16 }
  0xcd   :  { %1242 = vmatpush1.bf16.msra.mxu0 %v6590_v33  ;;  %p6341_p5 = pnand %p6340_p4, %p6334_p1 }
  0xce   :  { %1243 = vmatprep.subr.bf16.mxu0 %v6595_v34  ;;  %561 = vmatpush1.bf16.msra.mxu1 %v6520_v19  ;;  %v6744_v19 = vld [vmem:[#allocation2 + $0x2c4] ss:$8 sps:$4 sm:$0xff]  }
  0xcf   :  { %1280 = vmatprep.subr.bf16.mxu1 %v6598_v35  ;;  %8186 = vst [vmem:[#allocation44_spill] sm:$0xff] %v6744_v19 }
  0xd1   :  { %1244 = vmatpush1.bf16.msra.mxu0 %v6602_v36  ;;  %5079 = vmatmul.mubr.msk.bf16.vlgmr.msra.gmra.mxu1 %vm142_vm0, %v6548_v23  ;;  %v6759_v23 = vld [vmem:[#allocation2 + $0x2c0] ss:$8 sps:$4 sm:$0xff]  }
  0xd2   :  { %1245 = vmatprep.subr.bf16.mxu0 %v6605_v37  ;;  %1281 = vmatpush1.bf16.msra.mxu1 %v6610_v38  ;;  %8188 = vst [vmem:[#allocation46_spill] sm:$0xff] %v6759_v23 }
  0xd3   :  { %1282 = vmatprep.subr.bf16.mxu1 %v6613_v39 }
  0xd5   :  { %1246 = vmatpush1.bf16.msra.mxu0 %v6616_v40 }
  0xd6   :  { %1247 = vmatprep.subr.bf16.mxu0 %v6621_v41  ;;  %1283 = vmatpush1.bf16.msra.mxu1 %v6624_v42 }
  0xd7   :  { %1284 = vmatprep.subr.bf16.mxu1 %v6627_v43 }
  0xd9   :  { %1248 = vmatpush1.bf16.msra.mxu0 %v6630_v44 }
  0xda   :  { %1249 = vmatprep.subr.bf16.mxu0 %v6633_v45  ;;  %1285 = vmatpush1.bf16.msra.mxu1 %v6636_v46 }
  0xdb   :  { %1286 = vmatprep.subr.bf16.mxu1 %v6639_v47 }
  0xdd   :  { %1250 = vmatpush1.bf16.msra.mxu0 %v6642_v48 }
  0xde   :  { %1251 = vmatprep.subr.bf16.mxu0 %v6645_v49  ;;  %1287 = vmatpush1.bf16.msra.mxu1 %v6648_v50  ;;  %v6908_v50 = vld [vmem:[#allocation2 + $0x64] ss:$8 sps:$4 sm:$0xff]  }
  0xdf   :  { %1288 = vmatprep.subr.bf16.mxu1 %v6651_v51 }
  0xe1   :  { %1252 = vmatpush1.bf16.msra.mxu0 %v6654_v52 }
  0xe2   :  { %1253 = vmatprep.subr.bf16.mxu0 %v6657_v53  ;;  %1289 = vmatpush1.bf16.msra.mxu1 %v6660_v54 }
  0xe3   :  { %1290 = vmatprep.subr.bf16.mxu1 %v6663_v55 }
  0xe5   :  { %1254 = vmatpush1.bf16.msra.mxu0 %v6666_v56 }
  0xe6   :  { %1255 = vmatprep.subr.bf16.mxu0 %v6669_v57  ;;  %1291 = vmatpush1.bf16.msra.mxu1 %v6672_v58 }
  0xe7   :  { %1292 = vmatprep.subr.bf16.mxu1 %v6675_v59 }
  0xe9   :  { %1256 = vmatpush2.bf16.msra.mxu0 %v6678_v60 }
  0xea   :  { %1257 = vmatprep.subr.bf16.mxu0 %v6681_v61  ;;  %1293 = vmatpush1.bf16.msra.mxu1 %v6684_v62  ;;  %v6850_v62 = vld [vmem:[#allocation2 + $0x3f4] ss:$8 sps:$4 sm:$0xff]  }
  0xeb   :  { %1294 = vmatprep.subr.bf16.mxu1 %v6687_v63  ;;  %v6847_v63 = vld [vmem:[#allocation2 + $0x300] ss:$8 sps:$4 sm:$0xff]   ;;  %8209 = vst [vmem:[#allocation67_spill] sm:$0xff] %v6850_v62 }
  0xec   :  { %8208 = vst [vmem:[#allocation66_spill] sm:$0xff] %v6847_v63 }
  0xed   :  { %1258 = vmatpush2.bf16.msra.mxu0 %v6690_v0 }
  0xee   :  { %1259 = vmatprep.subr.bf16.mxu0 %v6693_v1  ;;  %1295 = vmatpush1.bf16.msra.mxu1 %v6696_v2  ;;  %v6844_v2 = vld [vmem:[#allocation2 + $0x304] ss:$8 sps:$4 sm:$0xff]  }
  0xef   :  { %1296 = vmatprep.subr.bf16.mxu1 %v6699_v4  ;;  %v6841_v4 = vld [vmem:[#allocation2 + $0x310] ss:$8 sps:$4 sm:$0xff]   ;;  %8207 = vst [vmem:[#allocation65_spill] sm:$0xff] %v6844_v2 }
  0xf0   :  { %8206 = vst [vmem:[#allocation64_spill] sm:$0xff] %v6841_v4 }
  0xf1   :  { %1260 = vmatpush2.bf16.msra.mxu0 %v6702_v5 }
  0xf2   :  { %1261 = vmatprep.subr.bf16.mxu0 %v6705_v6  ;;  %1297 = vmatpush2.bf16.msra.mxu1 %v6708_v7  ;;  %v6782_v7 = vld [vmem:[#allocation2 + $0x374] ss:$8 sps:$4 sm:$0xff]  }
  0xf3   :  { %1298 = vmatprep.subr.bf16.mxu1 %v6711_v8 }
  0xf5   :  { %1262 = vmatpush2.bf16.msra.mxu0 %v6714_v9 }
  0xf6   :  { %1263 = vmatprep.subr.bf16.mxu0 %v6717_v10  ;;  %1299 = vmatpush2.bf16.msra.mxu1 %v6720_v11  ;;  %v180_v24 = vpop.f32.mrf.mxu0  ;;  %v6779_v11 = vld [vmem:[#allocation2 + $0x180] ss:$8 sps:$4 sm:$0xff]  }
  0xf7   :  { %1300 = vmatprep.subr.bf16.mxu1 %v6723_v12  ;;  %v181_v26 = vadd.f32 %v180_v24, %v6747_v20 }
  0xf8   :  { %v182_v27 = vpop.f32.mrf.mxu0 }
  0xf9   :  { %1264 = vmatpush2.bf16.msra.mxu0 %v6729_v14  ;;  %vm587_vm3 = vcmp.ge.f32.partialorder %v181_v26, 0.0  ;;  %v603_v15 = vmul.f32 0.2, %v181_v26  ;;  %v183_v16 = vadd.f32 %v182_v27, %v6754_v3 }
  0xfa   :  { %1265 = vmatprep.subr.bf16.mxu0 %v6738_v17  ;;  %1301 = vmatpush2.bf16.msra.mxu1 %v6741_v18  ;;  %v184_v24 = vpop.f32.mrf.mxu0 }
  0xfb   :  { %1302 = vmatprep.subr.bf16.mxu1 %v6744_v19  ;;  %v6776_v19 = vld [vmem:[#allocation2 + $0x2a4] ss:$8 sps:$4 sm:$0xff]   ;;  %vm588_vm4 = vcmp.ge.f32.partialorder %v183_v16, 0.0  ;;  %v604_v18 = vmul.f32 0.2, %v183_v16  ;;  %v619_v12 = vsel %vm587_vm3, %v181_v26, %v603_v15 }
  0xfc   :  { %8191 = vst [vmem:[#allocation49_spill] sm:$0xff] %v6776_v19  ;;  %v185_v8 = vpop.f32.mrf.mxu0  ;;  %v635_v26 = vpack.c.bf16 %v619_v12, %v619_v12  ;;  %v6791_v15 = vld [vmem:[#allocation2 + $0x370] ss:$8 sps:$4 sm:$0xff]   ;;  %v6803_v12 = vld [vmem:[#allocation2 + $0x360] ss:$8 sps:$4 sm:$0xff]  }
  0xfd   :  { %1266 = vmatpush2.bf16.msra.mxu0 %v6750_v21  ;;  %v620_v27 = vsel %vm588_vm4, %v183_v16, %v604_v18  ;;  %v6794_v8 = vld [vmem:[#allocation2 + $0x364] ss:$8 sps:$4 sm:$0xff]   ;;  %v6797_v16 = vld [vmem:[#allocation2 + $0x290] ss:$8 sps:$4 sm:$0xff]   ;;  %vm2613_vm4 = vcmask 1041408  }
  0xfe   :  { %1267 = vmatprep.subr.bf16.mxu0 %v6756_v22  ;;  %1303 = vmatpush2.bf16.msra.mxu1 %v6759_v23  ;;  %v6785_v23 = vld [vmem:[#allocation2 + $0x2a0] ss:$8 sps:$4 sm:$0xff]   ;;  %v636_v24 = vpack.c.bf16 %v620_v27, %v620_v27  ;;  %8194 = vst [vmem:[#allocation52_spill] sm:$0xff] %v6797_v16  ;;  %v6800_v18 = vld [vmem:[#allocation2 + $0x284] ss:$8 sps:$4 sm:$0xff]  }
  0xff   :  { %1304 = vmatprep.subr.bf16.mxu1 %v6762_v25  ;;  %8192 = vst [vmem:[#allocation50_spill] sm:$0xff] %v6785_v23  ;;  %v6788_v25 = vld [vmem:[#allocation2 + $0x294] ss:$8 sps:$4 sm:$0xff]   ;;  %8195 = vst [vmem:[#allocation53_spill] sm:$0xff] %v6800_v18 }
 0x100   :  { %8193 = vst [vmem:[#allocation51_spill] sm:$0xff] %v6788_v25  ;;  %1271 = vmatprep.mubr.bf16.mxu0 %v636_v24  ;;  %v6806_v27 = vld [vmem:[#allocation2 + $0x354] ss:$8 sps:$4 sm:$0xff]   ;;  %v6809_v24 = vld [vmem:[#allocation2 + $0x280] ss:$8 sps:$4 sm:$0xff]  }
 0x101   :  { %1268 = vmatpush2.bf16.msra.mxu0 %v6766_v29  ;;  %8196 = vst [vmem:[#allocation54_spill] sm:$0xff] %v6809_v24 }
 0x102   :  { %1269 = vmatprep.subr.bf16.mxu0 %v6768_v32  ;;  %1305 = vmatpush2.bf16.msra.mxu1 %v6773_v13  ;;  %v6832_v13 = vld [vmem:[#allocation2 + $0x324] ss:$8 sps:$4 sm:$0xff]  }
 0x103   :  { %1306 = vmatprep.subr.bf16.mxu1 %v6776_v19  ;;  %v6829_v19 = vld [vmem:[#allocation2 + $0x330] ss:$8 sps:$4 sm:$0xff]   ;;  %8203 = vst [vmem:[#allocation61_spill] sm:$0xff] %v6832_v13 }
 0x104   :  { %8202 = vst [vmem:[#allocation60_spill] sm:$0xff] %v6829_v19 }
 0x105   :  { %1270 = vmatpush2.bf16.msra.mxu0 %v6779_v11 }
 0x106   :  { %1321 = vmatprep.subr.bf16.mxu0 %v6782_v7  ;;  %1307 = vmatpush2.bf16.msra.mxu1 %v6785_v23  ;;  %v6812_v23 = vld [vmem:[#allocation2 + $0x74] ss:$8 sps:$4 sm:$0xff]  }
 0x107   :  { %1308 = vmatprep.subr.bf16.mxu1 %v6788_v25  ;;  %8197 = vst [vmem:[#allocation55_spill] sm:$0xff] %v6812_v23  ;;  %v6815_v25 = vld [vmem:[#allocation2 + $0x350] ss:$8 sps:$4 sm:$0xff]  }
 0x108   :  { %1272 = vmatmul.mubr.bf16.vlgmr.msra.gmra.mxu0 %v635_v26  ;;  %8198 = vst [vmem:[#allocation56_spill] sm:$0xff] %v6815_v25  ;;  %v6818_v26 = vld [vmem:[#allocation2 + $0x344] ss:$8 sps:$4 sm:$0xff]  }
 0x109   :  { %1322 = vmatpush1.bf16.msra.mxu0 %v6791_v15  ;;  %8199 = vst [vmem:[#allocation57_spill] sm:$0xff] %v6818_v26 }
 0x10a   :  { %1323 = vmatprep.subr.bf16.mxu0 %v6794_v8  ;;  %1309 = vmatpush2.bf16.msra.mxu1 %v6797_v16  ;;  %v6823_v16 = vld [vmem:[#allocation2 + $0x340] ss:$8 sps:$4 sm:$0xff]  }
 0x10b   :  { %1310 = vmatprep.subr.bf16.mxu1 %v6800_v18  ;;  %8200 = vst [vmem:[#allocation58_spill] sm:$0xff] %v6823_v16  ;;  %v6826_v18 = vld [vmem:[#allocation2 + $0x334] ss:$8 sps:$4 sm:$0xff]  }
 0x10c   :  { %8201 = vst [vmem:[#allocation59_spill] sm:$0xff] %v6826_v18 }
 0x10d   :  { %1324 = vmatpush1.bf16.msra.mxu0 %v6803_v12 }
 0x10e   :  { %1325 = vmatprep.subr.bf16.mxu0 %v6806_v27  ;;  %1311 = vmatpush2.bf16.msra.mxu1 %v6809_v24  ;;  %v6835_v24 = vld [vmem:[#allocation2 + $0x320] ss:$8 sps:$4 sm:$0xff]  }
 0x10f   :  { %1554 = vmatprep.subr.bf16.mxu1 %v6812_v23  ;;  %8204 = vst [vmem:[#allocation62_spill] sm:$0xff] %v6835_v24  ;;  %v6838_v23 = vld [vmem:[#allocation2 + $0x314] ss:$8 sps:$4 sm:$0xff]  }
 0x110   :  { %8205 = vst [vmem:[#allocation63_spill] sm:$0xff] %v6838_v23 }
 0x111   :  { %1326 = vmatpush1.bf16.msra.mxu0 %v6815_v25 }
 0x112   :  { %1327 = vmatprep.subr.bf16.mxu0 %v6818_v26  ;;  %v6904_v26 = vld [vmem:[#allocation2 + $0x70] ss:$8 sps:$4 sm:$0xff]  }
 0x115   :  { %1328 = vmatpush1.bf16.msra.mxu0 %v6823_v16 }
 0x116   :  { %1329 = vmatprep.subr.bf16.mxu0 %v6826_v18 }
 0x119   :  { %1330 = vmatpush1.bf16.msra.mxu0 %v6829_v19 }
 0x11a   :  { %1331 = vmatprep.subr.bf16.mxu0 %v6832_v13  ;;  %v6853_v13 = vld [vmem:[#allocation2 + $0x3f0] ss:$8 sps:$4 sm:$0xff]  }
 0x11b   :  { %8210 = vst [vmem:[#allocation68_spill] sm:$0xff] %v6853_v13 }
 0x11d   :  { %1332 = vmatpush1.bf16.msra.mxu0 %v6835_v24  ;;  %v6856_v24 = vld [vmem:[#allocation2 + $0x3e4] ss:$8 sps:$4 sm:$0xff]  }
 0x11e   :  { %1333 = vmatprep.subr.bf16.mxu0 %v6838_v23  ;;  %8211 = vst [vmem:[#allocation69_spill] sm:$0xff] %v6856_v24  ;;  %v6859_v23 = vld [vmem:[#allocation2 + $0x3e0] ss:$8 sps:$4 sm:$0xff]  }
 0x11f   :  { %8212 = vst [vmem:[#allocation70_spill] sm:$0xff] %v6859_v23 }
 0x121   :  { %1334 = vmatpush1.bf16.msra.mxu0 %v6841_v4  ;;  %v6862_v4 = vld [vmem:[#allocation2 + $0x3d4] ss:$8 sps:$4 sm:$0xff]  }
 0x122   :  { %1335 = vmatprep.subr.bf16.mxu0 %v6844_v2  ;;  %8213 = vst [vmem:[#allocation71_spill] sm:$0xff] %v6862_v4  ;;  %v6865_v2 = vld [vmem:[#allocation2 + $0x3d0] ss:$8 sps:$4 sm:$0xff]  }
 0x123   :  { %8214 = vst [vmem:[#allocation72_spill] sm:$0xff] %v6865_v2 }
 0x125   :  { %1336 = vmatpush1.bf16.msra.mxu0 %v6847_v63  ;;  %v6868_v63 = vld [vmem:[#allocation2 + $0x3c4] ss:$8 sps:$4 sm:$0xff]  }
 0x126   :  { %1337 = vmatprep.subr.bf16.mxu0 %v6850_v62  ;;  %8215 = vst [vmem:[#allocation73_spill] sm:$0xff] %v6868_v63  ;;  %v6871_v62 = vld [vmem:[#allocation2 + $0x3c0] ss:$8 sps:$4 sm:$0xff]  }
 0x127   :  { %8216 = vst [vmem:[#allocation74_spill] sm:$0xff] %v6871_v62 }
 0x129   :  { %1338 = vmatpush2.bf16.msra.mxu0 %v6853_v13  ;;  %v6874_v13 = vld [vmem:[#allocation2 + $0x3b4] ss:$8 sps:$4 sm:$0xff]  }
 0x12a   :  { %1339 = vmatprep.subr.bf16.mxu0 %v6856_v24  ;;  %8217 = vst [vmem:[#allocation75_spill] sm:$0xff] %v6874_v13  ;;  %v6877_v24 = vld [vmem:[#allocation2 + $0x3b0] ss:$8 sps:$4 sm:$0xff]  }
 0x12b   :  { %8218 = vst [vmem:[#allocation76_spill] sm:$0xff] %v6877_v24 }
 0x12d   :  { %1340 = vmatpush2.bf16.msra.mxu0 %v6859_v23  ;;  %v6880_v23 = vld [vmem:[#allocation2 + $0x3a4] ss:$8 sps:$4 sm:$0xff]  }
 0x12e   :  { %1341 = vmatprep.subr.bf16.mxu0 %v6862_v4  ;;  %8219 = vst [vmem:[#allocation77_spill] sm:$0xff] %v6880_v23  ;;  %v6883_v4 = vld [vmem:[#allocation2 + $0x3a0] ss:$8 sps:$4 sm:$0xff]  }
 0x12f   :  { %8220 = vst [vmem:[#allocation78_spill] sm:$0xff] %v6883_v4 }
 0x131   :  { %1342 = vmatpush2.bf16.msra.mxu0 %v6865_v2  ;;  %v6886_v2 = vld [vmem:[#allocation2 + $0x394] ss:$8 sps:$4 sm:$0xff]  }
 0x132   :  { %1343 = vmatprep.subr.bf16.mxu0 %v6868_v63  ;;  %8221 = vst [vmem:[#allocation79_spill] sm:$0xff] %v6886_v2  ;;  %v6889_v63 = vld [vmem:[#allocation2 + $0x390] ss:$8 sps:$4 sm:$0xff]  }
 0x133   :  { %8222 = vst [vmem:[#allocation80_spill] sm:$0xff] %v6889_v63 }
 0x135   :  { %1344 = vmatpush2.bf16.msra.mxu0 %v6871_v62  ;;  %v6892_v62 = vld [vmem:[#allocation2 + $0x384] ss:$8 sps:$4 sm:$0xff]  }
 0x136   :  { %1345 = vmatprep.subr.bf16.mxu0 %v6874_v13  ;;  %8223 = vst [vmem:[#allocation81_spill] sm:$0xff] %v6892_v62  ;;  %v6895_v13 = vld [vmem:[#allocation2 + $0x380] ss:$8 sps:$4 sm:$0xff]  }
 0x137   :  { %8224 = vst [vmem:[#allocation82_spill] sm:$0xff] %v6895_v13 }
 0x139   :  { %1346 = vmatpush2.bf16.msra.mxu0 %v6877_v24 }
 0x13a   :  { %1347 = vmatprep.subr.bf16.mxu0 %v6880_v23 }
 0x13d   :  { %1348 = vmatpush2.bf16.msra.mxu0 %v6883_v4 }
 0x13e   :  { %1349 = vmatprep.subr.bf16.mxu0 %v6886_v2 }
 0x141   :  { %1350 = vmatpush2.bf16.msra.mxu0 %v6889_v63 }
 0x142   :  { %1351 = vmatprep.subr.bf16.mxu0 %v6892_v62 }
 0x145   :  { %1352 = vmatpush2.bf16.msra.mxu0 %v6895_v13 }
 0x146   :  { %1595 = vmatprep.subr.bf16.mxu0 %v6576_v28 }
 0x164   :  { %v254_v23 = vpop.f32.mrf.mxu1 }
 0x165   :  { %v255_v24 = vadd.f32 %v254_v23, %v6747_v20 }
 0x166   :  { %v256_v4 = vpop.f32.mrf.mxu1 }
 0x167   :  { %vm589_vm5 = vcmp.ge.f32.partialorder %v255_v24, 0.0  ;;  %v605_v59 = vmul.f32 0.2, %v255_v24  ;;  %v257_v2 = vadd.f32 %v256_v4, %v6754_v3 }
 0x168   :  { %v258_v19 = vpop.f32.mrf.mxu1  ;;  %v300_v58 = vpop.f32.mrf.mxu0 }
 0x169   :  { %vm590_vm6 = vcmp.ge.f32.partialorder %v257_v2, 0.0  ;;  %v606_v63 = vmul.f32 0.2, %v257_v2  ;;  %v301_v18 = vadd.f32 %v300_v58, %v6747_v20  ;;  %v621_v55 = vsel %vm589_vm5, %v255_v24, %v605_v59 }
 0x16a   :  { %v259_v62 = vpop.f32.mrf.mxu1  ;;  %v302_v16 = vpop.f32.mrf.mxu0  ;;  %v6906_v25 = vpack.c.bf16 %v621_v55, %v621_v55  ;;  %v6922_v55 = vld [vmem:[#allocation2 + $0x50] ss:$8 sps:$4 sm:$0xff]  }
 0x16b   :  { %vm591_vm7 = vcmp.ge.f32.partialorder %v301_v18, 0.0  ;;  %v607_v13 = vmul.f32 0.2, %v301_v18  ;;  %v303_v28 = vadd.f32 %v302_v16, %v6754_v3  ;;  %v622_v54 = vsel %vm590_vm6, %v257_v2, %v606_v63  ;;  %v6914_v63 = vld [vmem:[#allocation2 + $0x60] ss:$8 sps:$4 sm:$0xff]  }
 0x16c   :  { %v638_v23 = vpack.c.bf16 %v622_v54, %v622_v54  ;;  %v304_v51 = vpop.f32.mrf.mxu0  ;;  %v6926_v2 = vld [vmem:[#allocation2 + $0x44] ss:$8 sps:$4 sm:$0xff]  }
 0x16d   :  { %v623_v4 = vsel %vm591_vm7, %v301_v18, %v607_v13  ;;  %vm592_vm8 = vcmp.ge.f32.partialorder %v303_v28, 0.0  ;;  %v608_v19 = vmul.f32 0.2, %v303_v28  ;;  %v6917_v51 = vld [vmem:[#allocation2 + $0x54] ss:$8 sps:$4 sm:$0xff]  }
 0x16e   :  { %1312 = vmatprep.mubr.bf16.mxu1 %v638_v23  ;;  %v305_v58 = vpop.f32.mrf.mxu0  ;;  %v6910_v59 = vpack.c.bf16 %v623_v4, %v623_v4  ;;  %v6934_v18 = vld [vmem:[#allocation2 + $0x40] ss:$8 sps:$4 sm:$0xff]  }
 0x16f   :  { %1313 = vmatmul.mubr.bf16.vlgmr.msra.gmra.mxu1 %v6906_v25  ;;  %v624_v62 = vsel %vm592_vm8, %v303_v28, %v608_v19  ;;  %v6940_v28 = vld [vmem:[#allocation2 + $0x34] ss:$8 sps:$4 sm:$0xff]   ;;  %v6946_v58 = vld [vmem:[#allocation2 + $0x30] ss:$8 sps:$4 sm:$0xff]  }
 0x170   :  { %1555 = vmatpush1.bf16.msra.mxu1 %v6904_v26  ;;  %1586 = vmatprep.mubr.bf16.mxu1 %v638_v23  ;;  %v640_v54 = vpack.c.bf16 %v624_v62, %v624_v62  ;;  %8225 = vst [vmem:[#allocation83_spill] sm:$0xff] %v6946_v58 }
 0x171   :  { %1556 = vmatprep.subr.bf16.mxu1 %v6908_v50 }
 0x172   :  { %1353 = vmatprep.mubr.bf16.mxu0 %v640_v54 }
 0x173   :  { %1354 = vmatmul.mubr.bf16.vlgmr.msra.gmra.mxu0 %v6910_v59 }
 0x174   :  { %1557 = vmatpush1.bf16.msra.mxu1 %v6914_v63  ;;  %1596 = vmatpush1.bf16.msra.mxu0 %v6581_v30 }
 0x175   :  { %1558 = vmatprep.subr.bf16.mxu1 %v6917_v51  ;;  %1597 = vmatprep.subr.bf16.mxu0 %v6584_v31  ;;  %v6928_v13 = vpop.f32.mrf.mxu1 }
 0x176   :  { %1627 = vmatprep.mubr.bf16.mxu0 %v640_v54  ;;  %v6950_v54 = vld [vmem:[#allocation2 + $0x24] ss:$8 sps:$4 sm:$0xff]  }
 0x177   :  { %v6930_v16 = vpop.f32.mrf.mxu1 }
 0x178   :  { %1559 = vmatpush1.bf16.msra.mxu1 %v6922_v55  ;;  %1598 = vmatpush1.bf16.msra.mxu0 %v6590_v33  ;;  %v6936_v24 = vpop.f32.mrf.mxu0 }
 0x179   :  { %1560 = vmatprep.subr.bf16.mxu1 %v6926_v2  ;;  %1599 = vmatprep.subr.bf16.mxu0 %v6595_v34  ;;  %v362_v23 = vpop.f32.mrf.mxu1 }
 0x17a   :  { %v6942_v4 = vpop.f32.mrf.mxu0  ;;  %v6954_v23 = vld [vmem:[#allocation2 + $0x20] ss:$8 sps:$4 sm:$0xff]  }
 0x17b   :  { %v363_v19 = vpop.f32.mrf.mxu1  ;;  %8226 = vst [vmem:[#allocation84_spill] sm:$0xff] %v6954_v23 }
 0x17c   :  { %1561 = vmatpush1.bf16.msra.mxu1 %v6934_v18  ;;  %1600 = vmatpush1.bf16.msra.mxu0 %v6602_v36  ;;  %v412_v62 = vpop.f32.mrf.mxu0  ;;  %v6958_v19 = vld [vmem:[#allocation2 + $0x14] ss:$8 sps:$4 sm:$0xff]  }
 0x17d   :  { %1562 = vmatprep.subr.bf16.mxu1 %v6940_v28  ;;  %1601 = vmatprep.subr.bf16.mxu0 %v6605_v37  ;;  %8227 = vst [vmem:[#allocation85_spill] sm:$0xff] %v6958_v19  ;;  %v6962_v62 = vld [vmem:[#allocation2 + $0x10] ss:$8 sps:$4 sm:$0xff]  }
 0x17e   :  { %v413_v34 = vpop.f32.mrf.mxu0 }
 0x17f   :  { %v6966_v34 = vld [vmem:[#allocation2 + $0x4] ss:$8 sps:$4 sm:$0xff]  }
 0x180   :  { %1563 = vmatpush1.bf16.msra.mxu1 %v6946_v58  ;;  %1602 = vmatpush1.bf16.msra.mxu0 %v6616_v40 }
 0x181   :  { %1564 = vmatprep.subr.bf16.mxu1 %v6950_v54  ;;  %1603 = vmatprep.subr.bf16.mxu0 %v6621_v41  ;;  %v6974_v41 = vld [vmem:[#allocation2] ss:$8 sps:$4 sm:$0xff]  }
 0x184   :  { %1565 = vmatpush1.bf16.msra.mxu1 %v6954_v23  ;;  %1604 = vmatpush1.bf16.msra.mxu0 %v6630_v44 }
 0x185   :  { %1566 = vmatprep.subr.bf16.mxu1 %v6958_v19  ;;  %1605 = vmatprep.subr.bf16.mxu0 %v6633_v45  ;;  %v6968_v40 = vpop.f32.mrf.mxu1  ;;  %v6980_v19 = vld [vmem:[#allocation2 + $0xf4] ss:$8 sps:$4 sm:$0xff]  }
 0x186   :  { %8228 = vst [vmem:[#allocation86_spill] sm:$0xff] %v6968_v40 }
 0x187   :  { %v6970_v58 = vpop.f32.mrf.mxu1 }
 0x188   :  { %8229 = vst [vmem:[#allocation87_spill] sm:$0xff] %v6970_v58  ;;  %1567 = vmatpush1.bf16.msra.mxu1 %v6962_v62  ;;  %1606 = vmatpush1.bf16.msra.mxu0 %v6642_v48  ;;  %v6976_v23 = vpop.f32.mrf.mxu0  ;;  %v6986_v58 = vld [vmem:[#allocation2 + $0xf0] ss:$8 sps:$4 sm:$0xff]  }
 0x189   :  { %8230 = vst [vmem:[#allocation88_spill] sm:$0xff] %v6976_v23  ;;  %1568 = vmatprep.subr.bf16.mxu1 %v6966_v34  ;;  %1607 = vmatprep.subr.bf16.mxu0 %v6645_v49  ;;  %v458_v45 = vpop.f32.mrf.mxu1  ;;  %v6990_v23 = vld [vmem:[#allocation2 + $0xe4] ss:$8 sps:$4 sm:$0xff]  }
 0x18a   :  { %v6982_v44 = vpop.f32.mrf.mxu0  ;;  %8232 = vst [vmem:[#allocation90_spill] sm:$0xff] %v6990_v23  ;;  %v6994_v45 = vld [vmem:[#allocation2 + $0xe0] ss:$8 sps:$4 sm:$0xff]  }
 0x18b   :  { %8231 = vst [vmem:[#allocation89_spill] sm:$0xff] %v6982_v44  ;;  %v459_v40 = vpop.f32.mrf.mxu1 }
 0x18c   :  { %1569 = vmatpush1.bf16.msra.mxu1 %v6974_v41  ;;  %1608 = vmatpush1.bf16.msra.mxu0 %v6654_v52  ;;  %v504_v48 = vpop.f32.mrf.mxu0  ;;  %v6998_v40 = vld [vmem:[#allocation2 + $0xd4] ss:$8 sps:$4 sm:$0xff]  }
 0x18d   :  { %1570 = vmatprep.subr.bf16.mxu1 %v6980_v19  ;;  %1609 = vmatprep.subr.bf16.mxu0 %v6657_v53 }
 0x18e   :  { %v505_v49 = vpop.f32.mrf.mxu0 }
 0x18f   :  { %v7006_v49 = vld [vmem:[#allocation2 + $0xd0] ss:$8 sps:$4 sm:$0xff]  }
 0x190   :  { %1571 = vmatpush2.bf16.msra.mxu1 %v6986_v58  ;;  %1610 = vmatpush1.bf16.msra.mxu0 %v6666_v56  ;;  %v7010_v56 = vld [vmem:[#allocation2 + $0xc4] ss:$8 sps:$4 sm:$0xff]  }
 0x191   :  { %1572 = vmatprep.subr.bf16.mxu1 %v6990_v23  ;;  %1611 = vmatprep.subr.bf16.mxu0 %v6669_v57  ;;  %v7000_v48 = vpop.f32.mrf.mxu1 }
 0x192   :  { %8233 = vst [vmem:[#allocation91_spill] sm:$0xff] %v7000_v48  ;;  %v7014_v48 = vld [vmem:[#allocation2 + $0xc0] ss:$8 sps:$4 sm:$0xff]  }
 0x193   :  { %v7002_v44 = vpop.f32.mrf.mxu1  ;;  %8235 = vst [vmem:[#allocation93_spill] sm:$0xff] %v7014_v48 }
 0x194   :  { %8234 = vst [vmem:[#allocation92_spill] sm:$0xff] %v7002_v44  ;;  %1573 = vmatpush2.bf16.msra.mxu1 %v6994_v45  ;;  %1612 = vmatpush2.bf16.msra.mxu0 %v6678_v60  ;;  %v7018_v44 = vld [vmem:[#allocation2 + $0xb4] ss:$8 sps:$4 sm:$0xff]  }
 0x195   :  { %1574 = vmatprep.subr.bf16.mxu1 %v6998_v40  ;;  %1613 = vmatprep.subr.bf16.mxu0 %v6681_v61  ;;  %v584_v23 = vpop.f32.mrf.mxu1  ;;  %v7022_v61 = vld [vmem:[#allocation2 + $0xb0] ss:$8 sps:$4 sm:$0xff]  }
 0x196   :  { %v7030_v23 = vld [vmem:[#allocation2 + $0xa0] ss:$8 sps:$4 sm:$0xff]  }
 0x197   :  { %v585_v57 = vpop.f32.mrf.mxu1 }
 0x198   :  { %1575 = vmatpush2.bf16.msra.mxu1 %v7006_v49  ;;  %1614 = vmatpush2.bf16.msra.mxu0 %v6690_v0  ;;  %v7026_v57 = vld [vmem:[#allocation2 + $0xa4] ss:$8 sps:$4 sm:$0xff]  }
 0x199   :  { %1576 = vmatprep.subr.bf16.mxu1 %v7010_v56  ;;  %1615 = vmatprep.subr.bf16.mxu0 %v6693_v1  ;;  %8236 = vst [vmem:[#allocation94_spill] sm:$0xff] %v7026_v57 }
 0x19c   :  { %1577 = vmatpush2.bf16.msra.mxu1 %v7014_v48  ;;  %1616 = vmatpush2.bf16.msra.mxu0 %v6702_v5  ;;  %v7034_v48 = vld [vmem:[#allocation2 + $0x94] ss:$8 sps:$4 sm:$0xff]   ;;  %v361_v5 = vadd.f32 %v6930_v16, %v6754_v3  ;;  %v7050_v16 = vld [vmem:[#allocation2 + $0x80] ss:$8 sps:$4 sm:$0xff]  }
 0x19d   :  { %1578 = vmatprep.subr.bf16.mxu1 %v7018_v44  ;;  %1617 = vmatprep.subr.bf16.mxu0 %v6705_v6  ;;  %8237 = vst [vmem:[#allocation95_spill] sm:$0xff] %v7034_v48  ;;  %v7040_v6 = vld [vmem:[#allocation2 + $0x90] ss:$8 sps:$4 sm:$0xff]  }
 0x19e   :  { %vm594_vm9 = vcmp.ge.f32.partialorder %v361_v5, 0.0 }
 0x1a0   :  { %1579 = vmatpush2.bf16.msra.mxu1 %v7022_v61  ;;  %1618 = vmatpush2.bf16.msra.mxu0 %v6714_v9  ;;  %v7044_v9 = vld [vmem:[#allocation2 + $0x84] ss:$8 sps:$4 sm:$0xff]  }
 0x1a1   :  { %1580 = vmatprep.subr.bf16.mxu1 %v7026_v57  ;;  %1619 = vmatprep.subr.bf16.mxu0 %v6717_v10  ;;  %8238 = vst [vmem:[#allocation96_spill] sm:$0xff] %v7044_v9  ;;  %v610_v57 = vmul.f32 0.2, %v361_v5  ;;  %v411_v10 = vadd.f32 %v6942_v4, %v6754_v3 }
 0x1a3   :  { %vm596_vm10 = vcmp.ge.f32.partialorder %v411_v10, 0.0 }
 0x1a4   :  { %1581 = vmatpush2.bf16.msra.mxu1 %v7030_v23  ;;  %1620 = vmatpush2.bf16.msra.mxu0 %v6729_v14  ;;  %v612_v14 = vmul.f32 0.2, %v411_v10 }
 0x1a5   :  { %1582 = vmatprep.subr.bf16.mxu1 %v7034_v48  ;;  %1621 = vmatprep.subr.bf16.mxu0 %v6738_v17  ;;  %v626_v48 = vsel %vm594_vm9, %v361_v5, %v610_v57  ;;  %v8252_v57 = vld [vmem:[#allocation62_spill] sm:$0xff] }
 0x1a6   :  { %v7058_v4 = vpack.c.bf16 %v626_v48, %v626_v48  ;;  %v8251_v48 = vld [vmem:[#allocation28_spill] sm:$0xff] }
 0x1a8   :  { %1583 = vmatpush2.bf16.msra.mxu1 %v7040_v6  ;;  %1622 = vmatpush2.bf16.msra.mxu0 %v6750_v21  ;;  %v628_v21 = vsel %vm596_vm10, %v411_v10, %v612_v14  ;;  %v8244_v10 = vld [vmem:[#allocation58_spill] sm:$0xff] }
 0x1a9   :  { %1584 = vmatprep.subr.bf16.mxu1 %v7044_v9  ;;  %1623 = vmatprep.subr.bf16.mxu0 %v6756_v22  ;;  %v7066_v5 = vpack.c.bf16 %v628_v21, %v628_v21  ;;  %v8245_v14 = vld [vmem:[#allocation22_spill] sm:$0xff]  ;;  %v8247_v21 = vld [vmem:[#allocation25_spill] sm:$0xff] }
 0x1ac   :  { %1585 = vmatpush2.bf16.msra.mxu1 %v7050_v16  ;;  %1624 = vmatpush2.bf16.msra.mxu0 %v6766_v29 }
 0x1ad   :  { %1625 = vmatprep.subr.bf16.mxu0 %v6768_v32  ;;  %1636 = vmatprep.subr.bf16.mxu1 %v6598_v35  ;;  %v8239_v35 = vld [vmem:[#allocation19_spill] sm:$0xff] }
 0x1af   :  { %1587 = vmatmul.mubr.bf16.vlgmr.msra.gmra.mxu1 %v6906_v25  ;;  %v8249_v25 = vld [vmem:[#allocation26_spill] sm:$0xff] }
 0x1b0   :  { %1626 = vmatpush2.bf16.msra.mxu0 %v6779_v11  ;;  %1637 = vmatpush1.bf16.msra.mxu1 %v6610_v38  ;;  %v8240_v38 = vld [vmem:[#allocation56_spill] sm:$0xff] }
 0x1b1   :  { %1638 = vmatprep.subr.bf16.mxu1 %v6613_v39  ;;  %1677 = vmatprep.subr.bf16.mxu0 %v6782_v7  ;;  %v8241_v39 = vld [vmem:[#allocation20_spill] sm:$0xff] }
 0x1b2   :  { %1668 = vmatprep.mubr.bf16.mxu1 %v7058_v4 }
 0x1b3   :  { %1628 = vmatmul.mubr.bf16.vlgmr.msra.gmra.mxu0 %v6910_v59  ;;  %v8250_v59 = vld [vmem:[#allocation61_spill] sm:$0xff] }
 0x1b4   :  { %1639 = vmatpush1.bf16.msra.mxu1 %v6624_v42  ;;  %1678 = vmatpush1.bf16.msra.mxu0 %v6791_v15  ;;  %v8242_v42 = vld [vmem:[#allocation57_spill] sm:$0xff] }
 0x1b5   :  { %1640 = vmatprep.subr.bf16.mxu1 %v6627_v43  ;;  %1679 = vmatprep.subr.bf16.mxu0 %v6794_v8  ;;  %v8243_v43 = vld [vmem:[#allocation21_spill] sm:$0xff] }
 0x1b6   :  { %1709 = vmatprep.mubr.bf16.mxu0 %v7066_v5 }
 0x1b8   :  { %1641 = vmatpush1.bf16.msra.mxu1 %v6636_v46  ;;  %1680 = vmatpush1.bf16.msra.mxu0 %v6803_v12  ;;  %v8246_v46 = vld [vmem:[#allocation59_spill] sm:$0xff] }
 0x1b9   :  { %1642 = vmatprep.subr.bf16.mxu1 %v6639_v47  ;;  %1681 = vmatprep.subr.bf16.mxu0 %v6806_v27  ;;  %v8248_v47 = vld [vmem:[#allocation60_spill] sm:$0xff] }
 0x1bc   :  { %1643 = vmatpush1.bf16.msra.mxu1 %v8239_v35  ;;  %1682 = vmatpush1.bf16.msra.mxu0 %v8240_v38  ;;  %v8264_v38 = vld [vmem:[#allocation68_spill] sm:$0xff] }
 0x1bd   :  { %1644 = vmatprep.subr.bf16.mxu1 %v8241_v39  ;;  %1683 = vmatprep.subr.bf16.mxu0 %v8242_v42  ;;  %v8253_v39 = vld [vmem:[#allocation29_spill] sm:$0xff]  ;;  %v8261_v42 = vld [vmem:[#allocation35_spill] sm:$0xff] }
 0x1c0   :  { %1645 = vmatpush1.bf16.msra.mxu1 %v8243_v43  ;;  %1684 = vmatpush1.bf16.msra.mxu0 %v8244_v10  ;;  %v8254_v43 = vld [vmem:[#allocation63_spill] sm:$0xff]  ;;  %v8259_v10 = vld [vmem:[#allocation34_spill] sm:$0xff] }
 0x1c1   :  { %1646 = vmatprep.subr.bf16.mxu1 %v8245_v14  ;;  %1685 = vmatprep.subr.bf16.mxu0 %v8246_v46  ;;  %v8255_v46 = vld [vmem:[#allocation30_spill] sm:$0xff] }
 0x1c4   :  { %1647 = vmatpush1.bf16.msra.mxu1 %v8247_v21  ;;  %1686 = vmatpush1.bf16.msra.mxu0 %v8248_v47  ;;  %v8256_v21 = vld [vmem:[#allocation64_spill] sm:$0xff] }
 0x1c5   :  { %1648 = vmatprep.subr.bf16.mxu1 %v8249_v25  ;;  %1687 = vmatprep.subr.bf16.mxu0 %v8250_v59  ;;  %v8257_v25 = vld [vmem:[#allocation31_spill] sm:$0xff]  ;;  %v8258_v59 = vld [vmem:[#allocation65_spill] sm:$0xff] }
 0x1c8   :  { %1649 = vmatpush1.bf16.msra.mxu1 %v8251_v48  ;;  %1688 = vmatpush1.bf16.msra.mxu0 %v8252_v57  ;;  %v7092_v35 = vpop.f32.mrf.mxu0  ;;  %v8260_v57 = vld [vmem:[#allocation66_spill] sm:$0xff] }
 0x1c9   :  { %1650 = vmatprep.subr.bf16.mxu1 %v8253_v39  ;;  %1689 = vmatprep.subr.bf16.mxu0 %v8254_v43  ;;  %v8262_v39 = vld [vmem:[#allocation67_spill] sm:$0xff]  ;;  %v8263_v43 = vld [vmem:[#allocation38_spill] sm:$0xff] }
 0x1ca   :  { %v7096_v14 = vpop.f32.mrf.mxu0 }
 0x1cc   :  { %1651 = vmatpush1.bf16.msra.mxu1 %v8255_v46  ;;  %1690 = vmatpush1.bf16.msra.mxu0 %v8256_v21  ;;  %v1277_v47 = vpop.f32.mrf.mxu0  ;;  %v8265_v46 = vld [vmem:[#allocation39_spill] sm:$0xff]  ;;  %v8289_v21 = vld [vmem:[#allocation81_spill] sm:$0xff] }
 0x1cd   :  { %1652 = vmatprep.subr.bf16.mxu1 %v8257_v25  ;;  %1691 = vmatprep.subr.bf16.mxu0 %v8258_v59  ;;  %v8266_v47 = vld [vmem:[#allocation69_spill] sm:$0xff]  ;;  %v8267_v25 = vld [vmem:[#allocation43_spill] sm:$0xff]  ;;  %v8268_v59 = vld [vmem:[#allocation70_spill] sm:$0xff] }
 0x1ce   :  { %v1278_v48 = vpop.f32.mrf.mxu0 }
 0x1cf   :  { %v8269_v48 = vld [vmem:[#allocation44_spill] sm:$0xff] }
 0x1d0   :  { %1653 = vmatpush2.bf16.msra.mxu1 %v8259_v10  ;;  %1692 = vmatpush1.bf16.msra.mxu0 %v8260_v57  ;;  %v8270_v10 = vld [vmem:[#allocation71_spill] sm:$0xff]  ;;  %v8271_v57 = vld [vmem:[#allocation46_spill] sm:$0xff] }
 0x1d1   :  { %1654 = vmatprep.subr.bf16.mxu1 %v8261_v42  ;;  %1693 = vmatprep.subr.bf16.mxu0 %v8262_v39  ;;  %v8272_v42 = vld [vmem:[#allocation72_spill] sm:$0xff]  ;;  %v8273_v39 = vld [vmem:[#allocation47_spill] sm:$0xff] }
 0x1d4   :  { %1655 = vmatpush2.bf16.msra.mxu1 %v8263_v43  ;;  %1694 = vmatpush2.bf16.msra.mxu0 %v8264_v38  ;;  %v8274_v43 = vld [vmem:[#allocation73_spill] sm:$0xff]  ;;  %v8275_v38 = vld [vmem:[#allocation48_spill] sm:$0xff] }
 0x1d5   :  { %1656 = vmatprep.subr.bf16.mxu1 %v8265_v46  ;;  %1695 = vmatprep.subr.bf16.mxu0 %v8266_v47  ;;  %v8276_v46 = vld [vmem:[#allocation74_spill] sm:$0xff]  ;;  %v8277_v47 = vld [vmem:[#allocation49_spill] sm:$0xff] }
 0x1d8   :  { %1657 = vmatpush2.bf16.msra.mxu1 %v8267_v25  ;;  %1696 = vmatpush2.bf16.msra.mxu0 %v8268_v59  ;;  %v8278_v25 = vld [vmem:[#allocation75_spill] sm:$0xff] }
 0x1d9   :  { %1658 = vmatprep.subr.bf16.mxu1 %v8269_v48  ;;  %1697 = vmatprep.subr.bf16.mxu0 %v8270_v10  ;;  %v359_v48 = vadd.f32 %v6928_v13, %v6747_v20  ;;  %v8279_v10 = vld [vmem:[#allocation50_spill] sm:$0xff]  ;;  %v8286_v13 = vld [vmem:[#allocation79_spill] sm:$0xff] }
 0x1db   :  { %vm593_vm11 = vcmp.ge.f32.partialorder %v359_v48, 0.0 }
 0x1dc   :  { %1659 = vmatpush2.bf16.msra.mxu1 %v8271_v57  ;;  %1698 = vmatpush2.bf16.msra.mxu0 %v8272_v42  ;;  %v8280_v57 = vld [vmem:[#allocation76_spill] sm:$0xff]  ;;  %v8281_v42 = vld [vmem:[#allocation51_spill] sm:$0xff] }
 0x1dd   :  { %1660 = vmatprep.subr.bf16.mxu1 %v8273_v39  ;;  %1699 = vmatprep.subr.bf16.mxu0 %v8274_v43  ;;  %v8282_v39 = vld [vmem:[#allocation77_spill] sm:$0xff]  ;;  %v609_v43 = vmul.f32 0.2, %v359_v48 }
 0x1e0   :  { %1661 = vmatpush2.bf16.msra.mxu1 %v8275_v38  ;;  %1700 = vmatpush2.bf16.msra.mxu0 %v8276_v46  ;;  %v409_v38 = vadd.f32 %v6936_v24, %v6747_v20  ;;  %v8283_v46 = vld [vmem:[#allocation52_spill] sm:$0xff]  ;;  %v8290_v24 = vld [vmem:[#allocation55_spill] sm:$0xff] }
 0x1e1   :  { %1662 = vmatprep.subr.bf16.mxu1 %v8277_v47  ;;  %1701 = vmatprep.subr.bf16.mxu0 %v8278_v25  ;;  %v8284_v47 = vld [vmem:[#allocation78_spill] sm:$0xff]  ;;  %v8285_v25 = vld [vmem:[#allocation53_spill] sm:$0xff] }
 0x1e2   :  { %v611_v59 = vmul.f32 0.2, %v409_v38  ;;  %vm595_vm12 = vcmp.ge.f32.partialorder %v409_v38, 0.0 }
 0x1e4   :  { %1663 = vmatpush2.bf16.msra.mxu1 %v8279_v10  ;;  %1702 = vmatpush2.bf16.msra.mxu0 %v8280_v57  ;;  %v625_v10 = vsel %vm593_vm11, %v359_v48, %v609_v43  ;;  %v8287_v57 = vld [vmem:[#allocation54_spill] sm:$0xff] }
 0x1e5   :  { %1664 = vmatprep.subr.bf16.mxu1 %v8281_v42  ;;  %1703 = vmatprep.subr.bf16.mxu0 %v8282_v39  ;;  %v8288_v42 = vld [vmem:[#allocation80_spill] sm:$0xff]  ;;  %v7136_v39 = vpack.c.bf16 %v625_v10, %v625_v10  ;;  %v6255_v48 = vld [vmem:[#allocation2 + $0x174] ss:$8 sps:$4 sm:$0xff]   ;;  %v8298_v10 = vld [vmem:[#allocation85_spill] sm:$0xff] }
 0x1e8   :  { %1665 = vmatpush2.bf16.msra.mxu1 %v8283_v46  ;;  %1704 = vmatpush2.bf16.msra.mxu0 %v8284_v47  ;;  %v627_v46 = vsel %vm595_vm12, %v409_v38, %v611_v59  ;;  %v8291_v47 = vld [vmem:[#allocation82_spill] sm:$0xff]  ;;  %v8297_v38 = vld [vmem:[#allocation15_spill] sm:$0xff]  ;;  %v8299_v59 = vld [vmem:[#allocation16_spill] sm:$0xff] }
 0x1e9   :  { %1666 = vmatprep.subr.bf16.mxu1 %v8285_v25  ;;  %1705 = vmatprep.subr.bf16.mxu0 %v8286_v13  ;;  %v7143_v43 = vpack.c.bf16 %v627_v46, %v627_v46  ;;  %v8302_v46 = vld [vmem:[#allocation23_spill] sm:$0xff] }
 0x1ec   :  { %1667 = vmatpush2.bf16.msra.mxu1 %v8287_v57  ;;  %1706 = vmatpush2.bf16.msra.mxu0 %v8288_v42 }
 0x1ed   :  { %1707 = vmatprep.subr.bf16.mxu0 %v8289_v21  ;;  %1718 = vmatprep.subr.bf16.mxu1 %v8290_v24 }
 0x1ef   :  { %1669 = vmatmul.mubr.bf16.vlgmr.msra.gmra.mxu1 %v7136_v39 }
 0x1f0   :  { %1708 = vmatpush2.bf16.msra.mxu0 %v8291_v47  ;;  %1719 = vmatpush1.bf16.msra.mxu1 %v6904_v26 }
 0x1f1   :  { %1750 = vmatprep.mubr.bf16.mxu1 %v7058_v4  ;;  %1720 = vmatprep.subr.bf16.mxu1 %v6908_v50  ;;  %v8292_v4 = vld [vmem:[#allocation12_spill] sm:$0xff] }
 0x1f2   :  { %1759 = vmatprep.subr.bf16.mxu0 %v6255_v48  ;;  %v8303_v48 = vld [vmem:[#allocation90_spill] sm:$0xff] }
 0x1f3   :  { %1710 = vmatmul.mubr.bf16.vlgmr.msra.gmra.mxu0 %v7143_v43 }
 0x1f4   :  { %1721 = vmatpush1.bf16.msra.mxu1 %v6914_v63  ;;  %1760 = vmatpush1.bf16.msra.mxu0 %v6581_v30  ;;  %v8293_v30 = vld [vmem:[#allocation83_spill] sm:$0xff] }
 0x1f5   :  { %1791 = vmatprep.mubr.bf16.mxu0 %v7066_v5  ;;  %1722 = vmatprep.subr.bf16.mxu1 %v6917_v51  ;;  %v8294_v5 = vld [vmem:[#allocation13_spill] sm:$0xff] }
 0x1f6   :  { %1761 = vmatprep.subr.bf16.mxu0 %v6584_v31  ;;  %v8295_v31 = vld [vmem:[#allocation14_spill] sm:$0xff] }
 0x1f8   :  { %1723 = vmatpush1.bf16.msra.mxu1 %v6922_v55  ;;  %1762 = vmatpush1.bf16.msra.mxu0 %v6590_v33  ;;  %v8296_v33 = vld [vmem:[#allocation84_spill] sm:$0xff] }
 0x1f9   :  { %1724 = vmatprep.subr.bf16.mxu1 %v6926_v2  ;;  %1763 = vmatprep.subr.bf16.mxu0 %v8292_v4  ;;  %v8304_v4 = vld [vmem:[#allocation24_spill] sm:$0xff] }
 0x1fc   :  { %1725 = vmatpush1.bf16.msra.mxu1 %v6934_v18  ;;  %1764 = vmatpush1.bf16.msra.mxu0 %v6602_v36  ;;  %v8300_v36 = vld [vmem:[#allocation17_spill] sm:$0xff] }
 0x1fd   :  { %1726 = vmatprep.subr.bf16.mxu1 %v6940_v28  ;;  %1765 = vmatprep.subr.bf16.mxu0 %v6605_v37  ;;  %v8301_v37 = vld [vmem:[#allocation18_spill] sm:$0xff] }
 0x200   :  { %1727 = vmatpush1.bf16.msra.mxu1 %v8293_v30  ;;  %1766 = vmatpush1.bf16.msra.mxu0 %v8294_v5  ;;  %v8305_v5 = vld [vmem:[#allocation27_spill] sm:$0xff] }
 0x201   :  { %1728 = vmatprep.subr.bf16.mxu1 %v6950_v54  ;;  %1767 = vmatprep.subr.bf16.mxu0 %v8295_v31  ;;  %v8308_v31 = vld [vmem:[#allocation33_spill] sm:$0xff] }
 0x204   :  { %1729 = vmatpush1.bf16.msra.mxu1 %v8296_v33  ;;  %1768 = vmatpush1.bf16.msra.mxu0 %v8297_v38  ;;  %v8310_v38 = vld [vmem:[#allocation94_spill] sm:$0xff] }
 0x205   :  { %1730 = vmatprep.subr.bf16.mxu1 %v8298_v10  ;;  %1769 = vmatprep.subr.bf16.mxu0 %v8299_v59  ;;  %v8311_v59 = vld [vmem:[#allocation37_spill] sm:$0xff] }
 0x208   :  { %1731 = vmatpush1.bf16.msra.mxu1 %v6962_v62  ;;  %1770 = vmatpush1.bf16.msra.mxu0 %v8300_v36 }
 0x209   :  { %1732 = vmatprep.subr.bf16.mxu1 %v6966_v34  ;;  %1771 = vmatprep.subr.bf16.mxu0 %v8301_v37  ;;  %v8314_v37 = vld [vmem:[#allocation95_spill] sm:$0xff] }
 0x20c   :  { %1733 = vmatpush1.bf16.msra.mxu1 %v6974_v41  ;;  %1772 = vmatpush1.bf16.msra.mxu0 %v6654_v52  ;;  %v8306_v52 = vld [vmem:[#allocation93_spill] sm:$0xff] }
 0x20d   :  { %1734 = vmatprep.subr.bf16.mxu1 %v6980_v19  ;;  %1773 = vmatprep.subr.bf16.mxu0 %v6657_v53  ;;  %v8307_v53 = vld [vmem:[#allocation32_spill] sm:$0xff] }
 0x210   :  { %1735 = vmatpush2.bf16.msra.mxu1 %v6986_v58  ;;  %1774 = vmatpush1.bf16.msra.mxu0 %v8302_v46  ;;  %v651_v46 = vld [vmem:[%s7984_s4] sm:$0x3] }
 0x211   :  { %1736 = vmatprep.subr.bf16.mxu1 %v8303_v48  ;;  %1775 = vmatprep.subr.bf16.mxu0 %v8304_v4 }
 0x214   :  { %1737 = vmatpush2.bf16.msra.mxu1 %v6994_v45  ;;  %1776 = vmatpush2.bf16.msra.mxu0 %v6678_v60  ;;  %v8309_v60 = vld [vmem:[#allocation36_spill] sm:$0xff] }
 0x215   :  { %1738 = vmatprep.subr.bf16.mxu1 %v6998_v40  ;;  %1777 = vmatprep.subr.bf16.mxu0 %v8305_v5  ;;  %v8315_v5 = vld [vmem:[#allocation89_spill] sm:$0xff] }
 0x218   :  { %1739 = vmatpush2.bf16.msra.mxu1 %v7006_v49  ;;  %1778 = vmatpush2.bf16.msra.mxu0 %v6690_v0  ;;  %v8312_v0 = vld [vmem:[#allocation87_spill] sm:$0xff] }
 0x219   :  { %1740 = vmatprep.subr.bf16.mxu1 %v7010_v56  ;;  %1779 = vmatprep.subr.bf16.mxu0 %v6693_v1  ;;  %v457_v36 = vadd.f32 %v8312_v0, %v6754_v3  ;;  %v8313_v1 = vld [vmem:[#allocation41_spill] sm:$0xff]  ;;  %v8318_v0 = vld [vmem:[#allocation42_spill] sm:$0xff] }
 0x21b   :  { %v614_v4 = vmul.f32 0.2, %v457_v36  ;;  %vm598_vm13 = vcmp.ge.f32.partialorder %v457_v36, 0.0 }
 0x21c   :  { %1741 = vmatpush2.bf16.msra.mxu1 %v8306_v52  ;;  %1780 = vmatpush2.bf16.msra.mxu0 %v8307_v53  ;;  %v503_v53 = vadd.f32 %v8315_v5, %v6754_v3 }
 0x21d   :  { %1742 = vmatprep.subr.bf16.mxu1 %v7018_v44  ;;  %1781 = vmatprep.subr.bf16.mxu0 %v8308_v31  ;;  %v8316_v31 = vld [vmem:[#allocation45_spill] sm:$0xff]  ;;  %v630_v5 = vsel %vm598_vm13, %v457_v36, %v614_v4 }
 0x21e   :  { %vm600_vm14 = vcmp.ge.f32.partialorder %v503_v53, 0.0  ;;  %v6258_v4 = vld [vmem:[#allocation2 + $0x264] ss:$8 sps:$4 sm:$0xff]  }
 0x220   :  { %1743 = vmatpush2.bf16.msra.mxu1 %v7022_v61  ;;  %1782 = vmatpush2.bf16.msra.mxu0 %v8309_v60  ;;  %v8317_v60 = vld [vmem:[#allocation40_spill] sm:$0xff] }
 0x221   :  { %1744 = vmatprep.subr.bf16.mxu1 %v8310_v38  ;;  %1783 = vmatprep.subr.bf16.mxu0 %v8311_v59  ;;  %v7213_v59 = vrot.slane %v651_v46, %v8317_v60 }
 0x224   :  { %1745 = vmatpush2.bf16.msra.mxu1 %v7030_v23  ;;  %1784 = vmatpush2.bf16.msra.mxu0 %v8313_v1  ;;  %v7216_v1 = vrot.slane %v651_v46, %v8318_v0 }
 0x225   :  { %1746 = vmatprep.subr.bf16.mxu1 %v8314_v37  ;;  %1785 = vmatprep.subr.bf16.mxu0 %v6738_v17  ;;  %v616_v17 = vmul.f32 0.2, %v503_v53 }
 0x226   :  { %v1276_v46 = vadd.f32 %v7096_v14, %v7216_v1 }
 0x227   :  { %v632_v36 = vsel %vm600_vm14, %v503_v53, %v616_v17  ;;  %v6260_v17 = vld [vmem:[#allocation2 + $0x254] ss:$8 sps:$4 sm:$0xff]  }
 0x228   :  { %1747 = vmatpush2.bf16.msra.mxu1 %v7040_v6  ;;  %1786 = vmatpush2.bf16.msra.mxu0 %v8316_v31  ;;  %v6256_v31 = vld [vmem:[#allocation2 + $0x274] ss:$8 sps:$4 sm:$0xff]  }
 0x229   :  { %1748 = vmatprep.subr.bf16.mxu1 %v7044_v9  ;;  %1787 = vmatprep.subr.bf16.mxu0 %v6756_v22  ;;  %v1274_v22 = vadd.f32 %v7092_v35, %v7213_v59  ;;  %v7224_v9 = vpack.c.bf16 %v630_v5, %v630_v5 }
 0x22c   :  { %1749 = vmatpush2.bf16.msra.mxu1 %v7050_v16  ;;  %1788 = vmatpush2.bf16.msra.mxu0 %v6766_v29  ;;  %v6257_v29 = vld [vmem:[#allocation2 + $0x270] ss:$8 sps:$4 sm:$0xff]  }
 0x22d   :  { %1789 = vmatprep.subr.bf16.mxu0 %v6768_v32  ;;  %1800 = vmatprep.subr.bf16.mxu1 %v6256_v31  ;;  %v7232_v31 = vpack.c.bf16 %v632_v36, %v632_v36  ;;  %v6264_v36 = vld [vmem:[#allocation2 + $0x234] ss:$8 sps:$4 sm:$0xff]  }
 0x22f   :  { %1751 = vmatmul.mubr.bf16.vlgmr.msra.gmra.mxu1 %v7136_v39  ;;  %v1314_v60 = vpop.f32.mrf.mxu1 }
 0x230   :  { %v1315_v0 = vadd.f32 %v1314_v60, %v1274_v22  ;;  %1790 = vmatpush2.bf16.msra.mxu0 %v6779_v11  ;;  %1801 = vmatpush1.bf16.msra.mxu1 %v6257_v29  ;;  %v6259_v11 = vld [vmem:[#allocation2 + $0x260] ss:$8 sps:$4 sm:$0xff]  }
 0x231   :  { %1832 = vmatprep.mubr.bf16.mxu1 %v7224_v9  ;;  %v1316_v32 = vpop.f32.mrf.mxu1  ;;  %1802 = vmatprep.subr.bf16.mxu1 %v6258_v4  ;;  %v8319_v29 = vld [vmem:[#allocation56_spill] sm:$0xff]  ;;  %v6265_v4 = vld [vmem:[#allocation2 + $0x230] ss:$8 sps:$4 sm:$0xff]  }
 0x232   :  { %v1317_v35 = vadd.f32 %v1316_v32, %v1276_v46  ;;  %1841 = vmatprep.subr.bf16.mxu0 %v6782_v7  ;;  %v6263_v46 = vld [vmem:[#allocation2 + $0x240] ss:$8 sps:$4 sm:$0xff]  }
 0x233   :  { %1792 = vmatmul.mubr.bf16.vlgmr.msra.gmra.mxu0 %v7143_v43  ;;  %v1318_v39 = vpop.f32.mrf.mxu1  ;;  %v1355_v5 = vpop.f32.mrf.mxu0  ;;  %v6261_v43 = vld [vmem:[#allocation2 + $0x250] ss:$8 sps:$4 sm:$0xff]  }
 0x234   :  { %v7234_v14 = vadd.f32 %v1355_v5, %v1315_v0  ;;  %1803 = vmatpush1.bf16.msra.mxu1 %v6259_v11  ;;  %1842 = vmatpush1.bf16.msra.mxu0 %v6791_v15  ;;  %v6262_v0 = vld [vmem:[#allocation2 + $0x244] ss:$8 sps:$4 sm:$0xff]   ;;  %v6267_v39 = vld [vmem:[#allocation2 + $0x220] ss:$8 sps:$4 sm:$0xff]   ;;  %v6268_v5 = vld [vmem:[#allocation2 + $0x214] ss:$8 sps:$4 sm:$0xff]  }
 0x235   :  { %1873 = vmatprep.mubr.bf16.mxu0 %v7232_v31  ;;  %v1319_v53 = vpop.f32.mrf.mxu1  ;;  %v1357_v60 = vpop.f32.mrf.mxu0  ;;  %1804 = vmatprep.subr.bf16.mxu1 %v6260_v17  ;;  %v8320_v32 = vld [vmem:[#allocation57_spill] sm:$0xff] }
 0x236   :  { %v7238_v22 = vadd.f32 %v1357_v60, %v1317_v35  ;;  %1843 = vmatprep.subr.bf16.mxu0 %v6794_v8  ;;  %v8321_v8 = vld [vmem:[#allocation58_spill] sm:$0xff]  ;;  %v6266_v35 = vld [vmem:[#allocation2 + $0x224] ss:$8 sps:$4 sm:$0xff]  }
 0x237   :  { %v1359_v7 = vpop.f32.mrf.mxu0  ;;  %v8324_v11 = vld [vmem:[#allocation61_spill] sm:$0xff]  ;;  %v8325_v60 = vld [vmem:[#allocation62_spill] sm:$0xff] }
 0x238   :  { %1805 = vmatpush1.bf16.msra.mxu1 %v6261_v43  ;;  %1844 = vmatpush1.bf16.msra.mxu0 %v6803_v12  ;;  %v8322_v12 = vld [vmem:[#allocation59_spill] sm:$0xff]  ;;  %v6270_v17 = vld [vmem:[#allocation2 + $0x204] ss:$8 sps:$4 sm:$0xff]  }
 0x239   :  { %1806 = vmatprep.subr.bf16.mxu1 %v6262_v0  ;;  %1845 = vmatprep.subr.bf16.mxu0 %v6806_v27  ;;  %v1360_v15 = vpop.f32.mrf.mxu0  ;;  %v8323_v27 = vld [vmem:[#allocation60_spill] sm:$0xff]  ;;  %v6269_v53 = vld [vmem:[#allocation2 + $0x210] ss:$8 sps:$4 sm:$0xff]  }
 0x23a   :  { %v8326_v7 = vld [vmem:[#allocation63_spill] sm:$0xff]  ;;  %v8327_v0 = vld [vmem:[#allocation64_spill] sm:$0xff] }
 0x23b   :  { %v6271_v43 = vld [vmem:[#allocation2 + $0x200] ss:$8 sps:$4 sm:$0xff]   ;;  %v6272_v15 = vld [vmem:[#allocation2 + $0x2f4] ss:$8 sps:$4 sm:$0xff]  }
 0x23c   :  { %1807 = vmatpush1.bf16.msra.mxu1 %v6263_v46  ;;  %1846 = vmatpush1.bf16.msra.mxu0 %v8319_v29  ;;  %v8328_v46 = vld [vmem:[#allocation65_spill] sm:$0xff]  ;;  %v8329_v29 = vld [vmem:[#allocation34_spill] sm:$0xff] }
 0x23d   :  { %1808 = vmatprep.subr.bf16.mxu1 %v6264_v36  ;;  %1847 = vmatprep.subr.bf16.mxu0 %v8320_v32  ;;  %v8330_v36 = vld [vmem:[#allocation66_spill] sm:$0xff]  ;;  %v8331_v32 = vld [vmem:[#allocation35_spill] sm:$0xff] }
 0x240   :  { %1809 = vmatpush1.bf16.msra.mxu1 %v6265_v4  ;;  %1848 = vmatpush1.bf16.msra.mxu0 %v8321_v8  ;;  %v8332_v4 = vld [vmem:[#allocation67_spill] sm:$0xff]  ;;  %v8333_v8 = vld [vmem:[#allocation38_spill] sm:$0xff] }
 0x241   :  { %1810 = vmatprep.subr.bf16.mxu1 %v6266_v35  ;;  %1849 = vmatprep.subr.bf16.mxu0 %v8322_v12  ;;  %v8334_v35 = vld [vmem:[#allocation68_spill] sm:$0xff]  ;;  %v8335_v12 = vld [vmem:[#allocation39_spill] sm:$0xff] }
 0x244   :  { %1811 = vmatpush1.bf16.msra.mxu1 %v6267_v39  ;;  %1850 = vmatpush1.bf16.msra.mxu0 %v8323_v27  ;;  %v8336_v39 = vld [vmem:[#allocation69_spill] sm:$0xff]  ;;  %v8337_v27 = vld [vmem:[#allocation43_spill] sm:$0xff] }
 0x245   :  { %1812 = vmatprep.subr.bf16.mxu1 %v6268_v5  ;;  %1851 = vmatprep.subr.bf16.mxu0 %v8324_v11  ;;  %v8338_v5 = vld [vmem:[#allocation70_spill] sm:$0xff]  ;;  %v8339_v11 = vld [vmem:[#allocation44_spill] sm:$0xff] }
 0x248   :  { %1813 = vmatpush1.bf16.msra.mxu1 %v6269_v53  ;;  %1852 = vmatpush1.bf16.msra.mxu0 %v8325_v60  ;;  %v8340_v53 = vld [vmem:[#allocation71_spill] sm:$0xff]  ;;  %v8341_v60 = vld [vmem:[#allocation46_spill] sm:$0xff] }
 0x249   :  { %1814 = vmatprep.subr.bf16.mxu1 %v6270_v17  ;;  %1853 = vmatprep.subr.bf16.mxu0 %v8326_v7  ;;  %v8342_v17 = vld [vmem:[#allocation72_spill] sm:$0xff]  ;;  %v8343_v7 = vld [vmem:[#allocation47_spill] sm:$0xff] }
 0x24c   :  { %1815 = vmatpush1.bf16.msra.mxu1 %v6271_v43  ;;  %1854 = vmatpush1.bf16.msra.mxu0 %v8327_v0  ;;  %v8344_v43 = vld [vmem:[#allocation73_spill] sm:$0xff]  ;;  %v8345_v0 = vld [vmem:[#allocation48_spill] sm:$0xff] }
 0x24d   :  { %1816 = vmatprep.subr.bf16.mxu1 %v6272_v15  ;;  %1855 = vmatprep.subr.bf16.mxu0 %v8328_v46  ;;  %v8346_v15 = vld [vmem:[#allocation74_spill] sm:$0xff]  ;;  %v8347_v46 = vld [vmem:[#allocation49_spill] sm:$0xff] }
 0x250   :  { %1817 = vmatpush2.bf16.msra.mxu1 %v8329_v29  ;;  %1856 = vmatpush1.bf16.msra.mxu0 %v8330_v36  ;;  %v8348_v29 = vld [vmem:[#allocation75_spill] sm:$0xff]  ;;  %v8349_v36 = vld [vmem:[#allocation86_spill] sm:$0xff] }
 0x251   :  { %1818 = vmatprep.subr.bf16.mxu1 %v8331_v32  ;;  %1857 = vmatprep.subr.bf16.mxu0 %v8332_v4  ;;  %v455_v32 = vadd.f32 %v8349_v36, %v6747_v20  ;;  %v8350_v4 = vld [vmem:[#allocation50_spill] sm:$0xff] }
 0x252   :  { %v5939_v36 = vld [vmem:[#allocation2 + $0x154] ss:$8 sps:$4 sm:$0xff]  }
 0x253   :  { %vm597_vm15 = vcmp.ge.f32.partialorder %v455_v32, 0.0 }
 0x254   :  { %1819 = vmatpush2.bf16.msra.mxu1 %v8333_v8  ;;  %1858 = vmatpush2.bf16.msra.mxu0 %v8334_v35  ;;  %v8351_v8 = vld [vmem:[#allocation76_spill] sm:$0xff]  ;;  %v8352_v35 = vld [vmem:[#allocation51_spill] sm:$0xff] }
 0x255   :  { %1820 = vmatprep.subr.bf16.mxu1 %v8335_v12  ;;  %1859 = vmatprep.subr.bf16.mxu0 %v8336_v39  ;;  %v8353_v12 = vld [vmem:[#allocation77_spill] sm:$0xff]  ;;  %v613_v39 = vmul.f32 0.2, %v455_v32 }
 0x258   :  { %1821 = vmatpush2.bf16.msra.mxu1 %v8337_v27  ;;  %1860 = vmatpush2.bf16.msra.mxu0 %v8338_v5  ;;  %v8354_v27 = vld [vmem:[#allocation88_spill] sm:$0xff] }
 0x259   :  { %1822 = vmatprep.subr.bf16.mxu1 %v8339_v11  ;;  %1861 = vmatprep.subr.bf16.mxu0 %v8340_v53  ;;  %v501_v5 = vadd.f32 %v8354_v27, %v6747_v20  ;;  %v8355_v11 = vld [vmem:[#allocation52_spill] sm:$0xff]  ;;  %v8356_v53 = vld [vmem:[#allocation78_spill] sm:$0xff] }
 0x25b   :  { %vm599_vm0 = vcmp.ge.f32.partialorder %v501_v5, 0.0 }
 0x25c   :  { %1823 = vmatpush2.bf16.msra.mxu1 %v8341_v60  ;;  %1862 = vmatpush2.bf16.msra.mxu0 %v8342_v17  ;;  %v629_v60 = vsel %vm597_vm15, %v455_v32, %v613_v39  ;;  %v615_v17 = vmul.f32 0.2, %v501_v5 }
 0x25d   :  { %1824 = vmatprep.subr.bf16.mxu1 %v8343_v7  ;;  %1863 = vmatprep.subr.bf16.mxu0 %v8344_v43  ;;  %v7287_v7 = vpack.c.bf16 %v629_v60, %v629_v60 }
 0x25e   :  { %v631_v43 = vsel %vm599_vm0, %v501_v5, %v615_v17  ;;  %v5978_v5 = vld [vmem:[#allocation2 + $0x184] ss:$8 sps:$4 sm:$0xff]  }
 0x260   :  { %1825 = vmatpush2.bf16.msra.mxu1 %v8345_v0  ;;  %1864 = vmatpush2.bf16.msra.mxu0 %v8346_v15  ;;  %v5933_v0 = vld [vmem:[#allocation2 + $0x174] ss:$8 sps:$4 sm:$0xff]  }
 0x261   :  { %1826 = vmatprep.subr.bf16.mxu1 %v8347_v46  ;;  %1865 = vmatprep.subr.bf16.mxu0 %v8348_v29 }
 0x264   :  { %1827 = vmatpush2.bf16.msra.mxu1 %v8350_v4  ;;  %1866 = vmatpush2.bf16.msra.mxu0 %v8351_v8  ;;  %v5937_v8 = vld [vmem:[#allocation2 + $0x150] ss:$8 sps:$4 sm:$0xff]  }
 0x265   :  { %1828 = vmatprep.subr.bf16.mxu1 %v8352_v35  ;;  %1867 = vmatprep.subr.bf16.mxu0 %v8353_v12  ;;  %v5943_v12 = vld [vmem:[#allocation2 + $0x130] ss:$8 sps:$4 sm:$0xff]  }
 0x268   :  { %1829 = vmatpush2.bf16.msra.mxu1 %v8355_v11  ;;  %1868 = vmatpush2.bf16.msra.mxu0 %v8356_v53  ;;  %v5981_v11 = vld [vmem:[#allocation2 + $0x274] ss:$8 sps:$4 sm:$0xff]  }
 0x269   :  { %1830 = vmatprep.subr.bf16.mxu1 %v8285_v25  ;;  %1869 = vmatprep.subr.bf16.mxu0 %v8286_v13  ;;  %v5931_v25 = vld [vmem:[#allocation2 + $0x170] ss:$8 sps:$4 sm:$0xff]   ;;  %v7294_v13 = vpack.c.bf16 %v631_v43, %v631_v43  ;;  %v5982_v43 = vld [vmem:[#allocation2 + $0x260] ss:$8 sps:$4 sm:$0xff]  }
 0x26c   :  { %1831 = vmatpush2.bf16.msra.mxu1 %v8287_v57  ;;  %1870 = vmatpush2.bf16.msra.mxu0 %v8288_v42 }
 0x26d   :  { %1871 = vmatprep.subr.bf16.mxu0 %v8289_v21  ;;  %2458 = vmatprep.subr.bf16.mxu1 %v8290_v24  ;;  %v5936_v21 = vld [vmem:[#allocation2 + $0x164] ss:$8 sps:$4 sm:$0xff]  }
 0x26f   :  { %v1588_v15 = vpop.f32.mrf.mxu1  ;;  %1833 = vmatmul.mubr.bf16.vlgmr.msra.gmra.mxu1 %v7287_v7 }
 0x270   :  { %1872 = vmatpush2.bf16.msra.mxu0 %v8291_v47  ;;  %2459 = vmatpush1.bf16.msra.mxu1 %v6904_v26  ;;  %v1589_v57 = vadd.f32 %v1588_v15, %v7213_v59  ;;  %v5934_v26 = vld [vmem:[#allocation2 + $0x160] ss:$8 sps:$4 sm:$0xff]  }
 0x271   :  { %2490 = vmatprep.mubr.bf16.mxu1 %v7224_v9  ;;  %v1590_v42 = vpop.f32.mrf.mxu1  ;;  %2460 = vmatprep.subr.bf16.mxu1 %v6908_v50 }
 0x272   :  { %2499 = vmatprep.subr.bf16.mxu0 %v5933_v0  ;;  %v1591_v47 = vadd.f32 %v1590_v42, %v7216_v1 }
 0x273   :  { %v1592_v24 = vpop.f32.mrf.mxu1  ;;  %v1629_v46 = vpop.f32.mrf.mxu0  ;;  %1874 = vmatmul.mubr.bf16.vlgmr.msra.gmra.mxu0 %v7294_v13 }
 0x274   :  { %v7301_v29 = vadd.f32 %v1629_v46, %v1589_v57  ;;  %2461 = vmatpush1.bf16.msra.mxu1 %v6914_v63  ;;  %2500 = vmatpush1.bf16.msra.mxu0 %v5931_v25  ;;  %v5942_v63 = vld [vmem:[#allocation2 + $0x144] ss:$8 sps:$4 sm:$0xff]  }
 0x275   :  { %2531 = vmatprep.mubr.bf16.mxu0 %v7232_v31  ;;  %v1593_v9 = vpop.f32.mrf.mxu1  ;;  %v1631_v50 = vpop.f32.mrf.mxu0  ;;  %2462 = vmatprep.subr.bf16.mxu1 %v6917_v51  ;;  %v5940_v31 = vld [vmem:[#allocation2 + $0x140] ss:$8 sps:$4 sm:$0xff]   ;;  %v5945_v51 = vld [vmem:[#allocation2 + $0x134] ss:$8 sps:$4 sm:$0xff]   ;;  %v5990_v46 = vld [vmem:[#allocation2 + $0x244] ss:$8 sps:$4 sm:$0xff]  }
 0x276   :  { %v7306_v32 = vadd.f32 %v1631_v50, %v1591_v47  ;;  %2501 = vmatprep.subr.bf16.mxu0 %v5936_v21  ;;  %v5993_v50 = vld [vmem:[#allocation2 + $0x234] ss:$8 sps:$4 sm:$0xff]  }
 0x277   :  { %v1633_v4 = vpop.f32.mrf.mxu0 }
 0x278   :  { %2463 = vmatpush1.bf16.msra.mxu1 %v6922_v55  ;;  %2502 = vmatpush1.bf16.msra.mxu0 %v5934_v26  ;;  %v5948_v55 = vld [vmem:[#allocation2 + $0x124] ss:$8 sps:$4 sm:$0xff]   ;;  %v5988_v26 = vld [vmem:[#allocation2 + $0x240] ss:$8 sps:$4 sm:$0xff]   ;;  %v5999_v4 = vld [vmem:[#allocation2 + $0x214] ss:$8 sps:$4 sm:$0xff]  }
 0x279   :  { %v1634_v35 = vpop.f32.mrf.mxu0  ;;  %2464 = vmatprep.subr.bf16.mxu1 %v6926_v2  ;;  %2503 = vmatprep.subr.bf16.mxu0 %v5939_v36  ;;  %v5946_v2 = vld [vmem:[#allocation2 + $0x120] ss:$8 sps:$4 sm:$0xff]   ;;  %v5991_v36 = vld [vmem:[#allocation2 + $0x230] ss:$8 sps:$4 sm:$0xff]  }
 0x27a   :  { %v6002_v35 = vld [vmem:[#allocation2 + $0x204] ss:$8 sps:$4 sm:$0xff]  }
 0x27c   :  { %2465 = vmatpush1.bf16.msra.mxu1 %v6934_v18  ;;  %2504 = vmatpush1.bf16.msra.mxu0 %v5937_v8  ;;  %v5951_v18 = vld [vmem:[#allocation2 + $0x114] ss:$8 sps:$4 sm:$0xff]   ;;  %v5997_v8 = vld [vmem:[#allocation2 + $0x210] ss:$8 sps:$4 sm:$0xff]  }
 0x27d   :  { %2466 = vmatprep.subr.bf16.mxu1 %v6940_v28  ;;  %2505 = vmatprep.subr.bf16.mxu0 %v5942_v63  ;;  %v5949_v28 = vld [vmem:[#allocation2 + $0x110] ss:$8 sps:$4 sm:$0xff]   ;;  %v6000_v63 = vld [vmem:[#allocation2 + $0x200] ss:$8 sps:$4 sm:$0xff]  }
 0x280   :  { %2467 = vmatpush1.bf16.msra.mxu1 %v8293_v30  ;;  %2506 = vmatpush1.bf16.msra.mxu0 %v5940_v31  ;;  %v5954_v30 = vld [vmem:[#allocation2 + $0x104] ss:$8 sps:$4 sm:$0xff]   ;;  %v6005_v31 = vld [vmem:[#allocation2 + $0x2f4] ss:$8 sps:$4 sm:$0xff]  }
 0x281   :  { %2468 = vmatprep.subr.bf16.mxu1 %v6950_v54  ;;  %2507 = vmatprep.subr.bf16.mxu0 %v5945_v51  ;;  %v5952_v54 = vld [vmem:[#allocation2 + $0x100] ss:$8 sps:$4 sm:$0xff]   ;;  %v6003_v51 = vld [vmem:[#allocation2 + $0x2f0] ss:$8 sps:$4 sm:$0xff]  }
 0x284   :  { %2469 = vmatpush1.bf16.msra.mxu1 %v8296_v33  ;;  %2508 = vmatpush1.bf16.msra.mxu0 %v5943_v12  ;;  %v5957_v33 = vld [vmem:[#allocation2 + $0x1f4] ss:$8 sps:$4 sm:$0xff]   ;;  %v6008_v12 = vld [vmem:[#allocation2 + $0x2e4] ss:$8 sps:$4 sm:$0xff]  }
 0x285   :  { %2470 = vmatprep.subr.bf16.mxu1 %v8298_v10  ;;  %2509 = vmatprep.subr.bf16.mxu0 %v5948_v55  ;;  %v5955_v10 = vld [vmem:[#allocation2 + $0x1f0] ss:$8 sps:$4 sm:$0xff]   ;;  %v6006_v55 = vld [vmem:[#allocation2 + $0x2e0] ss:$8 sps:$4 sm:$0xff]  }
 0x288   :  { %2471 = vmatpush1.bf16.msra.mxu1 %v6962_v62  ;;  %2510 = vmatpush1.bf16.msra.mxu0 %v5946_v2  ;;  %v5960_v62 = vld [vmem:[#allocation2 + $0x1e4] ss:$8 sps:$4 sm:$0xff]   ;;  %v6011_v2 = vld [vmem:[#allocation2 + $0x2d4] ss:$8 sps:$4 sm:$0xff]  }
 0x289   :  { %2472 = vmatprep.subr.bf16.mxu1 %v6966_v34  ;;  %2511 = vmatprep.subr.bf16.mxu0 %v5951_v18  ;;  %v5958_v34 = vld [vmem:[#allocation2 + $0x1e0] ss:$8 sps:$4 sm:$0xff]   ;;  %v6009_v18 = vld [vmem:[#allocation2 + $0x2d0] ss:$8 sps:$4 sm:$0xff]  }
 0x28c   :  { %2473 = vmatpush1.bf16.msra.mxu1 %v6974_v41  ;;  %2512 = vmatpush1.bf16.msra.mxu0 %v5949_v28  ;;  %v5963_v41 = vld [vmem:[#allocation2 + $0x1d4] ss:$8 sps:$4 sm:$0xff]   ;;  %v6014_v28 = vld [vmem:[#allocation2 + $0x2c4] ss:$8 sps:$4 sm:$0xff]  }
 0x28d   :  { %2474 = vmatprep.subr.bf16.mxu1 %v6980_v19  ;;  %2513 = vmatprep.subr.bf16.mxu0 %v5954_v30  ;;  %v5961_v19 = vld [vmem:[#allocation2 + $0x1d0] ss:$8 sps:$4 sm:$0xff]   ;;  %v6012_v30 = vld [vmem:[#allocation2 + $0x2c0] ss:$8 sps:$4 sm:$0xff]  }
 0x290   :  { %2475 = vmatpush2.bf16.msra.mxu1 %v6986_v58  ;;  %2514 = vmatpush1.bf16.msra.mxu0 %v5952_v54  ;;  %v5966_v58 = vld [vmem:[#allocation2 + $0x1c4] ss:$8 sps:$4 sm:$0xff]   ;;  %v6017_v54 = vld [vmem:[#allocation2 + $0x2b4] ss:$8 sps:$4 sm:$0xff]  }
 0x291   :  { %2476 = vmatprep.subr.bf16.mxu1 %v8303_v48  ;;  %2515 = vmatprep.subr.bf16.mxu0 %v5957_v33  ;;  %v5964_v48 = vld [vmem:[#allocation2 + $0x1c0] ss:$8 sps:$4 sm:$0xff]   ;;  %v6015_v33 = vld [vmem:[#allocation2 + $0x2b0] ss:$8 sps:$4 sm:$0xff]  }
 0x294   :  { %2477 = vmatpush2.bf16.msra.mxu1 %v6994_v45  ;;  %2516 = vmatpush2.bf16.msra.mxu0 %v5955_v10  ;;  %v5969_v45 = vld [vmem:[#allocation2 + $0x1b4] ss:$8 sps:$4 sm:$0xff]   ;;  %v6020_v10 = vld [vmem:[#allocation2 + $0x2a4] ss:$8 sps:$4 sm:$0xff]  }
 0x295   :  { %2478 = vmatprep.subr.bf16.mxu1 %v6998_v40  ;;  %2517 = vmatprep.subr.bf16.mxu0 %v5960_v62  ;;  %v5967_v40 = vld [vmem:[#allocation2 + $0x1b0] ss:$8 sps:$4 sm:$0xff]   ;;  %v6018_v62 = vld [vmem:[#allocation2 + $0x2a0] ss:$8 sps:$4 sm:$0xff]  }
 0x298   :  { %2479 = vmatpush2.bf16.msra.mxu1 %v7006_v49  ;;  %2518 = vmatpush2.bf16.msra.mxu0 %v5958_v34  ;;  %v5972_v49 = vld [vmem:[#allocation2 + $0x1a4] ss:$8 sps:$4 sm:$0xff]   ;;  %v6023_v34 = vld [vmem:[#allocation2 + $0x294] ss:$8 sps:$4 sm:$0xff]  }
 0x299   :  { %2480 = vmatprep.subr.bf16.mxu1 %v7010_v56  ;;  %2519 = vmatprep.subr.bf16.mxu0 %v5963_v41  ;;  %v8357_v56 = vld [vmem:[#allocation92_spill] sm:$0xff]  ;;  %v8359_v41 = vld [vmem:[#allocation91_spill] sm:$0xff] }
 0x29a   :  { %v583_v39 = vadd.f32 %v8357_v56, %v6754_v3  ;;  %v5976_v3 = vld [vmem:[#allocation2 + $0x180] ss:$8 sps:$4 sm:$0xff]  }
 0x29c   :  { %2481 = vmatpush2.bf16.msra.mxu1 %v8306_v52  ;;  %2520 = vmatpush2.bf16.msra.mxu0 %v5961_v19  ;;  %v5970_v52 = vld [vmem:[#allocation2 + $0x1a0] ss:$8 sps:$4 sm:$0xff]   ;;  %v618_v27 = vmul.f32 0.2, %v583_v39  ;;  %vm602_vm2 = vcmp.ge.f32.partialorder %v583_v39, 0.0  ;;  %v581_v19 = vadd.f32 %v8359_v41, %v6747_v20  ;;  %v2599_v41 = vld [vmem:[%s7987_s7 + $0x90] sm:$0xff] }
 0x29d   :  { %2482 = vmatprep.subr.bf16.mxu1 %v7018_v44  ;;  %2521 = vmatprep.subr.bf16.mxu0 %v5966_v58  ;;  %v5975_v44 = vld [vmem:[#allocation2 + $0x194] ss:$8 sps:$4 sm:$0xff]   ;;  %v6021_v58 = vld [vmem:[#allocation2 + $0x290] ss:$8 sps:$4 sm:$0xff]  }
 0x29e   :  { %v634_v53 = vsel %vm602_vm2, %v583_v39, %v618_v27  ;;  %vm601_vm3 = vcmp.ge.f32.partialorder %v581_v19, 0.0 }
 0x2a0   :  { %2483 = vmatpush2.bf16.msra.mxu1 %v7022_v61  ;;  %2522 = vmatpush2.bf16.msra.mxu0 %v5964_v48  ;;  %v5973_v61 = vld [vmem:[#allocation2 + $0x190] ss:$8 sps:$4 sm:$0xff]   ;;  %v6026_v48 = vld [vmem:[#allocation2 + $0x284] ss:$8 sps:$4 sm:$0xff]  }
 0x2a1   :  { %2484 = vmatprep.subr.bf16.mxu1 %v8310_v38  ;;  %2523 = vmatprep.subr.bf16.mxu0 %v5969_v45  ;;  %v8358_v38 = vld [vmem:[#allocation96_spill] sm:$0xff]  ;;  %v617_v45 = vmul.f32 0.2, %v581_v19 }
 0x2a4   :  { %2485 = vmatpush2.bf16.msra.mxu1 %v7030_v23  ;;  %2524 = vmatpush2.bf16.msra.mxu0 %v5967_v40  ;;  %v5979_v23 = vld [vmem:[#allocation2 + $0x270] ss:$8 sps:$4 sm:$0xff]   ;;  %v6024_v40 = vld [vmem:[#allocation2 + $0x280] ss:$8 sps:$4 sm:$0xff]  }
 0x2a5   :  { %2486 = vmatprep.subr.bf16.mxu1 %v8314_v37  ;;  %2525 = vmatprep.subr.bf16.mxu0 %v5972_v49  ;;  %v5984_v37 = vld [vmem:[#allocation2 + $0x264] ss:$8 sps:$4 sm:$0xff]   ;;  %v633_v49 = vsel %vm601_vm3, %v581_v19, %v617_v45  ;;  %v2583_v19 = vld [vmem:[%s7987_s7 + $0x10] sm:$0xff] }
 0x2a6   :  { %v649_v56 = vpack.c.bf16 %v633_v49, %v633_v49  ;;  %v2597_v45 = vld [vmem:[%s7987_s7 + $0x80] sm:$0xff] }
 0x2a8   :  { %2487 = vmatpush2.bf16.msra.mxu1 %v7040_v6  ;;  %2526 = vmatpush2.bf16.msra.mxu0 %v5970_v52  ;;  %v650_v6 = vpack.c.bf16 %v634_v53, %v634_v53 }
 0x2a9   :  { %2488 = vmatprep.subr.bf16.mxu1 %v8358_v38  ;;  %2527 = vmatprep.subr.bf16.mxu0 %v5975_v44 }
 0x2ac   :  { %2489 = vmatpush2.bf16.msra.mxu1 %v7050_v16  ;;  %2528 = vmatpush2.bf16.msra.mxu0 %v5973_v61  ;;  %v5987_v16 = vld [vmem:[#allocation2 + $0x254] ss:$8 sps:$4 sm:$0xff]  }
 0x2ad   :  { %2529 = vmatprep.subr.bf16.mxu0 %v5978_v5  ;;  %2540 = vmatprep.subr.bf16.mxu1 %v5981_v11 }
 0x2af   :  { %v1670_v60 = vpop.f32.mrf.mxu1  ;;  %2491 = vmatmul.mubr.bf16.vlgmr.msra.gmra.mxu1 %v7287_v7  ;;  %v5985_v7 = vld [vmem:[#allocation2 + $0x250] ss:$8 sps:$4 sm:$0xff]  }
 0x2b0   :  { %v1671_v17 = vadd.f32 %v1670_v60, %v7301_v29  ;;  %2530 = vmatpush2.bf16.msra.mxu0 %v5976_v3  ;;  %2541 = vmatpush1.bf16.msra.mxu1 %v5979_v23  ;;  %v2596_v60 = vld [vmem:[%s7987_s7 + $0x78] sm:$0xff] }
 0x2b1   :  { %2572 = vmatprep.mubr.bf16.mxu1 %v650_v6  ;;  %v1672_v0 = vpop.f32.mrf.mxu1  ;;  %2542 = vmatprep.subr.bf16.mxu1 %v5984_v37  ;;  %v2612_v37 = vld [vmem:[%s7987_s7 + $0xf8] sm:$0xff]  ;;  %v2611_v6 = vld [vmem:[%s7987_s7 + $0xf0] sm:$0xff] }
 0x2b2   :  { %v1673_v15 = vadd.f32 %v1672_v0, %v7306_v32  ;;  %v5994_v32 = vld [vmem:[#allocation2 + $0x220] ss:$8 sps:$4 sm:$0xff]   ;;  %5529 = vmatprep.subr.mxu0 %v2612_v37 }
 0x2b3   :  { %v1674_v25 = vpop.f32.mrf.mxu1  ;;  %v1711_v42 = vpop.f32.mrf.mxu0  ;;  %2532 = vmatmul.mubr.bf16.vlgmr.msra.gmra.mxu0 %v7294_v13  ;;  %v5996_v13 = vld [vmem:[#allocation2 + $0x224] ss:$8 sps:$4 sm:$0xff]  }
 0x2b4   :  { %v7341_v57 = vadd.f32 %v1711_v42, %v1671_v17  ;;  %2543 = vmatpush1.bf16.msra.mxu1 %v5982_v43  ;;  %v2595_v17 = vld [vmem:[%s7987_s7 + $0x70] sm:$0xff]  ;;  %5530 = vmatpush3.msra.mxu0 %v2596_v60  ;;  %v2610_v43 = vld [vmem:[%s7987_s7 + $0xe8] sm:$0xff]  ;;  %v2608_v25 = vld [vmem:[%s7987_s7 + $0xd8] sm:$0xff] }
 0x2b5   :  { %v1675_v21 = vpop.f32.mrf.mxu1  ;;  %v1713_v24 = vpop.f32.mrf.mxu0  ;;  %2544 = vmatprep.subr.bf16.mxu1 %v5987_v16  ;;  %5531 = vmatprep.subr.mxu0 %v2611_v6  ;;  %v2594_v0 = vld [vmem:[%s7987_s7 + $0x68] sm:$0xff]  ;;  %v2609_v16 = vld [vmem:[%s7987_s7 + $0xe0] sm:$0xff]  ;;  %v2592_v42 = vld [vmem:[%s7987_s7 + $0x58] sm:$0xff] }
 0x2b6   :  { %v7343_v47 = vadd.f32 %v1713_v24, %v1673_v15  ;;  %5532 = vmatpush3.msra.mxu0 %v2595_v17  ;;  %v2593_v15 = vld [vmem:[%s7987_s7 + $0x60] sm:$0xff]  ;;  %v2591_v24 = vld [vmem:[%s7987_s7 + $0x50] sm:$0xff] }
 0x2b7   :  { %v1715_v29 = vpop.f32.mrf.mxu0  ;;  %5533 = vmatprep.subr.mxu0 %v2610_v43 }
 0x2b8   :  { %2545 = vmatpush1.bf16.msra.mxu1 %v5985_v7  ;;  %5534 = vmatpush3.msra.mxu0 %v2594_v0  ;;  %v2607_v7 = vld [vmem:[%s7987_s7 + $0xd0] sm:$0xff]  ;;  %v2606_v29 = vld [vmem:[%s7987_s7 + $0xc8] sm:$0xff] }
 0x2b9   :  { %v1716_v9 = vpop.f32.mrf.mxu0  ;;  %2546 = vmatprep.subr.bf16.mxu1 %v5990_v46  ;;  %5535 = vmatprep.subr.mxu0 %v2609_v16 }
 0x2ba   :  { %5536 = vmatpush3.msra.mxu0 %v2593_v15  ;;  %v2590_v9 = vld [vmem:[%s7987_s7 + $0x48] sm:$0xff] }
 0x2bb   :  { %5537 = vmatprep.subr.mxu0 %v2608_v25 }
 0x2bc   :  { %2547 = vmatpush1.bf16.msra.mxu1 %v5988_v26  ;;  %5538 = vmatpush3.msra.mxu0 %v2592_v42 }
 0x2bd   :  { %2548 = vmatprep.subr.bf16.mxu1 %v5993_v50  ;;  %5539 = vmatprep.subr.mxu0 %v2607_v7 }
 0x2be   :  { %5540 = vmatpush3.msra.mxu0 %v2591_v24 }
 0x2bf   :  { %5541 = vmatprep.subr.mxu0 %v2606_v29 }
 0x2c0   :  { %2549 = vmatpush1.bf16.msra.mxu1 %v5991_v36  ;;  %5542 = vmatpush3.msra.mxu0 %v2590_v9  ;;  %v2605_v36 = vld [vmem:[%s7987_s7 + $0xc0] sm:$0xff] }
 0x2c1   :  { %2550 = vmatprep.subr.bf16.mxu1 %v5996_v13  ;;  %5543 = vmatprep.subr.mxu0 %v2605_v36 }
 0x2c4   :  { %2551 = vmatpush1.bf16.msra.mxu1 %v5994_v32 }
 0x2c5   :  { %2552 = vmatprep.subr.bf16.mxu1 %v5999_v4  ;;  %v2589_v4 = vld [vmem:[%s7987_s7 + $0x40] sm:$0xff] }
 0x2c6   :  { %5544 = vmatpush3.msra.mxu0 %v2589_v4 }
 0x2c8   :  { %2553 = vmatpush1.bf16.msra.mxu1 %v5997_v8 }
 0x2c9   :  { %2554 = vmatprep.subr.bf16.mxu1 %v6002_v35  ;;  %v2604_v35 = vld [vmem:[%s7987_s7 + $0xb8] sm:$0xff] }
 0x2ca   :  { %5545 = vmatprep.subr.mxu0 %v2604_v35 }
 0x2cc   :  { %2555 = vmatpush1.bf16.msra.mxu1 %v6000_v63 }
 0x2cd   :  { %2556 = vmatprep.subr.bf16.mxu1 %v6005_v31 }
 0x2d0   :  { %2557 = vmatpush2.bf16.msra.mxu1 %v6003_v51  ;;  %v2588_v51 = vld [vmem:[%s7987_s7 + $0x38] sm:$0xff] }
 0x2d1   :  { %2558 = vmatprep.subr.bf16.mxu1 %v6008_v12  ;;  %5546 = vmatpush3.msra.mxu0 %v2588_v51 }
 0x2d4   :  { %2559 = vmatpush2.bf16.msra.mxu1 %v6006_v55  ;;  %v2603_v55 = vld [vmem:[%s7987_s7 + $0xb0] sm:$0xff] }
 0x2d5   :  { %2560 = vmatprep.subr.bf16.mxu1 %v6011_v2  ;;  %5547 = vmatprep.subr.mxu0 %v2603_v55 }
 0x2d8   :  { %2561 = vmatpush2.bf16.msra.mxu1 %v6009_v18  ;;  %v2587_v18 = vld [vmem:[%s7987_s7 + $0x30] sm:$0xff] }
 0x2d9   :  { %2562 = vmatprep.subr.bf16.mxu1 %v6014_v28  ;;  %5548 = vmatpush3.msra.mxu0 %v2587_v18  ;;  %v2602_v28 = vld [vmem:[%s7987_s7 + $0xa8] sm:$0xff] }
 0x2da   :  { %5549 = vmatprep.subr.mxu0 %v2602_v28 }
 0x2dc   :  { %2563 = vmatpush2.bf16.msra.mxu1 %v6012_v30 }
 0x2dd   :  { %2564 = vmatprep.subr.bf16.mxu1 %v6017_v54  ;;  %v2586_v54 = vld [vmem:[%s7987_s7 + $0x28] sm:$0xff] }
 0x2de   :  { %5550 = vmatpush3.msra.mxu0 %v2586_v54 }
 0x2e0   :  { %2565 = vmatpush2.bf16.msra.mxu1 %v6015_v33  ;;  %v2601_v33 = vld [vmem:[%s7987_s7 + $0xa0] sm:$0xff] }
 0x2e1   :  { %2566 = vmatprep.subr.bf16.mxu1 %v6020_v10  ;;  %5551 = vmatprep.subr.mxu0 %v2601_v33  ;;  %v2585_v10 = vld [vmem:[%s7987_s7 + $0x20] sm:$0xff] }
 0x2e2   :  { %5552 = vmatpush3.msra.mxu0 %v2585_v10 }
 0x2e4   :  { %2567 = vmatpush2.bf16.msra.mxu1 %v6018_v62  ;;  %v2600_v62 = vld [vmem:[%s7987_s7 + $0x98] sm:$0xff] }
 0x2e5   :  { %2568 = vmatprep.subr.bf16.mxu1 %v6023_v34  ;;  %5553 = vmatprep.subr.mxu0 %v2600_v62  ;;  %v2584_v34 = vld [vmem:[%s7987_s7 + $0x18] sm:$0xff] }
 0x2e6   :  { %5554 = vmatpush3.msra.mxu0 %v2584_v34 }
 0x2e7   :  { %5555 = vmatprep.subr.mxu0 %v2599_v41 }
 0x2e8   :  { %2569 = vmatpush2.bf16.msra.mxu1 %v6021_v58  ;;  %v2598_v58 = vld [vmem:[%s7987_s7 + $0x88] sm:$0xff]  ;;  %5556 = vmatpush3.msra.mxu0 %v2583_v19 }
 0x2e9   :  { %2570 = vmatprep.subr.bf16.mxu1 %v6026_v48  ;;  %v2582_v48 = vld [vmem:[%s7987_s7 + $0x8] sm:$0xff]  ;;  %5557 = vmatprep.subr.mxu0 %v2598_v58 }
 0x2ea   :  { %5558 = vmatpush3.msra.mxu0 %v2582_v48 }
 0x2eb   :  { %5559 = vmatprep.subr.mxu0 %v2597_v45 }
 0x2ec   :  { %2571 = vmatpush2.bf16.msra.mxu1 %v6024_v40  ;;  %v2581_v40 = vld [vmem:[%s7987_s7] sm:$0xff] }
 0x2ed   :  { %5564 = vmatprep.subr.mxu1 %v2612_v37  ;;  %5560 = vmatpush3.msra.mxu0 %v2581_v40 }
 0x2ef   :  { %v1752_v39 = vpop.f32.mrf.mxu1  ;;  %2573 = vmatmul.mubr.bf16.vlgmr.msra.gmra.mxu1 %v649_v56 }
 0x2f0   :  { %v1753_v44 = vadd.f32 %v1752_v39, %v7213_v59  ;;  %5565 = vmatpush3.msra.mxu1 %v2596_v60 }
 0x2f1   :  { %v1754_v52 = vpop.f32.mrf.mxu1  ;;  %5566 = vmatprep.subr.mxu1 %v2611_v6 }
 0x2f2   :  { %v1755_v20 = vadd.f32 %v1754_v52, %v7216_v1  ;;  %5567 = vmatpush3.msra.mxu1 %v2595_v17 }
 0x2f3   :  { %v1756_v27 = vpop.f32.mrf.mxu1  ;;  %v1793_v61 = vpop.f32.mrf.mxu0  ;;  %5568 = vmatprep.subr.mxu1 %v2610_v43 }
 0x2f4   :  { %v1794_v38 = vadd.f32 %v1793_v61, %v1753_v44  ;;  %5569 = vmatpush3.msra.mxu1 %v2594_v0 }
 0x2f5   :  { %v1757_v5 = vpop.f32.mrf.mxu1  ;;  %v1795_v11 = vpop.f32.mrf.mxu0  ;;  %5570 = vmatprep.subr.mxu1 %v2609_v16 }
 0x2f6   :  { %v1796_v3 = vadd.f32 %v1795_v11, %v1755_v20  ;;  %5571 = vmatpush3.msra.mxu1 %v2593_v15  ;;  %v2628_v5 = vsel %vm2613_vm4, %v7341_v57, 0.0  ;;  %v2621_v11 = vsel %vm2613_vm4, %v7238_v22, 0.0 }
 0x2f7   :  { %v1797_v23 = vpop.f32.mrf.mxu0  ;;  %5572 = vmatprep.subr.mxu1 %v2608_v25  ;;  %v2629_v60 = vrot.slane %v2628_v5, 4  ;;  %v2622_v6 = vrot.slane %v2621_v11, 4 }
 0x2f8   :  { %5573 = vmatpush3.msra.mxu1 %v2592_v42  ;;  %v2614_v23 = vsel %vm2613_vm4, %v7234_v14, 0.0 }
 0x2f9   :  { %v1798_v53 = vpop.f32.mrf.mxu0  ;;  %5574 = vmatprep.subr.mxu1 %v2607_v7  ;;  %v2615_v43 = vrot.slane %v2614_v23, 4  ;;  %v2630_v15 = vadd.f32 %v2629_v60, %v2628_v5  ;;  %v2623_v25 = vadd.f32 %v2622_v6, %v2621_v11 }
 0x2fa   :  { %5575 = vmatpush3.msra.mxu1 %v2591_v24 }
 0x2fb   :  { %5576 = vmatprep.subr.mxu1 %v2606_v29  ;;  %v2616_v7 = vadd.f32 %v2615_v43, %v2614_v23  ;;  %v2631_v29 = vrot.slane %v2630_v15, 2 }
 0x2fc   :  { %5577 = vmatpush3.msra.mxu1 %v2590_v9 }
 0x2fd   :  { %5578 = vmatprep.subr.mxu1 %v2605_v36 }
 0x2fe   :  { %5579 = vmatpush3.msra.mxu1 %v2589_v4 }
 0x2ff   :  { %5580 = vmatprep.subr.mxu1 %v2604_v35 }
 0x300   :  { %5581 = vmatpush3.msra.mxu1 %v2588_v51 }
 0x301   :  { %5582 = vmatprep.subr.mxu1 %v2603_v55  ;;  %v2632_v55 = vadd.f32 %v2631_v29, %v2630_v15  ;;  %v8360_v29 = vld [vmem:[#allocation40_spill] sm:$0xff] }
 0x302   :  { %5583 = vmatpush3.msra.mxu1 %v2587_v18 }
 0x303   :  { %5584 = vmatprep.subr.mxu1 %v2602_v28 }
 0x304   :  { %5585 = vmatpush3.msra.mxu1 %v2586_v54 }
 0x305   :  { %5586 = vmatprep.subr.mxu1 %v2601_v33 }
 0x306   :  { %5587 = vmatpush3.msra.mxu1 %v2585_v10 }
 0x307   :  { %5588 = vmatprep.subr.mxu1 %v2600_v62 }
 0x308   :  { %5589 = vmatpush3.msra.mxu1 %v2584_v34 }
 0x309   :  { %5590 = vmatprep.subr.mxu1 %v2599_v41 }
 0x30a   :  { %5591 = vmatpush3.msra.mxu1 %v2583_v19 }
 0x30b   :  { %5592 = vmatprep.subr.mxu1 %v2598_v58  ;;  %v2633_v58 = vrot.slane %v2632_v55, 1 }
 0x30c   :  { %5593 = vmatpush3.msra.mxu1 %v2582_v48 }
 0x30d   :  { %5594 = vmatprep.subr.mxu1 %v2597_v45 }
 0x30e   :  { %5595 = vmatpush3.msra.mxu1 %v2581_v40 }
 0x32f   :  { %v1834_v21 = vpop.f32.mrf.mxu1 }
 0x330   :  { %v1835_v46 = vadd.f32 %v1834_v21, %v1794_v38  ;;  %v2635_v38 = vsel %vm2613_vm4, %v7343_v47, 0.0 }
 0x331   :  { %v1836_v26 = vpop.f32.mrf.mxu1  ;;  %v2636_v53 = vrot.slane %v2635_v38, 4 }
 0x332   :  { %v1837_v50 = vadd.f32 %v1836_v26, %v1796_v3 }
 0x333   :  { %v1838_v13 = vpop.f32.mrf.mxu1  ;;  %v1875_v32 = vpop.f32.mrf.mxu0  ;;  %v2637_v16 = vadd.f32 %v2636_v53, %v2635_v38 }
 0x334   :  { %v7397_v8 = vadd.f32 %v1875_v32, %v1835_v46  ;;  %v2617_v32 = vrot.slane %v2616_v7, 2 }
 0x335   :  { %v1839_v63 = vpop.f32.mrf.mxu1  ;;  %v1877_v31 = vpop.f32.mrf.mxu0  ;;  %v2638_v46 = vrot.slane %v2637_v16, 2 }
 0x336   :  { %v7405_v12 = vadd.f32 %v1877_v31, %v1837_v50  ;;  %v2642_v37 = vsel %vm2613_vm4, %v7397_v8, 0.0  ;;  %v2624_v50 = vrot.slane %v2623_v25, 2  ;;  %v2618_v33 = vadd.f32 %v2617_v32, %v2616_v7 }
 0x337   :  { %v1879_v2 = vpop.f32.mrf.mxu0  ;;  %v2643_v0 = vrot.slane %v2642_v37, 4  ;;  %v2639_v31 = vadd.f32 %v2638_v46, %v2637_v16 }
 0x338   :  { %v2649_v3 = vsel %vm2613_vm4, %v7405_v12, 0.0  ;;  %v2625_v28 = vadd.f32 %v2624_v50, %v2623_v25 }
 0x339   :  { %v1880_v30 = vpop.f32.mrf.mxu0  ;;  %v2650_v17 = vrot.slane %v2649_v3, 4  ;;  %v2644_v21 = vadd.f32 %v2643_v0, %v2642_v37  ;;  %v2640_v62 = vrot.slane %v2639_v31, 1 }
 0x33a   :  { %v2626_v48 = vrot.slane %v2625_v28, 1 }
 0x33b   :  { %v2651_v42 = vadd.f32 %v2650_v17, %v2649_v3  ;;  %v2645_v4 = vrot.slane %v2644_v21, 2 }
 0x33d   :  { %v2652_v36 = vrot.slane %v2651_v42, 2 }
 0x36f   :  { %v2492_v49 = vpop.f32.mrf.mxu1 }
 0x370   :  { %v2493_v24 = vadd.f32 %v2492_v49, %v7213_v59  ;;  %v2653_v59 = vadd.f32 %v2652_v36, %v2651_v42 }
 0x371   :  { %v2494_v56 = vpop.f32.mrf.mxu1 }
 0x372   :  { %v2495_v26 = vadd.f32 %v2494_v56, %v7216_v1  ;;  %v2646_v1 = vadd.f32 %v2645_v4, %v2644_v21  ;;  %v2654_v45 = vrot.slane %v2653_v59, 1  ;;  %v2619_v56 = vrot.slane %v2618_v33, 1 }
 0x373   :  { %v2496_v39 = vpop.f32.mrf.mxu1  ;;  %v2533_v52 = vpop.f32.mrf.mxu0 }
 0x374   :  { %v2534_v9 = vadd.f32 %v2533_v52, %v2493_v24  ;;  %v2647_v39 = vrot.slane %v2646_v1, 1  ;;  %v2641_v52 = vadd.f32 %v2640_v62, %v2639_v31  ;;  %v2655_v38 = vadd.f32 %v2654_v45, %v2653_v59 }
 0x375   :  { %v2497_v44 = vpop.f32.mrf.mxu1  ;;  %v2535_v27 = vpop.f32.mrf.mxu0  ;;  %v2620_v3 = vadd.f32 %v2619_v56, %v2618_v33 }
 0x376   :  { %v2536_v35 = vadd.f32 %v2535_v27, %v2495_v26  ;;  %v2648_v23 = vadd.f32 %v2647_v39, %v2646_v1 }
 0x377   :  { %v2537_v61 = vpop.f32.mrf.mxu0 }
 0x378   :  { %v2634_v61 = vadd.f32 %v2633_v58, %v2632_v55 }
 0x379   :  { %v2538_v20 = vpop.f32.mrf.mxu0 }
 0x37a   :  { %v2627_v20 = vadd.f32 %v2626_v48, %v2625_v28  ;;  %v2670_v60 = vadd.f32 %v2634_v61, %v2620_v3 }
 0x37c   :  { %v2671_v37 = vadd.f32 %v2641_v52, %v2627_v20  ;;  %v2672_v0 = vadd.f32 %v2670_v60, %v2648_v23 }
 0x37e   :  { %v2673_v43 = vadd.f32 %v2671_v37, %v2655_v38 }
 0x3af   :  { %v2574_v13 = vpop.f32.mrf.mxu1 }
 0x3b0   :  { %v2575_v63 = vadd.f32 %v2574_v13, %v2534_v9 }
 0x3b1   :  { %v2576_v51 = vpop.f32.mrf.mxu1 }
 0x3b2   :  { %v2656_v2 = vsel %vm2613_vm4, %v2575_v63, 0.0  ;;  %v2577_v18 = vadd.f32 %v2576_v51, %v2536_v35 }
 0x3b3   :  { %v2657_v30 = vrot.slane %v2656_v2, 4  ;;  %v2578_v54 = vpop.f32.mrf.mxu1 }
 0x3b4   :  { %v2663_v10 = vsel %vm2613_vm4, %v2577_v18, 0.0 }
 0x3b5   :  { %v2658_v34 = vadd.f32 %v2657_v30, %v2656_v2  ;;  %v2664_v41 = vrot.slane %v2663_v10, 4  ;;  %v2579_v19 = vpop.f32.mrf.mxu1 }
 0x3b7   :  { %v2659_v40 = vrot.slane %v2658_v34, 2  ;;  %v2665_v49 = vadd.f32 %v2664_v41, %v2663_v10 }
 0x3b9   :  { %v2660_v44 = vadd.f32 %v2659_v40, %v2658_v34  ;;  %v2666_v27 = vrot.slane %v2665_v49, 2 }
 0x3bb   :  { %v2661_v5 = vrot.slane %v2660_v44, 1  ;;  %v2667_v11 = vadd.f32 %v2666_v27, %v2665_v49 }
 0x3bd   :  { %v2668_v53 = vrot.slane %v2667_v11, 1  ;;  %v2662_v6 = vadd.f32 %v2661_v5, %v2660_v44 }
 0x3bf   :  { %v2669_v17 = vadd.f32 %v2668_v53, %v2667_v11  ;;  %v2674_v15 = vadd.f32 %v2672_v0, %v2662_v6 }
 0x3c1   :  { %v2675_v16 = vadd.f32 %v2673_v43, %v2669_v17 }
 0x3c3   :  { %2740 = vmatprep.mubr.f32.mxu0 %v2675_v16 }
 0x3c4   :  { %2741 = vmatmul.mubr.f32.vlgmr.msra.gmra.mxu0 %v2674_v15 }
 0x484   :  { %v5561_v25 = vpop.f32.mrf.mxu0 }
 0x486   :  { %v5562_v42 = vpop.f32.mrf.mxu0 }
 0x487   :  { %v5563_v7 = vadd.f32 %v5562_v42, %v5561_v25 }
 0x489   :  { %v2746_v21 = vmul.f32 0.03125, %v5563_v7 }
 0x48b   :  { %2748 = vrot.lane.b32.xlu0 %v2746_v21, %s6364_s8 }
 0x4fd   :  { %v2749_v24 = vpop.permute.xlu0 %2748 }
 0x4fe   :  { %v2751_v46 = vsel %vm216_vm1, %v2746_v21, %v2749_v24 }
 0x4ff   :  { %v2755_v26 = vrot.slane %v2751_v46, %v8360_v29 }
 0x501   :  { %v7469_v9 = vsub.f32 %v7238_v22, %v2755_v26  ;;  %v7472_v50 = vsub.f32 %v7343_v47, %v2755_v26  ;;  %v7475_v36 = vsub.f32 %v7405_v12, %v2755_v26  ;;  %v7477_v13 = vsub.f32 %v2577_v18, %v2755_v26 }
 0x502   :  { %v7480_v32 = vsub.f32 %v7234_v14, %v2755_v26  ;;  %v7483_v4 = vsub.f32 %v7341_v57, %v2755_v26  ;;  %v7486_v35 = vsub.f32 %v7397_v8, %v2755_v26  ;;  %v7488_v31 = vsub.f32 %v2575_v63, %v2755_v26 }
 0x503   :  { %v2765_v22 = vmul.f32 %v7469_v9, %v7469_v9  ;;  %v2767_v47 = vmul.f32 %v7472_v50, %v7472_v50  ;;  %v2769_v12 = vmul.f32 %v7475_v36, %v7475_v36  ;;  %v2771_v14 = vmul.f32 %v7477_v13, %v7477_v13 }
 0x504   :  { %v2764_v57 = vmul.f32 %v7480_v32, %v7480_v32  ;;  %v2766_v8 = vmul.f32 %v7483_v4, %v7483_v4  ;;  %v2768_v63 = vmul.f32 %v7486_v35, %v7486_v35  ;;  %v2770_v51 = vmul.f32 %v7488_v31, %v7488_v31 }
 0x505   :  { %v2779_v55 = vsel %vm2613_vm4, %v2765_v22, 0.0  ;;  %v2793_v2 = vsel %vm2613_vm4, %v2767_v47, 0.0  ;;  %v2807_v18 = vsel %vm2613_vm4, %v2769_v12, 0.0  ;;  %v2821_v28 = vsel %vm2613_vm4, %v2771_v14, 0.0 }
 0x506   :  { %v2780_v59 = vrot.slane %v2779_v55, 4  ;;  %v2794_v30 = vrot.slane %v2793_v2, 4  ;;  %v2808_v54 = vrot.slane %v2807_v18, 4  ;;  %v2822_v33 = vrot.slane %v2821_v28, 4 }
 0x507   :  { %v2772_v1 = vsel %vm2613_vm4, %v2764_v57, 0.0  ;;  %v2786_v10 = vsel %vm2613_vm4, %v2766_v8, 0.0  ;;  %v2800_v62 = vsel %vm2613_vm4, %v2768_v63, 0.0  ;;  %v2814_v34 = vsel %vm2613_vm4, %v2770_v51, 0.0 }
 0x508   :  { %v2781_v41 = vadd.f32 %v2780_v59, %v2779_v55  ;;  %v2795_v19 = vadd.f32 %v2794_v30, %v2793_v2  ;;  %v2809_v58 = vadd.f32 %v2808_v54, %v2807_v18  ;;  %v2823_v48 = vadd.f32 %v2822_v33, %v2821_v28  ;;  %v7514_v33 = vld [vmem:[#allocation5 + $0x170] ss:$8 sps:$4 sm:$0xff]  }
 0x509   :  { %v2773_v45 = vrot.slane %v2772_v1, 4  ;;  %v2787_v40 = vrot.slane %v2786_v10, 4  ;;  %v2801_v49 = vrot.slane %v2800_v62, 4  ;;  %v2815_v56 = vrot.slane %v2814_v34, 4 }
 0x50a   :  { %v2782_v39 = vrot.slane %v2781_v41, 2  ;;  %v2796_v52 = vrot.slane %v2795_v19, 2  ;;  %v2810_v44 = vrot.slane %v2809_v58, 2  ;;  %v2824_v27 = vrot.slane %v2823_v48, 2 }
 0x50b   :  { %v2774_v61 = vadd.f32 %v2773_v45, %v2772_v1  ;;  %v2788_v20 = vadd.f32 %v2787_v40, %v2786_v10  ;;  %v2802_v38 = vadd.f32 %v2801_v49, %v2800_v62  ;;  %v2816_v5 = vadd.f32 %v2815_v56, %v2814_v34  ;;  %v7516_v1 = vld [vmem:[#allocation5 + $0x174] ss:$8 sps:$4 sm:$0xff]   ;;  %v7518_v10 = vld [vmem:[#allocation5 + $0x270] ss:$8 sps:$4 sm:$0xff]   ;;  %v7522_v34 = vld [vmem:[#allocation5 + $0x164] ss:$8 sps:$4 sm:$0xff]  }
 0x50c   :  { %v2783_v11 = vadd.f32 %v2782_v39, %v2781_v41  ;;  %v2797_v3 = vadd.f32 %v2796_v52, %v2795_v19  ;;  %v2811_v23 = vadd.f32 %v2810_v44, %v2809_v58  ;;  %v2825_v53 = vadd.f32 %v2824_v27, %v2823_v48  ;;  %v7520_v62 = vld [vmem:[#allocation5 + $0x274] ss:$8 sps:$4 sm:$0xff]   ;;  %3578 = vmatprep.subr.bf16.mxu0 %v7516_v1  ;;  %v7525_v41 = vld [vmem:[#allocation5 + $0x264] ss:$8 sps:$4 sm:$0xff]   ;;  %v7529_v19 = vld [vmem:[#allocation5 + $0x160] ss:$8 sps:$4 sm:$0xff]  }
 0x50d   :  { %v2775_v37 = vrot.slane %v2774_v61, 2  ;;  %v2789_v60 = vrot.slane %v2788_v20, 2  ;;  %v2803_v6 = vrot.slane %v2802_v38, 2  ;;  %v2817_v17 = vrot.slane %v2816_v5, 2  ;;  %3619 = vmatprep.subr.bf16.mxu1 %v7520_v62  ;;  %3579 = vmatpush1.bf16.msra.mxu0 %v7514_v33  ;;  %v7533_v58 = vld [vmem:[#allocation5 + $0x260] ss:$8 sps:$4 sm:$0xff]  }
 0x50e   :  { %v2784_v43 = vrot.slane %v2783_v11, 1  ;;  %v2798_v0 = vrot.slane %v2797_v3, 1  ;;  %v2812_v16 = vrot.slane %v2811_v23, 1  ;;  %v2826_v46 = vrot.slane %v2825_v53, 1  ;;  %3580 = vmatprep.subr.bf16.mxu0 %v7522_v34  ;;  %v7535_v48 = vld [vmem:[#allocation5 + $0x154] ss:$8 sps:$4 sm:$0xff]  }
 0x50f   :  { %v2776_v15 = vadd.f32 %v2775_v37, %v2774_v61  ;;  %v2790_v25 = vadd.f32 %v2789_v60, %v2788_v20  ;;  %v2804_v42 = vadd.f32 %v2803_v6, %v2802_v38  ;;  %v2818_v7 = vadd.f32 %v2817_v17, %v2816_v5  ;;  %v7538_v45 = vld [vmem:[#allocation5 + $0x254] ss:$8 sps:$4 sm:$0xff]   ;;  %v7541_v40 = vld [vmem:[#allocation5 + $0x150] ss:$8 sps:$4 sm:$0xff]   ;;  %v7547_v56 = vld [vmem:[#allocation5 + $0x144] ss:$8 sps:$4 sm:$0xff]  }
 0x510   :  { %v2785_v21 = vadd.f32 %v2784_v43, %v2783_v11  ;;  %v2799_v24 = vadd.f32 %v2798_v0, %v2797_v3  ;;  %v2813_v12 = vadd.f32 %v2812_v16, %v2811_v23  ;;  %v2827_v51 = vadd.f32 %v2826_v46, %v2825_v53  ;;  %v7545_v49 = vld [vmem:[#allocation5 + $0x250] ss:$8 sps:$4 sm:$0xff]   ;;  %v7550_v39 = vld [vmem:[#allocation5 + $0x244] ss:$8 sps:$4 sm:$0xff]   ;;  %v7553_v52 = vld [vmem:[#allocation5 + $0x140] ss:$8 sps:$4 sm:$0xff]  }
 0x511   :  { %v2777_v26 = vrot.slane %v2776_v15, 1  ;;  %v2791_v22 = vrot.slane %v2790_v25, 1  ;;  %v2805_v47 = vrot.slane %v2804_v42, 1  ;;  %v2819_v63 = vrot.slane %v2818_v7, 1  ;;  %3581 = vmatpush1.bf16.msra.mxu0 %v7529_v19  ;;  %v7557_v44 = vld [vmem:[#allocation5 + $0x240] ss:$8 sps:$4 sm:$0xff]  }
 0x512   :  { %v2829_v14 = vadd.f32 %v2799_v24, %v2785_v21  ;;  %3582 = vmatprep.subr.bf16.mxu0 %v7535_v48  ;;  %v7559_v27 = vld [vmem:[#allocation5 + $0x134] ss:$8 sps:$4 sm:$0xff]   ;;  %v7565_v20 = vld [vmem:[#allocation5 + $0x130] ss:$8 sps:$4 sm:$0xff]   ;;  %v7571_v5 = vld [vmem:[#allocation5 + $0x124] ss:$8 sps:$4 sm:$0xff]  }
 0x513   :  { %v2778_v57 = vadd.f32 %v2777_v26, %v2776_v15  ;;  %v2792_v8 = vadd.f32 %v2791_v22, %v2790_v25  ;;  %v2806_v2 = vadd.f32 %v2805_v47, %v2804_v42  ;;  %v2820_v59 = vadd.f32 %v2819_v63, %v2818_v7  ;;  %v7562_v61 = vld [vmem:[#allocation5 + $0x234] ss:$8 sps:$4 sm:$0xff]   ;;  %v7569_v38 = vld [vmem:[#allocation5 + $0x230] ss:$8 sps:$4 sm:$0xff]   ;;  %v7574_v11 = vld [vmem:[#allocation5 + $0x224] ss:$8 sps:$4 sm:$0xff]  }
 0x514   :  { %v2831_v55 = vadd.f32 %v2829_v14, %v2813_v12  ;;  %v7577_v3 = vld [vmem:[#allocation5 + $0x120] ss:$8 sps:$4 sm:$0xff]   ;;  %v7583_v53 = vld [vmem:[#allocation5 + $0x114] ss:$8 sps:$4 sm:$0xff]   ;;  %v7589_v60 = vld [vmem:[#allocation5 + $0x110] ss:$8 sps:$4 sm:$0xff]  }
 0x515   :  { %v2828_v18 = vadd.f32 %v2792_v8, %v2778_v57  ;;  %3583 = vmatpush1.bf16.msra.mxu0 %v7541_v40  ;;  %v7581_v23 = vld [vmem:[#allocation5 + $0x220] ss:$8 sps:$4 sm:$0xff]   ;;  %v7586_v37 = vld [vmem:[#allocation5 + $0x214] ss:$8 sps:$4 sm:$0xff]   ;;  %v7593_v6 = vld [vmem:[#allocation5 + $0x210] ss:$8 sps:$4 sm:$0xff]  }
 0x516   :  { %v2833_v28 = vadd.f32 %v2831_v55, %v2827_v51  ;;  %3584 = vmatprep.subr.bf16.mxu0 %v7547_v56  ;;  %v7595_v17 = vld [vmem:[#allocation5 + $0x104] ss:$8 sps:$4 sm:$0xff]   ;;  %v7601_v0 = vld [vmem:[#allocation5 + $0x100] ss:$8 sps:$4 sm:$0xff]   ;;  %v7607_v15 = vld [vmem:[#allocation5 + $0x1f4] ss:$8 sps:$4 sm:$0xff]  }
 0x517   :  { %v2830_v30 = vadd.f32 %v2828_v18, %v2806_v2  ;;  %v7598_v43 = vld [vmem:[#allocation5 + $0x204] ss:$8 sps:$4 sm:$0xff]   ;;  %v7605_v16 = vld [vmem:[#allocation5 + $0x200] ss:$8 sps:$4 sm:$0xff]   ;;  %v7610_v25 = vld [vmem:[#allocation5 + $0x2f4] ss:$8 sps:$4 sm:$0xff]  }
 0x518   :  { %2898 = vmatprep.mubr.f32.mxu1 %v2833_v28  ;;  %v7613_v42 = vld [vmem:[#allocation5 + $0x1f0] ss:$8 sps:$4 sm:$0xff]   ;;  %v7619_v21 = vld [vmem:[#allocation5 + $0x1e4] ss:$8 sps:$4 sm:$0xff]   ;;  %v7625_v46 = vld [vmem:[#allocation5 + $0x1e0] ss:$8 sps:$4 sm:$0xff]  }
 0x519   :  { %v2832_v54 = vadd.f32 %v2830_v30, %v2820_v59  ;;  %3585 = vmatpush1.bf16.msra.mxu0 %v7553_v52  ;;  %v7617_v7 = vld [vmem:[#allocation5 + $0x2f0] ss:$8 sps:$4 sm:$0xff]   ;;  %v7622_v24 = vld [vmem:[#allocation5 + $0x2e4] ss:$8 sps:$4 sm:$0xff]   ;;  %v7629_v26 = vld [vmem:[#allocation5 + $0x2e0] ss:$8 sps:$4 sm:$0xff]  }
 0x51a   :  { %3586 = vmatprep.subr.bf16.mxu0 %v7559_v27  ;;  %8361 = vst [vmem:[#allocation19_spill] sm:$0xff] %v7629_v26  ;;  %v7631_v22 = vld [vmem:[#allocation5 + $0x1d4] ss:$8 sps:$4 sm:$0xff]   ;;  %v7637_v12 = vld [vmem:[#allocation5 + $0x1d0] ss:$8 sps:$4 sm:$0xff]  }
 0x51b   :  { %2899 = vmatmul.mubr.f32.vlgmr.msra.gmra.mxu1 %v2832_v54  ;;  %8362 = vst [vmem:[#allocation20_spill] sm:$0xff] %v7631_v22  ;;  %v7634_v47 = vld [vmem:[#allocation5 + $0x2d4] ss:$8 sps:$4 sm:$0xff]   ;;  %8364 = vst [vmem:[#allocation22_spill] sm:$0xff] %v7637_v12  ;;  %v7641_v14 = vld [vmem:[#allocation5 + $0x2d0] ss:$8 sps:$4 sm:$0xff]  }
 0x51c   :  { %3620 = vmatpush1.bf16.msra.mxu1 %v7518_v10  ;;  %8363 = vst [vmem:[#allocation21_spill] sm:$0xff] %v7634_v47  ;;  %8365 = vst [vmem:[#allocation25_spill] sm:$0xff] %v7641_v14  ;;  %v7643_v57 = vld [vmem:[#allocation5 + $0x1c4] ss:$8 sps:$4 sm:$0xff]   ;;  %v7649_v63 = vld [vmem:[#allocation5 + $0x1c0] ss:$8 sps:$4 sm:$0xff]  }
 0x51d   :  { %3621 = vmatprep.subr.bf16.mxu1 %v7525_v41  ;;  %3587 = vmatpush1.bf16.msra.mxu0 %v7565_v20  ;;  %8366 = vst [vmem:[#allocation26_spill] sm:$0xff] %v7643_v57  ;;  %v7646_v8 = vld [vmem:[#allocation5 + $0x2c4] ss:$8 sps:$4 sm:$0xff]   ;;  %8368 = vst [vmem:[#allocation29_spill] sm:$0xff] %v7649_v63  ;;  %v7653_v51 = vld [vmem:[#allocation5 + $0x2c0] ss:$8 sps:$4 sm:$0xff]  }
 0x51e   :  { %3588 = vmatprep.subr.bf16.mxu0 %v7571_v5  ;;  %8367 = vst [vmem:[#allocation28_spill] sm:$0xff] %v7646_v8  ;;  %8369 = vst [vmem:[#allocation30_spill] sm:$0xff] %v7653_v51  ;;  %v7655_v55 = vld [vmem:[#allocation5 + $0x1b4] ss:$8 sps:$4 sm:$0xff]   ;;  %v7661_v18 = vld [vmem:[#allocation5 + $0x1b0] ss:$8 sps:$4 sm:$0xff]  }
 0x51f   :  { %8370 = vst [vmem:[#allocation31_spill] sm:$0xff] %v7655_v55  ;;  %v7658_v2 = vld [vmem:[#allocation5 + $0x2b4] ss:$8 sps:$4 sm:$0xff]   ;;  %8372 = vst [vmem:[#allocation79_spill] sm:$0xff] %v7661_v18  ;;  %v7665_v28 = vld [vmem:[#allocation5 + $0x2b0] ss:$8 sps:$4 sm:$0xff]  }
 0x520   :  { %3622 = vmatpush1.bf16.msra.mxu1 %v7533_v58  ;;  %8371 = vst [vmem:[#allocation53_spill] sm:$0xff] %v7658_v2  ;;  %8373 = vst [vmem:[#allocation54_spill] sm:$0xff] %v7665_v28 }
 0x521   :  { %3623 = vmatprep.subr.bf16.mxu1 %v7538_v45  ;;  %3589 = vmatpush1.bf16.msra.mxu0 %v7577_v3 }
 0x522   :  { %3590 = vmatprep.subr.bf16.mxu0 %v7583_v53 }
 0x524   :  { %3624 = vmatpush1.bf16.msra.mxu1 %v7545_v49 }
 0x525   :  { %3625 = vmatprep.subr.bf16.mxu1 %v7550_v39  ;;  %3591 = vmatpush1.bf16.msra.mxu0 %v7589_v60 }
 0x526   :  { %3592 = vmatprep.subr.bf16.mxu0 %v7595_v17 }
 0x528   :  { %3626 = vmatpush1.bf16.msra.mxu1 %v7557_v44 }
 0x529   :  { %3627 = vmatprep.subr.bf16.mxu1 %v7562_v61  ;;  %3593 = vmatpush1.bf16.msra.mxu0 %v7601_v0 }
 0x52a   :  { %3594 = vmatprep.subr.bf16.mxu0 %v7607_v15 }
 0x52c   :  { %3628 = vmatpush1.bf16.msra.mxu1 %v7569_v38 }
 0x52d   :  { %3629 = vmatprep.subr.bf16.mxu1 %v7574_v11  ;;  %3595 = vmatpush2.bf16.msra.mxu0 %v7613_v42 }
 0x52e   :  { %3596 = vmatprep.subr.bf16.mxu0 %v7619_v21 }
 0x530   :  { %3630 = vmatpush1.bf16.msra.mxu1 %v7581_v23 }
 0x531   :  { %3631 = vmatprep.subr.bf16.mxu1 %v7586_v37  ;;  %3597 = vmatpush2.bf16.msra.mxu0 %v7625_v46 }
 0x532   :  { %3598 = vmatprep.subr.bf16.mxu0 %v7631_v22 }
 0x534   :  { %3632 = vmatpush1.bf16.msra.mxu1 %v7593_v6 }
 0x535   :  { %3633 = vmatprep.subr.bf16.mxu1 %v7598_v43  ;;  %3599 = vmatpush2.bf16.msra.mxu0 %v7637_v12 }
 0x536   :  { %3600 = vmatprep.subr.bf16.mxu0 %v7643_v57 }
 0x538   :  { %3634 = vmatpush1.bf16.msra.mxu1 %v7605_v16 }
 0x539   :  { %3635 = vmatprep.subr.bf16.mxu1 %v7610_v25  ;;  %3601 = vmatpush2.bf16.msra.mxu0 %v7649_v63  ;;  %v7670_v63 = vld [vmem:[#allocation5 + $0x1a4] ss:$8 sps:$4 sm:$0xff]  }
 0x53a   :  { %3602 = vmatprep.subr.bf16.mxu0 %v7655_v55  ;;  %8374 = vst [vmem:[#allocation80_spill] sm:$0xff] %v7670_v63  ;;  %v7676_v55 = vld [vmem:[#allocation5 + $0x2a0] ss:$8 sps:$4 sm:$0xff]  }
 0x53b   :  { %8377 = vst [vmem:[#allocation82_spill] sm:$0xff] %v7676_v55 }
 0x53c   :  { %3636 = vmatpush2.bf16.msra.mxu1 %v7617_v7 }
 0x53d   :  { %3637 = vmatprep.subr.bf16.mxu1 %v7622_v24  ;;  %3603 = vmatpush2.bf16.msra.mxu0 %v7661_v18  ;;  %v7680_v18 = vld [vmem:[#allocation5 + $0x194] ss:$8 sps:$4 sm:$0xff]  }
 0x53e   :  { %3604 = vmatprep.subr.bf16.mxu0 %v7670_v63  ;;  %8378 = vst [vmem:[#allocation12_spill] sm:$0xff] %v7680_v18 }
 0x540   :  { %3638 = vmatpush2.bf16.msra.mxu1 %v7629_v26  ;;  %v6134_v26 = vld [vmem:[#allocation5 + $0x64] ss:$8 sps:$4 sm:$0xff]  }
 0x541   :  { %3639 = vmatprep.subr.bf16.mxu1 %v7634_v47 }
 0x544   :  { %3640 = vmatpush2.bf16.msra.mxu1 %v7641_v14  ;;  %v7672_v14 = vld [vmem:[#allocation5 + $0x2a4] ss:$8 sps:$4 sm:$0xff]  }
 0x545   :  { %3641 = vmatprep.subr.bf16.mxu1 %v7646_v8  ;;  %8375 = vst [vmem:[#allocation81_spill] sm:$0xff] %v7672_v14 }
 0x548   :  { %3642 = vmatpush2.bf16.msra.mxu1 %v7653_v51  ;;  %v7674_v51 = vld [vmem:[#allocation5 + $0x1a0] ss:$8 sps:$4 sm:$0xff]  }
 0x549   :  { %3643 = vmatprep.subr.bf16.mxu1 %v7658_v2  ;;  %8376 = vst [vmem:[#allocation55_spill] sm:$0xff] %v7674_v51  ;;  %3605 = vmatpush2.bf16.msra.mxu0 %v7674_v51  ;;  %v2905_v51 = vld [vmem:[%s7985_s5] sm:$0x1] }
 0x54a   :  { %3606 = vmatprep.subr.bf16.mxu0 %v7680_v18 }
 0x54c   :  { %3644 = vmatpush2.bf16.msra.mxu1 %v7665_v28  ;;  %v6125_v28 = vld [vmem:[#allocation5 + $0x374] ss:$8 sps:$4 sm:$0xff]  }
 0x54d   :  { %3645 = vmatprep.subr.bf16.mxu1 %v7672_v14  ;;  %v7703_v14 = vld [vmem:[#allocation5 + $0x280] ss:$8 sps:$4 sm:$0xff]  }
 0x54e   :  { %8385 = vst [vmem:[#allocation16_spill] sm:$0xff] %v7703_v14 }
 0x550   :  { %3646 = vmatpush2.bf16.msra.mxu1 %v7676_v55  ;;  %v7701_v55 = vld [vmem:[#allocation5 + $0x180] ss:$8 sps:$4 sm:$0xff]  }
 0x551   :  { %8384 = vst [vmem:[#allocation85_spill] sm:$0xff] %v7701_v55 }
 0x5db   :  { %v5596_v59 = vpop.f32.mrf.mxu1 }
 0x5dd   :  { %v5597_v30 = vpop.f32.mrf.mxu1 }
 0x5de   :  { %v5598_v54 = vadd.f32 %v5597_v30, %v5596_v59  ;;  %v7688_v59 = vld [vmem:[#allocation5 + $0x294] ss:$8 sps:$4 sm:$0xff]   ;;  %v7691_v30 = vld [vmem:[#allocation5 + $0x184] ss:$8 sps:$4 sm:$0xff]  }
 0x5df   :  { %8381 = vst [vmem:[#allocation14_spill] sm:$0xff] %v7688_v59  ;;  %8382 = vst [vmem:[#allocation84_spill] sm:$0xff] %v7691_v30  ;;  %3647 = vmatprep.subr.bf16.mxu1 %v7688_v59 }
 0x5e0   :  { %v2904_v8 = vmul.f32 0.03125, %v5598_v54  ;;  %v7693_v54 = vld [vmem:[#allocation5 + $0x284] ss:$8 sps:$4 sm:$0xff]  }
 0x5e1   :  { %8383 = vst [vmem:[#allocation15_spill] sm:$0xff] %v7693_v54 }
 0x5e2   :  { %v2906_v57 = vadd.f32 1e-05, %v2904_v8  ;;  %v7684_v8 = vld [vmem:[#allocation5 + $0x190] ss:$8 sps:$4 sm:$0xff]  }
 0x5e3   :  { %8379 = vst [vmem:[#allocation83_spill] sm:$0xff] %v7684_v8  ;;  %3607 = vmatpush2.bf16.msra.mxu0 %v7684_v8  ;;  %v6128_v8 = vld [vmem:[#allocation5 + $0x74] ss:$8 sps:$4 sm:$0xff]  }
 0x5e4   :  { %6251 = vrsqrt.f32 %v2906_v57  ;;  %v7686_v57 = vld [vmem:[#allocation5 + $0x290] ss:$8 sps:$4 sm:$0xff]   ;;  %3608 = vmatprep.subr.bf16.mxu0 %v7691_v30  ;;  %v2930_v30 = vld [vmem:[%s7986_s6] sm:$0x3] }
 0x5e5   :  { %8380 = vst [vmem:[#allocation13_spill] sm:$0xff] %v7686_v57  ;;  %3648 = vmatpush2.bf16.msra.mxu1 %v7686_v57  ;;  %v8386_v57 = vld [vmem:[#allocation42_spill] sm:$0xff] }
 0x5e6   :  { %3649 = vmatprep.subr.bf16.mxu1 %v7693_v54  ;;  %v2935_v54 = vrot.slane %v2930_v30, %v8360_v29 }
 0x5e7   :  { %3609 = vmatpush2.bf16.msra.mxu0 %v7701_v55 }
 0x5e8   :  { %3660 = vmatprep.subr.bf16.mxu0 %v6125_v28  ;;  %v2945_v12 = vrot.slane %v2935_v54, %v8360_v29 }
 0x5e9   :  { %3650 = vmatpush2.bf16.msra.mxu1 %v7703_v14 }
 0x5ea   :  { %4277 = vmatprep.subr.bf16.mxu1 %v6128_v8 }
 0x5f1   :  { %v6252_v18 = vpop.eup %6251 }
 0x5f2   :  { %v2908_v63 = vmul.f32 %v6252_v18, %v2905_v51  ;;  %v2939_v51 = vrot.slane %v2930_v30, %v8386_v57 }
 0x5f4   :  { %v2913_v59 = vrot.slane %v2908_v63, %v8360_v29  ;;  %v2949_v2 = vrot.slane %v2939_v51, %v8360_v29 }
 0x5f6   :  { %2914 = vrot.lane.b32.xlu1 %v2913_v59, %s6364_s8 }
 0x668   :  { %v2915_v18 = vpop.permute.xlu1 %2914 }
 0x669   :  { %v2917_v55 = vsel %vm216_vm1, %v2908_v63, %v2915_v18 }
 0x66a   :  { %v2921_v14 = vrot.slane %v2917_v55, %v8360_v29 }
 0x66c   :  { %v2923_v28 = vmul.f32 %v2921_v14, %v7469_v9  ;;  %v2925_v8 = vmul.f32 %v2921_v14, %v7472_v50  ;;  %v2922_v59 = vmul.f32 %v2921_v14, %v7480_v32  ;;  %v2924_v47 = vmul.f32 %v2921_v14, %v7483_v4 }
 0x66d   :  { %v2927_v22 = vmul.f32 %v2921_v14, %v7475_v36  ;;  %v2926_v30 = vmul.f32 %v2921_v14, %v7486_v35  ;;  %v2929_v63 = vmul.f32 %v2921_v14, %v7477_v13  ;;  %v2928_v55 = vmul.f32 %v2921_v14, %v7488_v31 }
 0x66e   :  { %v2951_v18 = vadd.f32 %v2949_v2, %v2923_v28  ;;  %v2953_v51 = vadd.f32 %v2949_v2, %v2925_v8  ;;  %v2950_v57 = vadd.f32 %v2945_v12, %v2922_v59  ;;  %v2952_v54 = vadd.f32 %v2945_v12, %v2924_v47  ;;  %v6123_v8 = vld [vmem:[#allocation5 + $0x370] ss:$8 sps:$4 sm:$0xff]  }
 0x66f   :  { %v2955_v29 = vadd.f32 %v2949_v2, %v2927_v22  ;;  %v7728_v9 = vadd.f32 %v2945_v12, %v2926_v30  ;;  %v7730_v50 = vadd.f32 %v2949_v2, %v2929_v63  ;;  %v7732_v32 = vadd.f32 %v2945_v12, %v2928_v55  ;;  %v6126_v59 = vld [vmem:[#allocation5 + $0x70] ss:$8 sps:$4 sm:$0xff]  }
 0x670   :  { %vm2959_vm1 = vcmp.ge.f32.partialorder %v2951_v18, 0.0  ;;  %v2967_v4 = vmul.f32 0.2, %v2951_v18  ;;  %vm2961_vm5 = vcmp.ge.f32.partialorder %v2953_v51, 0.0  ;;  %v2969_v36 = vmul.f32 0.2, %v2953_v51 }
 0x671   :  { %8387 = vst [vmem:[#allocation17_spill] sm:$0xff] %v7732_v32  ;;  %vm2958_vm6 = vcmp.ge.f32.partialorder %v2950_v57, 0.0  ;;  %v2966_v35 = vmul.f32 0.2, %v2950_v57  ;;  %vm2960_vm7 = vcmp.ge.f32.partialorder %v2952_v54, 0.0  ;;  %vm2963_vm8 = vcmp.ge.f32.partialorder %v2955_v29, 0.0 }
 0x672   :  { %v2968_v13 = vmul.f32 0.2, %v2952_v54  ;;  %v2975_v31 = vsel %vm2959_vm1, %v2951_v18, %v2967_v4  ;;  %v2977_v14 = vsel %vm2961_vm5, %v2953_v51, %v2969_v36  ;;  %v2971_v28 = vmul.f32 0.2, %v2955_v29  ;;  %v6131_v32 = vld [vmem:[#allocation5 + $0x364] ss:$8 sps:$4 sm:$0xff]  }
 0x673   :  { %v2983_v47 = vpack.c.bf16 %v2975_v31, %v2975_v31  ;;  %v2985_v22 = vpack.c.bf16 %v2977_v14, %v2977_v14  ;;  %v2974_v2 = vsel %vm2958_vm6, %v2950_v57, %v2966_v35  ;;  %v6129_v51 = vld [vmem:[#allocation5 + $0x360] ss:$8 sps:$4 sm:$0xff]   ;;  %v6137_v57 = vld [vmem:[#allocation5 + $0x354] ss:$8 sps:$4 sm:$0xff]   ;;  %v6138_v36 = vld [vmem:[#allocation5 + $0x50] ss:$8 sps:$4 sm:$0xff]  }
 0x674   :  { %v2976_v30 = vsel %vm2960_vm7, %v2952_v54, %v2968_v13  ;;  %v2982_v12 = vpack.c.bf16 %v2974_v2, %v2974_v2  ;;  %v2979_v55 = vsel %vm2963_vm8, %v2955_v29, %v2971_v28  ;;  %v6132_v4 = vld [vmem:[#allocation5 + $0x60] ss:$8 sps:$4 sm:$0xff]   ;;  %v6140_v54 = vld [vmem:[#allocation5 + $0x54] ss:$8 sps:$4 sm:$0xff]   ;;  %v6135_v29 = vld [vmem:[#allocation5 + $0x350] ss:$8 sps:$4 sm:$0xff]  }
 0x675   :  { %v7734_v63 = vpack.c.bf16 %v2976_v30, %v2976_v30  ;;  %3610 = vmatprep.mubr.bf16.mxu0 %v2983_v47  ;;  %3651 = vmatprep.mubr.bf16.mxu1 %v2985_v22  ;;  %v7737_v18 = vpack.c.bf16 %v2979_v55, %v2979_v55  ;;  %v6143_v35 = vld [vmem:[#allocation5 + $0x344] ss:$8 sps:$4 sm:$0xff]   ;;  %v6141_v31 = vld [vmem:[#allocation5 + $0x340] ss:$8 sps:$4 sm:$0xff]   ;;  %v6149_v28 = vld [vmem:[#allocation5 + $0x334] ss:$8 sps:$4 sm:$0xff]  }
 0x676   :  { %3611 = vmatmul.mubr.bf16.vlgmr.msra.gmra.mxu0 %v2982_v12  ;;  %v6146_v13 = vld [vmem:[#allocation5 + $0x44] ss:$8 sps:$4 sm:$0xff]   ;;  %v6144_v14 = vld [vmem:[#allocation5 + $0x40] ss:$8 sps:$4 sm:$0xff]   ;;  %v6152_v47 = vld [vmem:[#allocation5 + $0x34] ss:$8 sps:$4 sm:$0xff]  }
 0x677   :  { %3652 = vmatmul.mubr.bf16.vlgmr.msra.gmra.mxu1 %v7734_v63  ;;  %3661 = vmatpush1.bf16.msra.mxu0 %v6123_v8  ;;  %v6158_v8 = vld [vmem:[#allocation5 + $0x24] ss:$8 sps:$4 sm:$0xff]   ;;  %v6156_v2 = vld [vmem:[#allocation5 + $0x20] ss:$8 sps:$4 sm:$0xff]   ;;  %v6161_v30 = vld [vmem:[#allocation5 + $0x314] ss:$8 sps:$4 sm:$0xff]  }
 0x678   :  { %4278 = vmatpush1.bf16.msra.mxu1 %v6126_v59  ;;  %3692 = vmatprep.mubr.bf16.mxu0 %v7737_v18  ;;  %v6153_v59 = vld [vmem:[#allocation5 + $0x320] ss:$8 sps:$4 sm:$0xff]   ;;  %v6164_v12 = vld [vmem:[#allocation5 + $0x14] ss:$8 sps:$4 sm:$0xff]   ;;  %v6159_v55 = vld [vmem:[#allocation5 + $0x310] ss:$8 sps:$4 sm:$0xff]  }
 0x679   :  { %4309 = vmatprep.mubr.bf16.mxu1 %v2985_v22  ;;  %3662 = vmatprep.subr.bf16.mxu0 %v6131_v32  ;;  %v6147_v32 = vld [vmem:[#allocation5 + $0x330] ss:$8 sps:$4 sm:$0xff]   ;;  %v6155_v22 = vld [vmem:[#allocation5 + $0x324] ss:$8 sps:$4 sm:$0xff]   ;;  %vm2962_vm9 = vcmp.ge.f32.partialorder %v7728_v9, 0.0  ;;  %vm2965_vm10 = vcmp.ge.f32.partialorder %v7730_v50, 0.0 }
 0x67a   :  { %4279 = vmatprep.subr.bf16.mxu1 %v6134_v26  ;;  %v6150_v26 = vld [vmem:[#allocation5 + $0x30] ss:$8 sps:$4 sm:$0xff]  }
 0x67b   :  { %3663 = vmatpush1.bf16.msra.mxu0 %v6129_v51  ;;  %v6162_v51 = vld [vmem:[#allocation5 + $0x10] ss:$8 sps:$4 sm:$0xff]  }
 0x67c   :  { %4280 = vmatpush1.bf16.msra.mxu1 %v6132_v4  ;;  %3664 = vmatprep.subr.bf16.mxu0 %v6137_v57  ;;  %v6167_v4 = vld [vmem:[#allocation5 + $0x304] ss:$8 sps:$4 sm:$0xff]  }
 0x67d   :  { %4281 = vmatprep.subr.bf16.mxu1 %v6140_v54  ;;  %v6170_v57 = vld [vmem:[#allocation5 + $0x4] ss:$8 sps:$4 sm:$0xff]   ;;  %v6165_v54 = vld [vmem:[#allocation5 + $0x300] ss:$8 sps:$4 sm:$0xff]  }
 0x67f   :  { %3665 = vmatpush1.bf16.msra.mxu0 %v6135_v29  ;;  %v6168_v29 = vld [vmem:[#allocation5] ss:$8 sps:$4 sm:$0xff]  }
 0x680   :  { %4282 = vmatpush1.bf16.msra.mxu1 %v6138_v36  ;;  %3666 = vmatprep.subr.bf16.mxu0 %v6143_v35  ;;  %v6173_v36 = vld [vmem:[#allocation5 + $0x3f4] ss:$8 sps:$4 sm:$0xff]  }
 0x681   :  { %4283 = vmatprep.subr.bf16.mxu1 %v6146_v13  ;;  %v6176_v35 = vld [vmem:[#allocation5 + $0xf4] ss:$8 sps:$4 sm:$0xff]   ;;  %v6171_v13 = vld [vmem:[#allocation5 + $0x3f0] ss:$8 sps:$4 sm:$0xff]  }
 0x683   :  { %3667 = vmatpush1.bf16.msra.mxu0 %v6141_v31  ;;  %v6174_v31 = vld [vmem:[#allocation5 + $0xf0] ss:$8 sps:$4 sm:$0xff]  }
 0x684   :  { %4284 = vmatpush1.bf16.msra.mxu1 %v6144_v14  ;;  %3668 = vmatprep.subr.bf16.mxu0 %v6149_v28  ;;  %v6179_v14 = vld [vmem:[#allocation5 + $0x3e4] ss:$8 sps:$4 sm:$0xff]  }
 0x685   :  { %4285 = vmatprep.subr.bf16.mxu1 %v6152_v47  ;;  %v6182_v28 = vld [vmem:[#allocation5 + $0xe4] ss:$8 sps:$4 sm:$0xff]   ;;  %v6177_v47 = vld [vmem:[#allocation5 + $0x3e0] ss:$8 sps:$4 sm:$0xff]  }
 0x687   :  { %3669 = vmatpush1.bf16.msra.mxu0 %v6147_v32  ;;  %v6180_v32 = vld [vmem:[#allocation5 + $0xe0] ss:$8 sps:$4 sm:$0xff]  }
 0x688   :  { %4286 = vmatpush1.bf16.msra.mxu1 %v6150_v26  ;;  %3670 = vmatprep.subr.bf16.mxu0 %v6155_v22  ;;  %v6185_v26 = vld [vmem:[#allocation5 + $0x3d4] ss:$8 sps:$4 sm:$0xff]  }
 0x689   :  { %4287 = vmatprep.subr.bf16.mxu1 %v6158_v8  ;;  %v6188_v22 = vld [vmem:[#allocation5 + $0xd4] ss:$8 sps:$4 sm:$0xff]   ;;  %v6183_v8 = vld [vmem:[#allocation5 + $0x3d0] ss:$8 sps:$4 sm:$0xff]  }
 0x68b   :  { %3671 = vmatpush1.bf16.msra.mxu0 %v6153_v59  ;;  %v6186_v59 = vld [vmem:[#allocation5 + $0xd0] ss:$8 sps:$4 sm:$0xff]  }
 0x68c   :  { %4288 = vmatpush1.bf16.msra.mxu1 %v6156_v2  ;;  %3672 = vmatprep.subr.bf16.mxu0 %v6161_v30  ;;  %v6191_v2 = vld [vmem:[#allocation5 + $0x3c4] ss:$8 sps:$4 sm:$0xff]  }
 0x68d   :  { %4289 = vmatprep.subr.bf16.mxu1 %v6164_v12  ;;  %v6194_v30 = vld [vmem:[#allocation5 + $0xc4] ss:$8 sps:$4 sm:$0xff]   ;;  %v6189_v12 = vld [vmem:[#allocation5 + $0x3c0] ss:$8 sps:$4 sm:$0xff]  }
 0x68f   :  { %3673 = vmatpush1.bf16.msra.mxu0 %v6159_v55  ;;  %v6192_v55 = vld [vmem:[#allocation5 + $0xc0] ss:$8 sps:$4 sm:$0xff]  }
 0x690   :  { %4290 = vmatpush1.bf16.msra.mxu1 %v6162_v51  ;;  %3674 = vmatprep.subr.bf16.mxu0 %v6167_v4  ;;  %v6197_v51 = vld [vmem:[#allocation5 + $0x3b4] ss:$8 sps:$4 sm:$0xff]  }
 0x691   :  { %4291 = vmatprep.subr.bf16.mxu1 %v6170_v57  ;;  %v6200_v4 = vld [vmem:[#allocation5 + $0xb4] ss:$8 sps:$4 sm:$0xff]   ;;  %v6195_v57 = vld [vmem:[#allocation5 + $0x3b0] ss:$8 sps:$4 sm:$0xff]  }
 0x693   :  { %3675 = vmatpush1.bf16.msra.mxu0 %v6165_v54  ;;  %v6198_v54 = vld [vmem:[#allocation5 + $0xb0] ss:$8 sps:$4 sm:$0xff]  }
 0x694   :  { %4292 = vmatpush1.bf16.msra.mxu1 %v6168_v29  ;;  %3676 = vmatprep.subr.bf16.mxu0 %v6173_v36  ;;  %v6203_v29 = vld [vmem:[#allocation5 + $0x3a4] ss:$8 sps:$4 sm:$0xff]  }
 0x695   :  { %4293 = vmatprep.subr.bf16.mxu1 %v6176_v35  ;;  %v6206_v36 = vld [vmem:[#allocation5 + $0xa4] ss:$8 sps:$4 sm:$0xff]   ;;  %v6201_v35 = vld [vmem:[#allocation5 + $0x3a0] ss:$8 sps:$4 sm:$0xff]  }
 0x697   :  { %3677 = vmatpush2.bf16.msra.mxu0 %v6171_v13  ;;  %v6204_v13 = vld [vmem:[#allocation5 + $0xa0] ss:$8 sps:$4 sm:$0xff]  }
 0x698   :  { %4294 = vmatpush2.bf16.msra.mxu1 %v6174_v31  ;;  %3678 = vmatprep.subr.bf16.mxu0 %v6179_v14  ;;  %v6209_v31 = vld [vmem:[#allocation5 + $0x394] ss:$8 sps:$4 sm:$0xff]  }
 0x699   :  { %4295 = vmatprep.subr.bf16.mxu1 %v6182_v28  ;;  %v6212_v14 = vld [vmem:[#allocation5 + $0x94] ss:$8 sps:$4 sm:$0xff]   ;;  %v6207_v28 = vld [vmem:[#allocation5 + $0x390] ss:$8 sps:$4 sm:$0xff]  }
 0x69b   :  { %3679 = vmatpush2.bf16.msra.mxu0 %v6177_v47  ;;  %v6210_v47 = vld [vmem:[#allocation5 + $0x90] ss:$8 sps:$4 sm:$0xff]  }
 0x69c   :  { %4296 = vmatpush2.bf16.msra.mxu1 %v6180_v32  ;;  %3680 = vmatprep.subr.bf16.mxu0 %v6185_v26  ;;  %v6215_v32 = vld [vmem:[#allocation5 + $0x384] ss:$8 sps:$4 sm:$0xff]  }
 0x69d   :  { %4297 = vmatprep.subr.bf16.mxu1 %v6188_v22  ;;  %v6218_v26 = vld [vmem:[#allocation5 + $0x84] ss:$8 sps:$4 sm:$0xff]   ;;  %v2970_v22 = vmul.f32 0.2, %v7728_v9 }
 0x69f   :  { %3681 = vmatpush2.bf16.msra.mxu0 %v6183_v8  ;;  %v6213_v8 = vld [vmem:[#allocation5 + $0x380] ss:$8 sps:$4 sm:$0xff]  }
 0x6a0   :  { %4298 = vmatpush2.bf16.msra.mxu1 %v6186_v59  ;;  %3682 = vmatprep.subr.bf16.mxu0 %v6191_v2  ;;  %v6216_v59 = vld [vmem:[#allocation5 + $0x80] ss:$8 sps:$4 sm:$0xff]   ;;  %v2973_v2 = vmul.f32 0.2, %v7730_v50 }
 0x6a1   :  { %4299 = vmatprep.subr.bf16.mxu1 %v6194_v30  ;;  %v2978_v30 = vsel %vm2962_vm9, %v7728_v9, %v2970_v22  ;;  %v8414_v9 = vld [vmem:[#allocation40_spill] sm:$0xff] }
 0x6a3   :  { %3683 = vmatpush2.bf16.msra.mxu0 %v6189_v12  ;;  %v2981_v12 = vsel %vm2965_vm10, %v7730_v50, %v2973_v2  ;;  %v4409_v2 = vld [vmem:[%s7992_s12 + $0x48] sm:$0xff] }
 0x6a4   :  { %4300 = vmatpush2.bf16.msra.mxu1 %v6192_v55  ;;  %3684 = vmatprep.subr.bf16.mxu0 %v6197_v51  ;;  %v7746_v55 = vpack.c.bf16 %v2978_v30, %v2978_v30  ;;  %v2989_v51 = vpack.c.bf16 %v2981_v12, %v2981_v12  ;;  %v4424_v30 = vld [vmem:[%s7992_s12 + $0xc0] sm:$0xff] }
 0x6a5   :  { %4301 = vmatprep.subr.bf16.mxu1 %v6200_v4  ;;  %v4408_v12 = vld [vmem:[%s7992_s12 + $0x40] sm:$0xff] }
 0x6a7   :  { %3685 = vmatpush2.bf16.msra.mxu0 %v6195_v57 }
 0x6a8   :  { %4302 = vmatpush2.bf16.msra.mxu1 %v6198_v54  ;;  %3686 = vmatprep.subr.bf16.mxu0 %v6203_v29 }
 0x6a9   :  { %4303 = vmatprep.subr.bf16.mxu1 %v6206_v36 }
 0x6ab   :  { %3687 = vmatpush2.bf16.msra.mxu0 %v6201_v35 }
 0x6ac   :  { %4304 = vmatpush2.bf16.msra.mxu1 %v6204_v13  ;;  %3688 = vmatprep.subr.bf16.mxu0 %v6209_v31 }
 0x6ad   :  { %4305 = vmatprep.subr.bf16.mxu1 %v6212_v14 }
 0x6af   :  { %3689 = vmatpush2.bf16.msra.mxu0 %v6207_v28  ;;  %v4411_v28 = vld [vmem:[%s7992_s12 + $0x58] sm:$0xff] }
 0x6b0   :  { %4306 = vmatpush2.bf16.msra.mxu1 %v6210_v47  ;;  %3690 = vmatprep.subr.bf16.mxu0 %v6215_v32  ;;  %v4426_v32 = vld [vmem:[%s7992_s12 + $0xd0] sm:$0xff] }
 0x6b1   :  { %4307 = vmatprep.subr.bf16.mxu1 %v6218_v26 }
 0x6b3   :  { %3691 = vmatpush2.bf16.msra.mxu0 %v6213_v8  ;;  %v4410_v8 = vld [vmem:[%s7992_s12 + $0x50] sm:$0xff] }
 0x6b4   :  { %4308 = vmatpush2.bf16.msra.mxu1 %v6216_v59  ;;  %4318 = vmatprep.subr.bf16.mxu0 %v7516_v1  ;;  %v8389_v1 = vld [vmem:[#allocation20_spill] sm:$0xff] }
 0x6b5   :  { %4359 = vmatprep.subr.bf16.mxu1 %v7520_v62  ;;  %v8391_v62 = vld [vmem:[#allocation22_spill] sm:$0xff]  ;;  %v4425_v59 = vld [vmem:[%s7992_s12 + $0xc8] sm:$0xff] }
 0x6b6   :  { %3693 = vmatmul.mubr.bf16.vlgmr.msra.gmra.mxu0 %v7746_v55 }
 0x6b7   :  { %4310 = vmatmul.mubr.bf16.vlgmr.msra.gmra.mxu1 %v7734_v63  ;;  %4319 = vmatpush1.bf16.msra.mxu0 %v7514_v33  ;;  %v8388_v33 = vld [vmem:[#allocation19_spill] sm:$0xff]  ;;  %v8415_v63 = vld [vmem:[#allocation42_spill] sm:$0xff] }
 0x6b8   :  { %4350 = vmatprep.mubr.bf16.mxu0 %v7737_v18  ;;  %4360 = vmatpush1.bf16.msra.mxu1 %v7518_v10  ;;  %v8390_v10 = vld [vmem:[#allocation21_spill] sm:$0xff] }
 0x6b9   :  { %4391 = vmatprep.mubr.bf16.mxu1 %v2989_v51  ;;  %4320 = vmatprep.subr.bf16.mxu0 %v7522_v34  ;;  %v8392_v34 = vld [vmem:[#allocation25_spill] sm:$0xff]  ;;  %v4407_v51 = vld [vmem:[%s7992_s12 + $0x38] sm:$0xff] }
 0x6ba   :  { %4361 = vmatprep.subr.bf16.mxu1 %v7525_v41  ;;  %v8393_v41 = vld [vmem:[#allocation26_spill] sm:$0xff] }
 0x6bb   :  { %4321 = vmatpush1.bf16.msra.mxu0 %v7529_v19  ;;  %v8394_v19 = vld [vmem:[#allocation28_spill] sm:$0xff] }
 0x6bc   :  { %4362 = vmatpush1.bf16.msra.mxu1 %v7533_v58  ;;  %4322 = vmatprep.subr.bf16.mxu0 %v7535_v48  ;;  %v8395_v58 = vld [vmem:[#allocation29_spill] sm:$0xff]  ;;  %v8396_v48 = vld [vmem:[#allocation30_spill] sm:$0xff] }
 0x6bd   :  { %4363 = vmatprep.subr.bf16.mxu1 %v7538_v45  ;;  %v8397_v45 = vld [vmem:[#allocation31_spill] sm:$0xff] }
 0x6bf   :  { %4323 = vmatpush1.bf16.msra.mxu0 %v7541_v40  ;;  %v8398_v40 = vld [vmem:[#allocation53_spill] sm:$0xff] }
 0x6c0   :  { %4364 = vmatpush1.bf16.msra.mxu1 %v7545_v49  ;;  %4324 = vmatprep.subr.bf16.mxu0 %v7547_v56  ;;  %v8399_v49 = vld [vmem:[#allocation79_spill] sm:$0xff]  ;;  %v8400_v56 = vld [vmem:[#allocation54_spill] sm:$0xff] }
 0x6c1   :  { %4365 = vmatprep.subr.bf16.mxu1 %v7550_v39  ;;  %v8401_v39 = vld [vmem:[#allocation80_spill] sm:$0xff] }
 0x6c3   :  { %4325 = vmatpush1.bf16.msra.mxu0 %v7553_v52  ;;  %v8402_v52 = vld [vmem:[#allocation81_spill] sm:$0xff] }
 0x6c4   :  { %4366 = vmatpush1.bf16.msra.mxu1 %v7557_v44  ;;  %4326 = vmatprep.subr.bf16.mxu0 %v7559_v27  ;;  %v8403_v44 = vld [vmem:[#allocation55_spill] sm:$0xff]  ;;  %v8404_v27 = vld [vmem:[#allocation82_spill] sm:$0xff] }
 0x6c5   :  { %4367 = vmatprep.subr.bf16.mxu1 %v7562_v61  ;;  %v8405_v61 = vld [vmem:[#allocation12_spill] sm:$0xff] }
 0x6c7   :  { %4327 = vmatpush1.bf16.msra.mxu0 %v7565_v20  ;;  %v8406_v20 = vld [vmem:[#allocation14_spill] sm:$0xff] }
 0x6c8   :  { %4368 = vmatpush1.bf16.msra.mxu1 %v7569_v38  ;;  %4328 = vmatprep.subr.bf16.mxu0 %v7571_v5  ;;  %v8407_v38 = vld [vmem:[#allocation17_spill] sm:$0xff] }
 0x6c9   :  { %4369 = vmatprep.subr.bf16.mxu1 %v7574_v11  ;;  %v2972_v5 = vmul.f32 0.2, %v8407_v38  ;;  %v8408_v11 = vld [vmem:[#allocation83_spill] sm:$0xff]  ;;  %vm2964_vm11 = vcmp.ge.f32.partialorder %v8407_v38, 0.0 }
 0x6cb   :  { %4329 = vmatpush1.bf16.msra.mxu0 %v7577_v3  ;;  %v8409_v3 = vld [vmem:[#allocation13_spill] sm:$0xff] }
 0x6cc   :  { %4370 = vmatpush1.bf16.msra.mxu1 %v7581_v23  ;;  %4330 = vmatprep.subr.bf16.mxu0 %v7583_v53  ;;  %v8410_v23 = vld [vmem:[#allocation84_spill] sm:$0xff]  ;;  %v8411_v53 = vld [vmem:[#allocation15_spill] sm:$0xff] }
 0x6cd   :  { %4371 = vmatprep.subr.bf16.mxu1 %v7586_v37  ;;  %v2980_v37 = vsel %vm2964_vm11, %v8407_v38, %v2972_v5 }
 0x6cf   :  { %4331 = vmatpush1.bf16.msra.mxu0 %v7589_v60  ;;  %v8412_v60 = vld [vmem:[#allocation85_spill] sm:$0xff] }
 0x6d0   :  { %4372 = vmatpush1.bf16.msra.mxu1 %v7593_v6  ;;  %4332 = vmatprep.subr.bf16.mxu0 %v7595_v17  ;;  %v8413_v6 = vld [vmem:[#allocation16_spill] sm:$0xff]  ;;  %v2988_v17 = vpack.c.bf16 %v2980_v37, %v2980_v37 }
 0x6d1   :  { %4373 = vmatprep.subr.bf16.mxu1 %v7598_v43  ;;  %v4431_v43 = vld [vmem:[%s7992_s12 + $0xf8] sm:$0xff] }
 0x6d3   :  { %4333 = vmatpush1.bf16.msra.mxu0 %v7601_v0  ;;  %v4415_v0 = vld [vmem:[%s7992_s12 + $0x78] sm:$0xff] }
 0x6d4   :  { %4374 = vmatpush1.bf16.msra.mxu1 %v7605_v16  ;;  %4334 = vmatprep.subr.bf16.mxu0 %v7607_v15  ;;  %v4430_v16 = vld [vmem:[%s7992_s12 + $0xf0] sm:$0xff] }
 0x6d5   :  { %4375 = vmatprep.subr.bf16.mxu1 %v7610_v25  ;;  %v4414_v15 = vld [vmem:[%s7992_s12 + $0x70] sm:$0xff]  ;;  %v4429_v25 = vld [vmem:[%s7992_s12 + $0xe8] sm:$0xff] }
 0x6d7   :  { %4335 = vmatpush2.bf16.msra.mxu0 %v7613_v42  ;;  %v4413_v42 = vld [vmem:[%s7992_s12 + $0x68] sm:$0xff] }
 0x6d8   :  { %4376 = vmatpush2.bf16.msra.mxu1 %v7617_v7  ;;  %4336 = vmatprep.subr.bf16.mxu0 %v7619_v21  ;;  %v4428_v7 = vld [vmem:[%s7992_s12 + $0xe0] sm:$0xff] }
 0x6d9   :  { %4377 = vmatprep.subr.bf16.mxu1 %v7622_v24  ;;  %v4412_v21 = vld [vmem:[%s7992_s12 + $0x60] sm:$0xff]  ;;  %v4427_v24 = vld [vmem:[%s7992_s12 + $0xd8] sm:$0xff] }
 0x6db   :  { %4337 = vmatpush2.bf16.msra.mxu0 %v7625_v46  ;;  %v2990_v46 = vld [vmem:[%s7989_s9] sm:$0x3] }
 0x6dc   :  { %4378 = vmatpush2.bf16.msra.mxu1 %v8388_v33  ;;  %4338 = vmatprep.subr.bf16.mxu0 %v8389_v1  ;;  %v7850_v50 = vrot.slane %v2990_v46, %v8414_v9  ;;  %v7853_v18 = vrot.slane %v2990_v46, %v8415_v63  ;;  %v4422_v33 = vld [vmem:[%s7992_s12 + $0xb0] sm:$0xff] }
 0x6dd   :  { %4379 = vmatprep.subr.bf16.mxu1 %v8390_v10  ;;  %v4406_v1 = vld [vmem:[%s7992_s12 + $0x30] sm:$0xff]  ;;  %v4421_v10 = vld [vmem:[%s7992_s12 + $0xa8] sm:$0xff] }
 0x6df   :  { %4339 = vmatpush2.bf16.msra.mxu0 %v8391_v62  ;;  %v4405_v62 = vld [vmem:[%s7992_s12 + $0x28] sm:$0xff] }
 0x6e0   :  { %4380 = vmatpush2.bf16.msra.mxu1 %v8392_v34  ;;  %4340 = vmatprep.subr.bf16.mxu0 %v8393_v41  ;;  %v4420_v34 = vld [vmem:[%s7992_s12 + $0xa0] sm:$0xff] }
 0x6e1   :  { %4381 = vmatprep.subr.bf16.mxu1 %v8394_v19  ;;  %v4404_v41 = vld [vmem:[%s7992_s12 + $0x20] sm:$0xff]  ;;  %v4419_v19 = vld [vmem:[%s7992_s12 + $0x98] sm:$0xff] }
 0x6e3   :  { %4341 = vmatpush2.bf16.msra.mxu0 %v8395_v58  ;;  %v4403_v58 = vld [vmem:[%s7992_s12 + $0x18] sm:$0xff] }
 0x6e4   :  { %4382 = vmatpush2.bf16.msra.mxu1 %v8396_v48  ;;  %4342 = vmatprep.subr.bf16.mxu0 %v8397_v45  ;;  %v4418_v48 = vld [vmem:[%s7992_s12 + $0x90] sm:$0xff] }
 0x6e5   :  { %4383 = vmatprep.subr.bf16.mxu1 %v8398_v40  ;;  %v4402_v45 = vld [vmem:[%s7992_s12 + $0x10] sm:$0xff]  ;;  %v4417_v40 = vld [vmem:[%s7992_s12 + $0x88] sm:$0xff] }
 0x6e7   :  { %4343 = vmatpush2.bf16.msra.mxu0 %v8399_v49  ;;  %v4401_v49 = vld [vmem:[%s7992_s12 + $0x8] sm:$0xff] }
 0x6e8   :  { %4384 = vmatpush2.bf16.msra.mxu1 %v8400_v56  ;;  %4344 = vmatprep.subr.bf16.mxu0 %v8401_v39  ;;  %v4416_v56 = vld [vmem:[%s7992_s12 + $0x80] sm:$0xff] }
 0x6e9   :  { %4385 = vmatprep.subr.bf16.mxu1 %v8402_v52  ;;  %v4400_v39 = vld [vmem:[%s7992_s12] sm:$0xff] }
 0x6eb   :  { %4345 = vmatpush2.bf16.msra.mxu0 %v8403_v44 }
 0x6ec   :  { %4386 = vmatpush2.bf16.msra.mxu1 %v8404_v27  ;;  %4346 = vmatprep.subr.bf16.mxu0 %v8405_v61 }
 0x6ed   :  { %4387 = vmatprep.subr.bf16.mxu1 %v8406_v20 }
 0x6ef   :  { %4347 = vmatpush2.bf16.msra.mxu0 %v8408_v11 }
 0x6f0   :  { %4388 = vmatpush2.bf16.msra.mxu1 %v8409_v3  ;;  %4348 = vmatprep.subr.bf16.mxu0 %v8410_v23 }
 0x6f1   :  { %4389 = vmatprep.subr.bf16.mxu1 %v8411_v53 }
 0x6f3   :  { %4349 = vmatpush2.bf16.msra.mxu0 %v8412_v60 }
 0x6f4   :  { %4390 = vmatpush2.bf16.msra.mxu1 %v8413_v6  ;;  %5599 = vmatprep.subr.mxu0 %v4431_v43 }
 0x6f5   :  { %5634 = vmatprep.subr.mxu1 %v4431_v43 }
 0x6f6   :  { %4351 = vmatmul.mubr.bf16.vlgmr.msra.gmra.mxu0 %v7746_v55  ;;  %v4423_v55 = vld [vmem:[%s7992_s12 + $0xb8] sm:$0xff] }
 0x6f7   :  { %4392 = vmatmul.mubr.bf16.vlgmr.msra.gmra.mxu1 %v2988_v17  ;;  %5600 = vmatpush3.msra.mxu0 %v4415_v0 }
 0x6f8   :  { %5635 = vmatpush3.msra.mxu1 %v4415_v0  ;;  %5601 = vmatprep.subr.mxu0 %v4430_v16 }
 0x6f9   :  { %5636 = vmatprep.subr.mxu1 %v4430_v16  ;;  %5602 = vmatpush3.msra.mxu0 %v4414_v15 }
 0x6fa   :  { %5637 = vmatpush3.msra.mxu1 %v4414_v15  ;;  %5603 = vmatprep.subr.mxu0 %v4429_v25 }
 0x6fb   :  { %5638 = vmatprep.subr.mxu1 %v4429_v25  ;;  %5604 = vmatpush3.msra.mxu0 %v4413_v42 }
 0x6fc   :  { %5639 = vmatpush3.msra.mxu1 %v4413_v42  ;;  %5605 = vmatprep.subr.mxu0 %v4428_v7 }
 0x6fd   :  { %5640 = vmatprep.subr.mxu1 %v4428_v7  ;;  %5606 = vmatpush3.msra.mxu0 %v4412_v21 }
 0x6fe   :  { %5641 = vmatpush3.msra.mxu1 %v4412_v21  ;;  %5607 = vmatprep.subr.mxu0 %v4427_v24 }
 0x6ff   :  { %5642 = vmatprep.subr.mxu1 %v4427_v24  ;;  %5608 = vmatpush3.msra.mxu0 %v4411_v28 }
 0x700   :  { %5643 = vmatpush3.msra.mxu1 %v4411_v28  ;;  %5609 = vmatprep.subr.mxu0 %v4426_v32 }
 0x701   :  { %5644 = vmatprep.subr.mxu1 %v4426_v32  ;;  %5610 = vmatpush3.msra.mxu0 %v4410_v8 }
 0x702   :  { %5645 = vmatpush3.msra.mxu1 %v4410_v8  ;;  %5611 = vmatprep.subr.mxu0 %v4425_v59 }
 0x703   :  { %5646 = vmatprep.subr.mxu1 %v4425_v59  ;;  %5612 = vmatpush3.msra.mxu0 %v4409_v2 }
 0x704   :  { %5647 = vmatpush3.msra.mxu1 %v4409_v2  ;;  %5613 = vmatprep.subr.mxu0 %v4424_v30 }
 0x705   :  { %5648 = vmatprep.subr.mxu1 %v4424_v30  ;;  %5614 = vmatpush3.msra.mxu0 %v4408_v12 }
 0x706   :  { %5649 = vmatpush3.msra.mxu1 %v4408_v12  ;;  %5615 = vmatprep.subr.mxu0 %v4423_v55 }
 0x707   :  { %5650 = vmatprep.subr.mxu1 %v4423_v55  ;;  %5616 = vmatpush3.msra.mxu0 %v4407_v51 }
 0x708   :  { %5651 = vmatpush3.msra.mxu1 %v4407_v51  ;;  %5617 = vmatprep.subr.mxu0 %v4422_v33 }
 0x709   :  { %5652 = vmatprep.subr.mxu1 %v4422_v33  ;;  %5618 = vmatpush3.msra.mxu0 %v4406_v1 }
 0x70a   :  { %5653 = vmatpush3.msra.mxu1 %v4406_v1  ;;  %5619 = vmatprep.subr.mxu0 %v4421_v10 }
 0x70b   :  { %5654 = vmatprep.subr.mxu1 %v4421_v10  ;;  %5620 = vmatpush3.msra.mxu0 %v4405_v62 }
 0x70c   :  { %5655 = vmatpush3.msra.mxu1 %v4405_v62  ;;  %5621 = vmatprep.subr.mxu0 %v4420_v34 }
 0x70d   :  { %5656 = vmatprep.subr.mxu1 %v4420_v34  ;;  %5622 = vmatpush3.msra.mxu0 %v4404_v41 }
 0x70e   :  { %5657 = vmatpush3.msra.mxu1 %v4404_v41  ;;  %5623 = vmatprep.subr.mxu0 %v4419_v19 }
 0x70f   :  { %5658 = vmatprep.subr.mxu1 %v4419_v19  ;;  %5624 = vmatpush3.msra.mxu0 %v4403_v58 }
 0x710   :  { %5659 = vmatpush3.msra.mxu1 %v4403_v58  ;;  %5625 = vmatprep.subr.mxu0 %v4418_v48 }
 0x711   :  { %5660 = vmatprep.subr.mxu1 %v4418_v48  ;;  %5626 = vmatpush3.msra.mxu0 %v4402_v45 }
 0x712   :  { %5661 = vmatpush3.msra.mxu1 %v4402_v45  ;;  %5627 = vmatprep.subr.mxu0 %v4417_v40 }
 0x713   :  { %5662 = vmatprep.subr.mxu1 %v4417_v40  ;;  %5628 = vmatpush3.msra.mxu0 %v4401_v49 }
 0x714   :  { %5663 = vmatpush3.msra.mxu1 %v4401_v49  ;;  %5629 = vmatprep.subr.mxu0 %v4416_v56 }
 0x715   :  { %5664 = vmatprep.subr.mxu1 %v4416_v56  ;;  %5630 = vmatpush3.msra.mxu0 %v4400_v39 }
 0x716   :  { %5665 = vmatpush3.msra.mxu1 %v4400_v39 }
 0x736   :  { %v3612_v4 = vpop.f32.mrf.mxu0 }
 0x737   :  { %v3653_v57 = vpop.f32.mrf.mxu1  ;;  %v3613_v54 = vadd.f32 %v3612_v4, %v7850_v50 }
 0x738   :  { %v3614_v29 = vpop.f32.mrf.mxu0 }
 0x739   :  { %v3655_v36 = vpop.f32.mrf.mxu1  ;;  %v7856_v35 = vadd.f32 %v3653_v57, %v3613_v54  ;;  %v3615_v13 = vadd.f32 %v3614_v29, %v7853_v18 }
 0x73a   :  { %v3616_v31 = vpop.f32.mrf.mxu0 }
 0x73b   :  { %v3657_v14 = vpop.f32.mrf.mxu1  ;;  %v7862_v47 = vadd.f32 %v3655_v36, %v3615_v13 }
 0x73c   :  { %v3617_v26 = vpop.f32.mrf.mxu0 }
 0x73d   :  { %v3658_v22 = vpop.f32.mrf.mxu1 }
 0x776   :  { %v3694_v52 = vpop.f32.mrf.mxu0 }
 0x777   :  { %v4311_v44 = vpop.f32.mrf.mxu1  ;;  %v3695_v27 = vadd.f32 %v3694_v52, %v7856_v35 }
 0x778   :  { %v3696_v61 = vpop.f32.mrf.mxu0  ;;  %v4312_v17 = vadd.f32 %v4311_v44, %v7850_v50 }
 0x779   :  { %v4313_v20 = vpop.f32.mrf.mxu1  ;;  %v3697_v38 = vadd.f32 %v3696_v61, %v7862_v47  ;;  %v4432_v37 = vsel %vm2613_vm4, %v3695_v27, 0.0 }
 0x77a   :  { %v3698_v5 = vpop.f32.mrf.mxu0  ;;  %v4433_v6 = vrot.slane %v4432_v37, 4  ;;  %v4314_v0 = vadd.f32 %v4313_v20, %v7853_v18 }
 0x77b   :  { %v4315_v11 = vpop.f32.mrf.mxu1  ;;  %v4439_v53 = vsel %vm2613_vm4, %v3697_v38, 0.0 }
 0x77c   :  { %v3699_v3 = vpop.f32.mrf.mxu0  ;;  %v4440_v60 = vrot.slane %v4439_v53, 4  ;;  %v4434_v7 = vadd.f32 %v4433_v6, %v4432_v37 }
 0x77d   :  { %v4316_v23 = vpop.f32.mrf.mxu1 }
 0x77e   :  { %v4441_v25 = vadd.f32 %v4440_v60, %v4439_v53  ;;  %v4435_v50 = vrot.slane %v4434_v7, 2 }
 0x780   :  { %v4442_v36 = vrot.slane %v4441_v25, 2  ;;  %v4436_v22 = vadd.f32 %v4435_v50, %v4434_v7 }
 0x782   :  { %v4443_v47 = vadd.f32 %v4442_v36, %v4441_v25  ;;  %v4437_v55 = vrot.slane %v4436_v22, 1 }
 0x784   :  { %v4444_v2 = vrot.slane %v4443_v47, 1  ;;  %v4438_v62 = vadd.f32 %v4437_v55, %v4436_v22  ;;  %v6224_v22 = vld [vmem:[#allocation7 + $0xf0] sm:$0xff]   ;;  %v6230_v55 = vld [vmem:[#allocation7 + $0xa8] sm:$0xff]  }
 0x786   :  { %v4445_v1 = vadd.f32 %v4444_v2, %v4443_v47  ;;  %v6221_v47 = vld [vmem:[#allocation7 + $0x38] sm:$0xff]   ;;  %v6227_v2 = vld [vmem:[#allocation7 + $0x68] sm:$0xff]  }
 0x7b6   :  { %v4352_v43 = vpop.f32.mrf.mxu0 }
 0x7b7   :  { %v4353_v16 = vadd.f32 %v4352_v43, %v4312_v17  ;;  %v4393_v15 = vpop.f32.mrf.mxu1 }
 0x7b8   :  { %v4354_v42 = vpop.f32.mrf.mxu0 }
 0x7b9   :  { %v4394_v21 = vadd.f32 %v4393_v15, %v4353_v16  ;;  %v4355_v24 = vadd.f32 %v4354_v42, %v4314_v0  ;;  %v4395_v46 = vpop.f32.mrf.mxu1 }
 0x7ba   :  { %v4356_v4 = vpop.f32.mrf.mxu0 }
 0x7bb   :  { %v4446_v57 = vsel %vm2613_vm4, %v4394_v21, 0.0  ;;  %v4396_v54 = vadd.f32 %v4395_v46, %v4355_v24  ;;  %v4397_v29 = vpop.f32.mrf.mxu1 }
 0x7bc   :  { %v4447_v35 = vrot.slane %v4446_v57, 4  ;;  %v4357_v13 = vpop.f32.mrf.mxu0 }
 0x7bd   :  { %v4453_v31 = vsel %vm2613_vm4, %v4396_v54, 0.0  ;;  %v4398_v18 = vpop.f32.mrf.mxu1 }
 0x7be   :  { %v4448_v14 = vadd.f32 %v4447_v35, %v4446_v57  ;;  %v4454_v28 = vrot.slane %v4453_v31, 4 }
 0x7c0   :  { %v4449_v32 = vrot.slane %v4448_v14, 2  ;;  %v4455_v26 = vadd.f32 %v4454_v28, %v4453_v31  ;;  %v6220_v28 = vld [vmem:[#allocation7 + $0xf8] sm:$0xff]  }
 0x7c1   :  { %5691 = vmatprep.subr.bf16.mxu1 %v6220_v28 }
 0x7c2   :  { %v4450_v8 = vadd.f32 %v4449_v32, %v4448_v14  ;;  %v4456_v59 = vrot.slane %v4455_v26, 2  ;;  %v6219_v14 = vld [vmem:[#allocation7 + $0x78] sm:$0xff]  }
 0x7c3   :  { %v6222_v32 = vld [vmem:[#allocation7 + $0xb8] sm:$0xff]   ;;  %5669 = vmatprep.subr.bf16.mxu0 %v6219_v14 }
 0x7c4   :  { %v4451_v30 = vrot.slane %v4450_v8, 1  ;;  %v4457_v12 = vadd.f32 %v4456_v59, %v4455_v26  ;;  %v6223_v26 = vld [vmem:[#allocation7 + $0x70] sm:$0xff]  }
 0x7c5   :  { %v6226_v59 = vld [vmem:[#allocation7 + $0xb0] sm:$0xff]  }
 0x7c6   :  { %v4458_v51 = vrot.slane %v4457_v12, 1  ;;  %v4452_v33 = vadd.f32 %v4451_v30, %v4450_v8  ;;  %v6225_v8 = vld [vmem:[#allocation7 + $0x30] sm:$0xff]   ;;  %v6228_v30 = vld [vmem:[#allocation7 + $0xe8] sm:$0xff]  }
 0x7c8   :  { %v4459_v10 = vadd.f32 %v4458_v51, %v4457_v12  ;;  %v4460_v41 = vadd.f32 %v4452_v33, %v4438_v62  ;;  %v6229_v12 = vld [vmem:[#allocation7 + $0x28] sm:$0xff]   ;;  %v6231_v51 = vld [vmem:[#allocation7 + $0x60] sm:$0xff]   ;;  %v6235_v62 = vld [vmem:[#allocation7 + $0x58] sm:$0xff]  }
 0x7c9   :  { %v6232_v33 = vld [vmem:[#allocation7 + $0xe0] sm:$0xff]  }
 0x7ca   :  { %v4461_v34 = vadd.f32 %v4459_v10, %v4445_v1  ;;  %v6233_v1 = vld [vmem:[#allocation7 + $0x20] sm:$0xff]  }
 0x7cb   :  { %v6234_v10 = vld [vmem:[#allocation7 + $0xa0] sm:$0xff]  }
 0x7cc   :  { %4526 = vmatprep.mubr.f32.mxu0 %v4461_v34  ;;  %v6236_v34 = vld [vmem:[#allocation7 + $0xd8] sm:$0xff]  }
 0x7cd   :  { %4527 = vmatmul.mubr.f32.vlgmr.msra.gmra.mxu0 %v4460_v41  ;;  %v6237_v41 = vld [vmem:[#allocation7 + $0x18] sm:$0xff]  }
 0x7ce   :  { %5670 = vmatpush3.bf16.msra.mxu0 %v6221_v47 }
 0x7cf   :  { %5671 = vmatprep.subr.bf16.mxu0 %v6223_v26  ;;  %v5496_v26 = vld [vmem:[%s7994_s14] ss:$0 sm:$0xff] }
 0x7d2   :  { %5672 = vmatpush3.bf16.msra.mxu0 %v6225_v8 }
 0x7d3   :  { %5673 = vmatprep.subr.bf16.mxu0 %v6227_v2 }
 0x7d6   :  { %5674 = vmatpush3.bf16.msra.mxu0 %v6229_v12 }
 0x7d7   :  { %5675 = vmatprep.subr.bf16.mxu0 %v6231_v51 }
 0x7da   :  { %5676 = vmatpush3.bf16.msra.mxu0 %v6233_v1 }
 0x7db   :  { %5677 = vmatprep.subr.bf16.mxu0 %v6235_v62 }
 0x7de   :  { %5678 = vmatpush3.bf16.msra.mxu0 %v6237_v41 }
 0x88d   :  { %v5631_v19 = vpop.f32.mrf.mxu0 }
 0x88f   :  { %v5632_v58 = vpop.f32.mrf.mxu0 }
 0x890   :  { %v5633_v48 = vadd.f32 %v5632_v58, %v5631_v19  ;;  %v6238_v19 = vld [vmem:[#allocation7 + $0x98] sm:$0xff]   ;;  %v6239_v58 = vld [vmem:[#allocation7 + $0x50] sm:$0xff]  }
 0x891   :  { %5679 = vmatprep.subr.bf16.mxu0 %v6239_v58 }
 0x892   :  { %v4532_v45 = vmul.f32 0.125, %v5633_v48  ;;  %v6240_v48 = vld [vmem:[#allocation7 + $0xd0] sm:$0xff]  }
 0x894   :  { %v4536_v40 = vrot.slane %v4532_v45, %v8414_v9  ;;  %v6241_v45 = vld [vmem:[#allocation7 + $0x10] sm:$0xff]  }
 0x895   :  { %5680 = vmatpush3.bf16.msra.mxu0 %v6241_v45 }
 0x896   :  { %v7939_v49 = vsub.f32 %v3695_v27, %v4536_v40  ;;  %v7941_v56 = vsub.f32 %v3697_v38, %v4536_v40  ;;  %v7943_v39 = vsub.f32 %v4394_v21, %v4536_v40  ;;  %v7945_v52 = vsub.f32 %v4396_v54, %v4536_v40  ;;  %v6242_v40 = vld [vmem:[#allocation7 + $0x90] sm:$0xff]  }
 0x898   :  { %v4541_v44 = vmul.f32 %v7939_v49, %v7939_v49  ;;  %v4543_v61 = vmul.f32 %v7943_v39, %v7943_v39  ;;  %v4542_v20 = vmul.f32 %v7941_v56, %v7941_v56  ;;  %v4544_v5 = vmul.f32 %v7945_v52, %v7945_v52 }
 0x89a   :  { %v4552_v27 = vsel %vm2613_vm4, %v4542_v20, 0.0  ;;  %v4566_v38 = vsel %vm2613_vm4, %v4544_v5, 0.0  ;;  %v4545_v11 = vsel %vm2613_vm4, %v4541_v44, 0.0  ;;  %v4559_v3 = vsel %vm2613_vm4, %v4543_v61, 0.0  ;;  %v6243_v44 = vld [vmem:[#allocation7 + $0x48] sm:$0xff]  }
 0x89b   :  { %v4553_v23 = vrot.slane %v4552_v27, 4  ;;  %v4567_v53 = vrot.slane %v4566_v38, 4  ;;  %v4546_v37 = vrot.slane %v4545_v11, 4  ;;  %v4560_v60 = vrot.slane %v4559_v3, 4  ;;  %v6244_v61 = vld [vmem:[#allocation7 + $0xc8] sm:$0xff]   ;;  %5681 = vmatprep.subr.bf16.mxu0 %v6243_v44 }
 0x89c   :  { %v6245_v20 = vld [vmem:[#allocation7 + $0x8] sm:$0xff]  }
 0x89d   :  { %v4554_v6 = vadd.f32 %v4553_v23, %v4552_v27  ;;  %v4568_v17 = vadd.f32 %v4567_v53, %v4566_v38  ;;  %v4547_v43 = vadd.f32 %v4546_v37, %v4545_v11  ;;  %v4561_v0 = vadd.f32 %v4560_v60, %v4559_v3  ;;  %v6246_v5 = vld [vmem:[#allocation7 + $0x88] sm:$0xff]   ;;  %v6247_v27 = vld [vmem:[#allocation7 + $0x40] sm:$0xff]   ;;  %5682 = vmatpush3.bf16.msra.mxu0 %v6245_v20 }
 0x89e   :  { %v6248_v38 = vld [vmem:[#allocation7 + $0xc0] sm:$0xff]   ;;  %5683 = vmatprep.subr.bf16.mxu0 %v6247_v27 }
 0x89f   :  { %v4555_v16 = vrot.slane %v4554_v6, 2  ;;  %v4569_v15 = vrot.slane %v4568_v17, 2  ;;  %v4548_v25 = vrot.slane %v4547_v43, 2  ;;  %v4562_v42 = vrot.slane %v4561_v0, 2  ;;  %v6249_v11 = vld [vmem:[#allocation7] sm:$0xff]  }
 0x8a0   :  { %v6250_v3 = vld [vmem:[#allocation7 + $0x80] sm:$0xff]  }
 0x8a1   :  { %v4556_v7 = vadd.f32 %v4555_v16, %v4554_v6  ;;  %v4570_v21 = vadd.f32 %v4569_v15, %v4568_v17  ;;  %v4549_v24 = vadd.f32 %v4548_v25, %v4547_v43  ;;  %v4563_v46 = vadd.f32 %v4562_v42, %v4561_v0  ;;  %5684 = vmatpush3.bf16.msra.mxu0 %v6249_v11  ;;  %v4658_v17 = vld [vmem:[%s7991_s11] sm:$0x3] }
 0x8a2   :  { %v4646_v43 = vld [vmem:[%s7990_s10] sm:$0x1]  ;;  %v4663_v0 = vrot.slane %v4658_v17, %v8414_v9  ;;  %v4667_v16 = vrot.slane %v4658_v17, %v8415_v63 }
 0x8a3   :  { %v4557_v4 = vrot.slane %v4556_v7, 1  ;;  %v4571_v57 = vrot.slane %v4570_v21, 1  ;;  %v4550_v54 = vrot.slane %v4549_v24, 1  ;;  %v4564_v29 = vrot.slane %v4563_v46, 1 }
 0x8a5   :  { %v4558_v36 = vadd.f32 %v4557_v4, %v4556_v7  ;;  %v4572_v35 = vadd.f32 %v4571_v57, %v4570_v21  ;;  %v4551_v13 = vadd.f32 %v4550_v54, %v4549_v24  ;;  %v4565_v50 = vadd.f32 %v4564_v29, %v4563_v46 }
 0x8a6   :  { %v4677_v7 = vrot.slane %v4667_v16, %v8414_v9  ;;  %v4673_v21 = vrot.slane %v4663_v0, %v8414_v9 }
 0x8a7   :  { %v4574_v31 = vadd.f32 %v4572_v35, %v4558_v36  ;;  %v4573_v18 = vadd.f32 %v4565_v50, %v4551_v13 }
 0x8a9   :  { %4639 = vmatprep.mubr.f32.mxu1 %v4574_v31 }
 0x8aa   :  { %4640 = vmatmul.mubr.f32.vlgmr.msra.gmra.mxu1 %v4573_v18 }
 0x8ab   :  { %5692 = vmatpush3.bf16.msra.mxu1 %v6222_v32 }
 0x8ac   :  { %5693 = vmatprep.subr.bf16.mxu1 %v6224_v22 }
 0x8af   :  { %5694 = vmatpush3.bf16.msra.mxu1 %v6226_v59 }
 0x8b0   :  { %5695 = vmatprep.subr.bf16.mxu1 %v6228_v30 }
 0x8b3   :  { %5696 = vmatpush3.bf16.msra.mxu1 %v6230_v55 }
 0x8b4   :  { %5697 = vmatprep.subr.bf16.mxu1 %v6232_v33 }
 0x8b7   :  { %5698 = vmatpush3.bf16.msra.mxu1 %v6234_v10 }
 0x8b8   :  { %5699 = vmatprep.subr.bf16.mxu1 %v6236_v34 }
 0x8bb   :  { %5700 = vmatpush3.bf16.msra.mxu1 %v6238_v19 }
 0x8bc   :  { %5701 = vmatprep.subr.bf16.mxu1 %v6240_v48 }
 0x8bf   :  { %5702 = vmatpush3.bf16.msra.mxu1 %v6242_v40 }
 0x8c0   :  { %5703 = vmatprep.subr.bf16.mxu1 %v6244_v61 }
 0x8c3   :  { %5704 = vmatpush3.bf16.msra.mxu1 %v6246_v5 }
 0x8c4   :  { %5705 = vmatprep.subr.bf16.mxu1 %v6248_v38 }
 0x8c7   :  { %5706 = vmatpush3.bf16.msra.mxu1 %v6250_v3 }
 0x96a   :  { %v5666_v23 = vpop.f32.mrf.mxu1 }
 0x96c   :  { %v5667_v53 = vpop.f32.mrf.mxu1 }
 0x96d   :  { %v5668_v37 = vadd.f32 %v5667_v53, %v5666_v23 }
 0x96f   :  { %v4645_v60 = vmul.f32 0.125, %v5668_v37 }
 0x971   :  { %v4647_v6 = vadd.f32 1e-05, %v4645_v60 }
 0x973   :  { %6253 = vrsqrt.f32 %v4647_v6 }
 0x980   :  { %v6254_v15 = vpop.eup %6253 }
 0x981   :  { %v4649_v25 = vmul.f32 %v6254_v15, %v4646_v43 }
 0x983   :  { %v4653_v42 = vrot.slane %v4649_v25, %v8414_v9 }
 0x985   :  { %v4655_v24 = vmul.f32 %v4653_v42, %v7941_v56  ;;  %v4657_v46 = vmul.f32 %v4653_v42, %v7945_v52  ;;  %v4654_v4 = vmul.f32 %v4653_v42, %v7939_v49  ;;  %v4656_v57 = vmul.f32 %v4653_v42, %v7943_v39 }
 0x987   :  { %v4679_v54 = vadd.f32 %v4677_v7, %v4655_v24  ;;  %v4681_v29 = vadd.f32 %v4677_v7, %v4657_v46  ;;  %v4678_v36 = vadd.f32 %v4673_v21, %v4654_v4  ;;  %v4680_v63 = vadd.f32 %v4673_v21, %v4656_v57 }
 0x989   :  { %vm4683_vm12 = vcmp.ge.f32.partialorder %v4679_v54, 0.0  ;;  %v4687_v35 = vmul.f32 0.2, %v4679_v54  ;;  %vm4685_vm13 = vcmp.ge.f32.partialorder %v4681_v29, 0.0  ;;  %v4689_v13 = vmul.f32 0.2, %v4681_v29 }
 0x98a   :  { %vm4682_vm14 = vcmp.ge.f32.partialorder %v4678_v36, 0.0  ;;  %v4686_v50 = vmul.f32 0.2, %v4678_v36  ;;  %vm4684_vm15 = vcmp.ge.f32.partialorder %v4680_v63, 0.0  ;;  %v4688_v9 = vmul.f32 0.2, %v4680_v63 }
 0x98b   :  { %v4691_v31 = vsel %vm4683_vm12, %v4679_v54, %v4687_v35  ;;  %v4693_v56 = vsel %vm4685_vm13, %v4681_v29, %v4689_v13 }
 0x98c   :  { %v4695_v18 = vpack.c.bf16 %v4691_v31, %v4691_v31  ;;  %v4697_v52 = vpack.c.bf16 %v4693_v56, %v4693_v56  ;;  %v4690_v14 = vsel %vm4682_vm14, %v4678_v36, %v4686_v50  ;;  %v4692_v49 = vsel %vm4684_vm15, %v4680_v63, %v4688_v9 }
 0x98d   :  { %v4694_v28 = vpack.c.bf16 %v4690_v14, %v4690_v14  ;;  %v4696_v39 = vpack.c.bf16 %v4692_v49, %v4692_v49 }
 0x98e   :  { %4993 = vmatprep.mubr.bf16.mxu0 %v4695_v18  ;;  %5033 = vmatprep.mubr.bf16.mxu1 %v4697_v52 }
 0x98f   :  { %4994 = vmatmul.mubr.bf16.vlgmr.msra.gmra.mxu0 %v4694_v28  ;;  %5034 = vmatmul.mubr.bf16.vlgmr.msra.gmra.mxu1 %v4696_v39 }
 0xa4f   :  { %v5685_v47 = vpop.f32.mrf.mxu0  ;;  %v5707_v32 = vpop.f32.mrf.mxu1 }
 0xa51   :  { %v5686_v22 = vpop.f32.mrf.mxu0  ;;  %v5708_v8 = vpop.f32.mrf.mxu1 }
 0xa52   :  { %v5687_v59 = vadd.f32 %v5686_v22, %v5685_v47  ;;  %v5709_v55 = vadd.f32 %v5708_v8, %v5707_v32 }
 0xa53   :  { %v5688_v2 = vpop.f32.mrf.mxu0  ;;  %v5710_v30 = vpop.f32.mrf.mxu1 }
 0xa54   :  { %v4996_v12 = vadd.f32 %v5687_v59, %v5496_v26 }
 0xa55   :  { %v5689_v51 = vpop.f32.mrf.mxu0  ;;  %v5711_v33 = vpop.f32.mrf.mxu1 }
 0xa56   :  { %v5036_v1 = vadd.f32 %v5709_v55, %v4996_v12 }
 0xa58   :  { %5041 = vst [vmem:[#allocation8] sm:$0x3] %v5036_v1 }
 0xa59   :  { %6344 = shalt.err (!%p6341_p5)
}
 0xa5a   :  { %5051 = dma.vmem_to_hbm [thread:$0]  %s5049_s2, 32, %s7995_s15, [#allocation4]  }
 0xa5b   :  { %6357 = dma.done.wait [#allocation4], 32  }
 0xa5c   :  { %6358 = vsyncadd [#allocation4], 4294967264 }
 0xa5d   :  { %5055 = vsyncpa [#allocation3], 1 }
 0xa5e   :  { %5056 = vsyncpa [#allocation6], 1 }
 0xa5f   :  { %5057 = vsyncpa [#allocation4], 1 }

</bundles_post_ra>
